<compile_context>
chip_gen: v5e
topology: v5e:2x2
jax: 0.10.0
libtpu: 0.0.40
codegen_flags: <defaults>
</compile_context>

<pallas_src>
import functools
import math

import numpy as np
import jax
import jax.numpy as jnp
from jax.experimental import pallas as pl
from jax.experimental.pallas import tpu as pltpu


# ----------------------------- Pallas kernel -------------------------------

def _layernorm(x, w, b, eps=1e-5):
    mu = jnp.mean(x, axis=-1, keepdims=True)
    var = jnp.mean(jnp.square(x - mu), axis=-1, keepdims=True)
    return (x - mu) * jax.lax.rsqrt(var + eps) * w + b


def _fused_transformer_kernel(x_ref, ew_ref, eb_ref, wqkv_ref, bqkv_ref,
                              wo_ref, w1_ref, b1_ref, w2_ref, vec_ref,
                              dw_ref, db_ref, o_ref, *,
                              S, nhead, d_model, num_layers):
    """One grid step = one full sequence (S, ...), all weights VMEM-resident.

    refs:
      x_ref    (S, In)  f32      ew_ref  (In, D) bf16 (pre-scaled by sqrt(D))
      eb_ref   (S, D)   f32      (embed bias * sqrt(D) + positional encoding)
      wqkv_ref (L, D, 3D) bf16   (q columns pre-scaled by 1/sqrt(hd))
      bqkv_ref (L, 1, 3D) f32
      wo_ref   (L, D, D)  bf16
      w1_ref   (L, D, FF) bf16   b1_ref (L, 1, FF) f32
      w2_ref   (L, FF, D) bf16
      vec_ref  (L, 6, D)  f32    rows: [bo, ln1w, ln1b, b2, ln2w, ln2b]
      dw_ref   (D, In) bf16      db_ref (1, In) f32
      o_ref    (S, In) f32
    """
    bf16 = jnp.bfloat16
    f32 = jnp.float32
    hd = d_model // nhead

    # ---- embedding + positional encoding (scale & pe folded into weights) --
    y = jnp.dot(x_ref[...].astype(bf16), ew_ref[...],
                preferred_element_type=f32) + eb_ref[...]            # (S, D)

    def split_heads(t):        # (S, D) f32 -> (nhead, S, hd) bf16
        return jnp.stack(
            [t[:, h * hd:(h + 1) * hd] for h in range(nhead)], axis=0
        ).astype(bf16)

    # ---- encoder layers (static unroll) ------------------------------------
    for l in range(num_layers):
        vec = vec_ref[l]                                             # (6, D)
        bo = vec[0:1, :]
        ln1w = vec[1:2, :]
        ln1b = vec[2:3, :]
        b2 = vec[3:4, :]
        ln2w = vec[4:5, :]
        ln2b = vec[5:6, :]

        # fused QKV projection: one wide matmul, one bias add
        qkv = jnp.dot(y.astype(bf16), wqkv_ref[l],
                      preferred_element_type=f32) + bqkv_ref[l]      # (S, 3D)

        qh = split_heads(qkv[:, :d_model])                           # (H,S,hd)
        kh = split_heads(qkv[:, d_model:2 * d_model])
        vh = split_heads(qkv[:, 2 * d_model:])

        # batched over heads: one score matmul + one softmax + one context
        s = jnp.einsum('hqd,hkd->hqk', qh, kh,
                       preferred_element_type=f32)                   # (H,S,S)
        s = s - jnp.max(s, axis=-1, keepdims=True)
        e = jnp.exp(s)
        p = e * pl.reciprocal(jnp.sum(e, axis=-1, keepdims=True), approx=True)
        ctx = jnp.einsum('hqk,hkd->hqd', p.astype(bf16), vh,
                         preferred_element_type=f32)                 # (H,S,hd)

        # concat heads along lanes, single wide output projection
        ctx = jnp.concatenate([ctx[h] for h in range(nhead)], axis=-1)  # (S,D)
        attn = jnp.dot(ctx.astype(bf16), wo_ref[l],
                       preferred_element_type=f32) + bo

        # residual + layernorm 1
        y = _layernorm(y + attn, ln1w, ln1b)

        # feed-forward
        h1 = jnp.dot(y.astype(bf16), w1_ref[l],
                     preferred_element_type=f32) + b1_ref[l]
        h1 = jnp.maximum(h1, 0.0)
        h2 = jnp.dot(h1.astype(bf16), w2_ref[l],
                     preferred_element_type=f32) + b2

        # residual + layernorm 2
        y = _layernorm(y + h2, ln2w, ln2b)

    # ---- decoder ------------------------------------------------------------
    o_ref[...] = jnp.dot(y.astype(bf16), dw_ref[...],
                         preferred_element_type=f32) + db_ref[...]


# ------------------------------- wrapper ------------------------------------

def transformer_forward(x, kp, *, nhead):
    B, S, In = x.shape
    D = int(kp["d_model"])
    L = int(kp["num_layers"])
    x2 = x.reshape(B * S, In)                 # reshape in the wrapper (free)

    def full_spec(a):
        n = a.ndim
        return pl.BlockSpec(a.shape, lambda b, n=n: (0,) * n)

    in_specs = [
        pl.BlockSpec((S, In), lambda b: (b, 0)),       # x: one sequence / step
        full_spec(kp["embed_w"]),
        pl.BlockSpec((S, D), lambda b: (0, 0)),        # embed bias + pe[:S]
        full_spec(kp["wqkv"]), full_spec(kp["bqkv"]),
        full_spec(kp["wo"]),
        full_spec(kp["w1"]), full_spec(kp["b1"]), full_spec(kp["w2"]),
        full_spec(kp["vecd"]),
        full_spec(kp["dec_w"]), full_spec(kp["dec_b"]),
    ]

    kernel = functools.partial(_fused_transformer_kernel, S=S, nhead=nhead,
                               d_model=D, num_layers=L)
    out = pl.pallas_call(
        kernel,
        grid=(B,),
        in_specs=in_specs,
        out_specs=pl.BlockSpec((S, In), lambda b: (b, 0)),
        out_shape=jax.ShapeDtypeStruct((B * S, In), jnp.float32),
        compiler_params=pltpu.CompilerParams(
            dimension_semantics=("parallel",)),      # v7x: both TensorCores
    )(x2, kp["embed_w"], kp["embed_bias"], kp["wqkv"], kp["bqkv"],
      kp["wo"], kp["w1"], kp["b1"], kp["w2"], kp["vecd"],
      kp["dec_w"], kp["dec_b"])
    return out.reshape(B, S, In)


# ----------------------- params (module-style) + packing --------------------

def sinusoidal_pe(max_len, d_model):
    pos = np.arange(max_len, dtype=np.float32)[:, None]
    div = np.exp(np.arange(0, d_model, 2, dtype=np.float32)
                 * (-math.log(10000.0) / d_model))
    pe = np.zeros((max_len, d_model), np.float32)
    pe[:, 0::2] = np.sin(pos * div)
    pe[:, 1::2] = np.cos(pos * div)
    return jnp.asarray(pe)


def init_params(key, input_size, d_model, nhead, num_layers, dim_ff, max_seq_len):
    """f32 parameters in PyTorch (out_features, in_features) convention."""
    def lin(k, fan_in, fan_out):
        k1, k2 = jax.random.split(k)
        w = jax.random.normal(k1, (fan_out, fan_in), jnp.float32) * 0.02
        b = jax.random.normal(k2, (fan_out,), jnp.float32) * 0.02
        return w, b

    keys = jax.random.split(key, 2 + num_layers)
    ew, eb = lin(keys[0], input_size, d_model)
    dw, db = lin(keys[1], d_model, input_size)

    layers = []
    for li in range(num_layers):
        lk = jax.random.split(keys[2 + li], 8)
        in_w, in_b = lin(lk[0], d_model, 3 * d_model)
        out_w, out_b = lin(lk[1], d_model, d_model)
        l1w, l1b = lin(lk[2], d_model, dim_ff)
        l2w, l2b = lin(lk[3], dim_ff, d_model)
        ln1w = 1.0 + 0.01 * jax.random.normal(lk[4], (d_model,), jnp.float32)
        ln1b = 0.01 * jax.random.normal(lk[5], (d_model,), jnp.float32)
        ln2w = 1.0 + 0.01 * jax.random.normal(lk[6], (d_model,), jnp.float32)
        ln2b = 0.01 * jax.random.normal(lk[7], (d_model,), jnp.float32)
        layers.append(dict(in_proj_w=in_w, in_proj_b=in_b,
                           out_proj_w=out_w, out_proj_b=out_b,
                           lin1_w=l1w, lin1_b=l1b, lin2_w=l2w, lin2_b=l2b,
                           ln1_w=ln1w, ln1_b=ln1b, ln2_w=ln2w, ln2_b=ln2b))

    return dict(d_model=d_model, embed_w=ew, embed_b=eb,
                dec_w=dw, dec_b=db, pe=sinusoidal_pe(max_seq_len, d_model),
                layers=layers)


def pack_params(raw, *, nhead):
    """Fold scales + stack per-layer params into a few kernel arrays."""
    D = raw["d_model"]
    hd = D // nhead
    scale = math.sqrt(float(D))
    qscale = 1.0 / math.sqrt(float(hd))
    bf16, f32 = jnp.bfloat16, jnp.float32

    ew = (raw["embed_w"].T * scale).astype(bf16)                      # (In, D)
    ebias = (raw["embed_b"][None, :] * scale + raw["pe"]).astype(f32)  # (ML, D)

    qmask = jnp.concatenate([jnp.full((D,), qscale, f32),
                             jnp.ones((2 * D,), f32)])
    wqkv, bqkv, wo, w1, b1, w2, vecd = [], [], [], [], [], [], []
    for lp in raw["layers"]:
        wqkv.append((lp["in_proj_w"].T * qmask[None, :]).astype(bf16))
        bqkv.append((lp["in_proj_b"] * qmask)[None, :].astype(f32))
        wo.append(lp["out_proj_w"].T.astype(bf16))
        w1.append(lp["lin1_w"].T.astype(bf16))
        b1.append(lp["lin1_b"][None, :].astype(f32))
        w2.append(lp["lin2_w"].T.astype(bf16))
        vecd.append(jnp.stack([lp["out_proj_b"], lp["ln1_w"], lp["ln1_b"],
                               lp["lin2_b"], lp["ln2_w"], lp["ln2_b"]],
                              axis=0).astype(f32))

    return dict(d_model=D, num_layers=len(raw["layers"]),
                embed_w=ew, embed_bias=ebias,
                wqkv=jnp.stack(wqkv), bqkv=jnp.stack(bqkv),
                wo=jnp.stack(wo),
                w1=jnp.stack(w1), b1=jnp.stack(b1), w2=jnp.stack(w2),
                vecd=jnp.stack(vecd),
                dec_w=raw["dec_w"].T.astype(bf16),
                dec_b=raw["dec_b"][None, :].astype(f32))


# ------------------------------ pure-JAX reference ---------------------------

def _ref_layernorm(x, w, b, eps=1e-5):
    mu = jnp.mean(x, axis=-1, keepdims=True)
    var = jnp.mean(jnp.square(x - mu), axis=-1, keepdims=True)
    return (x - mu) / jnp.sqrt(var + eps) * w + b


def ref_forward(x, raw, *, nhead):
    D = raw["d_model"]
    B, S, _ = x.shape
    hd = D // nhead
    y = x @ raw["embed_w"].T + raw["embed_b"]
    y = y * math.sqrt(float(D)) + raw["pe"][:S][None]
    for lp in raw["layers"]:
        qkv = y @ lp["in_proj_w"].T + lp["in_proj_b"]
        q, k, v = jnp.split(qkv, 3, axis=-1)

        def heads(t):
            return t.reshape(B, S, nhead, hd).transpose(0, 2, 1, 3)

        qh, kh, vh = heads(q), heads(k), heads(v)
        s = jnp.einsum("bhqd,bhkd->bhqk", qh, kh) / math.sqrt(hd)
        p = jax.nn.softmax(s, axis=-1)
        a = jnp.einsum("bhqk,bhkd->bhqd", p, vh)
        a = a.transpose(0, 2, 1, 3).reshape(B, S, D)
        a = a @ lp["out_proj_w"].T + lp["out_proj_b"]
        y = _ref_layernorm(y + a, lp["ln1_w"], lp["ln1_b"])
        h = jax.nn.relu(y @ lp["lin1_w"].T + lp["lin1_b"])
        h = h @ lp["lin2_w"].T + lp["lin2_b"]
        y = _ref_layernorm(y + h, lp["ln2_w"], lp["ln2_b"])
    return y @ raw["dec_w"].T + raw["dec_b"]


# --------------------------------- main --------------------------------------

if __name__ == "__main__":
    input_size, d_model, nhead, num_layers, max_seq_len = 16, 32, 4, 2, 16
    dim_ff = 2048   # nn.TransformerEncoderLayer default
    B, S = 2, 8

    root = jax.random.PRNGKey(0)
    pkey, xkey = jax.random.split(root)
    raw = init_params(pkey, input_size, d_model, nhead, num_layers,
                      dim_ff, max_seq_len)
    kp = pack_params(raw, nhead=nhead)
    x = jax.random.normal(xkey, (B, S, input_size), jnp.float32)

    out = transformer_forward(x, kp, nhead=nhead)
    out = jax.block_until_ready(out)
    assert out.shape == (B, S, input_size)

    ref = jax.block_until_ready(ref_forward(x, raw, nhead=nhead))
    np.testing.assert_allclose(np.asarray(out), np.asarray(ref),
                               rtol=2e-2, atol=2e-2)
    print("KERNEL_OK")
</pallas_src>

<mosaic_0001>
module attributes {stable_mosaic.version = 11 : i64} {
  func.func @_fused_transformer_kernel(%arg0: i32, %arg1: memref<8x16xf32, #tpu.memory_space<vmem>>, %arg2: memref<16x32xbf16, #tpu.memory_space<vmem>>, %arg3: memref<8x32xf32, #tpu.memory_space<vmem>>, %arg4: memref<2x32x96xbf16, #tpu.memory_space<vmem>>, %arg5: memref<2x1x96xf32, #tpu.memory_space<vmem>>, %arg6: memref<2x32x32xbf16, #tpu.memory_space<vmem>>, %arg7: memref<2x32x2048xbf16, #tpu.memory_space<vmem>>, %arg8: memref<2x1x2048xf32, #tpu.memory_space<vmem>>, %arg9: memref<2x2048x32xbf16, #tpu.memory_space<vmem>>, %arg10: memref<2x6x32xf32, #tpu.memory_space<vmem>>, %arg11: memref<32x16xbf16, #tpu.memory_space<vmem>>, %arg12: memref<1x16xf32, #tpu.memory_space<vmem>>, %arg13: memref<8x16xf32, #tpu.memory_space<vmem>>) attributes {dimension_semantics = [#tpu.dimension_semantics<parallel>], iteration_bounds = array<i64: 2>, scalar_prefetch = 0 : i64, scratch_operands = 0 : i64, tpu.core_type = #tpu.core_type<tc>, window_params = [{transform_indices = @transform_0, window_bounds = array<i64: 8, 16>}, {pipeline_mode = #tpu.pipeline_mode<synchronous>, transform_indices = @transform_1, window_bounds = array<i64: 16, 32>}, {transform_indices = @transform_2, window_bounds = array<i64: 8, 32>}, {pipeline_mode = #tpu.pipeline_mode<synchronous>, transform_indices = @transform_3, window_bounds = array<i64: 2, 32, 96>}, {pipeline_mode = #tpu.pipeline_mode<synchronous>, transform_indices = @transform_4, window_bounds = array<i64: 2, 1, 96>}, {pipeline_mode = #tpu.pipeline_mode<synchronous>, transform_indices = @transform_5, window_bounds = array<i64: 2, 32, 32>}, {pipeline_mode = #tpu.pipeline_mode<synchronous>, transform_indices = @transform_6, window_bounds = array<i64: 2, 32, 2048>}, {pipeline_mode = #tpu.pipeline_mode<synchronous>, transform_indices = @transform_7, window_bounds = array<i64: 2, 1, 2048>}, {pipeline_mode = #tpu.pipeline_mode<synchronous>, transform_indices = @transform_8, window_bounds = array<i64: 2, 2048, 32>}, {pipeline_mode = #tpu.pipeline_mode<synchronous>, transform_indices = @transform_9, window_bounds = array<i64: 2, 6, 32>}, {pipeline_mode = #tpu.pipeline_mode<synchronous>, transform_indices = @transform_10, window_bounds = array<i64: 32, 16>}, {pipeline_mode = #tpu.pipeline_mode<synchronous>, transform_indices = @transform_11, window_bounds = array<i64: 1, 16>}, {transform_indices = @transform_12, window_bounds = array<i64: 8, 16>}]} {
    %c0 = arith.constant 0 : index
    %c0_0 = arith.constant 0 : index
    %0 = vector.load %arg1[%c0, %c0_0] : memref<8x16xf32, #tpu.memory_space<vmem>>, vector<8x16xf32>
    %1 = arith.truncf %0 : vector<8x16xf32> to vector<8x16xbf16>
    %c0_1 = arith.constant 0 : index
    %c0_2 = arith.constant 0 : index
    %2 = vector.load %arg2[%c0_1, %c0_2] : memref<16x32xbf16, #tpu.memory_space<vmem>>, vector<16x32xbf16>
    %cst = arith.constant dense<0.000000e+00> : vector<8x32xf32>
    %3 = tpu.matmul %1, %2, %cst {dimension_numbers = #tpu.dot_dimension_numbers<[1], [0], [0], [1], [0, 0, 1, 1], [], []>} : vector<8x16xbf16>, vector<16x32xbf16>, vector<8x32xf32> -> vector<8x32xf32>
    %c0_3 = arith.constant 0 : index
    %c0_4 = arith.constant 0 : index
    %4 = vector.load %arg3[%c0_3, %c0_4] : memref<8x32xf32, #tpu.memory_space<vmem>>, vector<8x32xf32>
    %5 = arith.addf %3, %4 : vector<8x32xf32>
    %c0_5 = arith.constant 0 : index
    %c0_6 = arith.constant 0 : index
    %c0_7 = arith.constant 0 : index
    %6 = vector.load %arg10[%c0_5, %c0_6, %c0_7] : memref<2x6x32xf32, #tpu.memory_space<vmem>>, vector<1x6x32xf32>
    %7 = vector.shape_cast %6 : vector<1x6x32xf32> to vector<6x32xf32>
    %8 = vector.extract_strided_slice %7 {offsets = [0, 0], sizes = [1, 32], strides = [1, 1]} : vector<6x32xf32> to vector<1x32xf32>
    %9 = vector.extract_strided_slice %7 {offsets = [1, 0], sizes = [1, 32], strides = [1, 1]} : vector<6x32xf32> to vector<1x32xf32>
    %10 = vector.extract_strided_slice %7 {offsets = [2, 0], sizes = [1, 32], strides = [1, 1]} : vector<6x32xf32> to vector<1x32xf32>
    %11 = vector.extract_strided_slice %7 {offsets = [3, 0], sizes = [1, 32], strides = [1, 1]} : vector<6x32xf32> to vector<1x32xf32>
    %12 = vector.extract_strided_slice %7 {offsets = [4, 0], sizes = [1, 32], strides = [1, 1]} : vector<6x32xf32> to vector<1x32xf32>
    %13 = vector.extract_strided_slice %7 {offsets = [5, 0], sizes = [1, 32], strides = [1, 1]} : vector<6x32xf32> to vector<1x32xf32>
    %14 = arith.truncf %5 : vector<8x32xf32> to vector<8x32xbf16>
    %c0_8 = arith.constant 0 : index
    %c0_9 = arith.constant 0 : index
    %c0_10 = arith.constant 0 : index
    %15 = vector.load %arg4[%c0_8, %c0_9, %c0_10] : memref<2x32x96xbf16, #tpu.memory_space<vmem>>, vector<1x32x96xbf16>
    %16 = vector.shape_cast %15 : vector<1x32x96xbf16> to vector<32x96xbf16>
    %cst_11 = arith.constant dense<0.000000e+00> : vector<8x96xf32>
    %17 = tpu.matmul %14, %16, %cst_11 {dimension_numbers = #tpu.dot_dimension_numbers<[1], [0], [0], [1], [0, 0, 1, 1], [], []>} : vector<8x32xbf16>, vector<32x96xbf16>, vector<8x96xf32> -> vector<8x96xf32>
    %c0_12 = arith.constant 0 : index
    %c0_13 = arith.constant 0 : index
    %c0_14 = arith.constant 0 : index
    %18 = vector.load %arg5[%c0_12, %c0_13, %c0_14] : memref<2x1x96xf32, #tpu.memory_space<vmem>>, vector<1x1x96xf32>
    %19 = vector.shape_cast %18 : vector<1x1x96xf32> to vector<1x96xf32>
    %20 = vector.broadcast %19 : vector<1x96xf32> to vector<8x96xf32>
    %21 = arith.addf %17, %20 : vector<8x96xf32>
    %22 = vector.extract_strided_slice %21 {offsets = [0, 0], sizes = [8, 32], strides = [1, 1]} : vector<8x96xf32> to vector<8x32xf32>
    %23 = vector.extract_strided_slice %22 {offsets = [0, 0], sizes = [8, 8], strides = [1, 1]} : vector<8x32xf32> to vector<8x8xf32>
    %24 = vector.extract_strided_slice %22 {offsets = [0, 8], sizes = [8, 8], strides = [1, 1]} : vector<8x32xf32> to vector<8x8xf32>
    %25 = vector.extract_strided_slice %22 {offsets = [0, 16], sizes = [8, 8], strides = [1, 1]} : vector<8x32xf32> to vector<8x8xf32>
    %26 = vector.extract_strided_slice %22 {offsets = [0, 24], sizes = [8, 8], strides = [1, 1]} : vector<8x32xf32> to vector<8x8xf32>
    %27 = vector.shape_cast %23 : vector<8x8xf32> to vector<1x8x8xf32>
    %28 = vector.shape_cast %24 : vector<8x8xf32> to vector<1x8x8xf32>
    %29 = vector.shape_cast %25 : vector<8x8xf32> to vector<1x8x8xf32>
    %30 = vector.shape_cast %26 : vector<8x8xf32> to vector<1x8x8xf32>
    %31 = tpu.concatenate %27, %28, %29, %30 in 0 : vector<1x8x8xf32>, vector<1x8x8xf32>, vector<1x8x8xf32>, vector<1x8x8xf32> -> vector<4x8x8xf32>
    %32 = arith.truncf %31 : vector<4x8x8xf32> to vector<4x8x8xbf16>
    %33 = vector.extract_strided_slice %21 {offsets = [0, 32], sizes = [8, 32], strides = [1, 1]} : vector<8x96xf32> to vector<8x32xf32>
    %34 = vector.extract_strided_slice %33 {offsets = [0, 0], sizes = [8, 8], strides = [1, 1]} : vector<8x32xf32> to vector<8x8xf32>
    %35 = vector.extract_strided_slice %33 {offsets = [0, 8], sizes = [8, 8], strides = [1, 1]} : vector<8x32xf32> to vector<8x8xf32>
    %36 = vector.extract_strided_slice %33 {offsets = [0, 16], sizes = [8, 8], strides = [1, 1]} : vector<8x32xf32> to vector<8x8xf32>
    %37 = vector.extract_strided_slice %33 {offsets = [0, 24], sizes = [8, 8], strides = [1, 1]} : vector<8x32xf32> to vector<8x8xf32>
    %38 = vector.shape_cast %34 : vector<8x8xf32> to vector<1x8x8xf32>
    %39 = vector.shape_cast %35 : vector<8x8xf32> to vector<1x8x8xf32>
    %40 = vector.shape_cast %36 : vector<8x8xf32> to vector<1x8x8xf32>
    %41 = vector.shape_cast %37 : vector<8x8xf32> to vector<1x8x8xf32>
    %42 = tpu.concatenate %38, %39, %40, %41 in 0 : vector<1x8x8xf32>, vector<1x8x8xf32>, vector<1x8x8xf32>, vector<1x8x8xf32> -> vector<4x8x8xf32>
    %43 = arith.truncf %42 : vector<4x8x8xf32> to vector<4x8x8xbf16>
    %44 = vector.extract_strided_slice %21 {offsets = [0, 64], sizes = [8, 32], strides = [1, 1]} : vector<8x96xf32> to vector<8x32xf32>
    %45 = vector.extract_strided_slice %44 {offsets = [0, 0], sizes = [8, 8], strides = [1, 1]} : vector<8x32xf32> to vector<8x8xf32>
    %46 = vector.extract_strided_slice %44 {offsets = [0, 8], sizes = [8, 8], strides = [1, 1]} : vector<8x32xf32> to vector<8x8xf32>
    %47 = vector.extract_strided_slice %44 {offsets = [0, 16], sizes = [8, 8], strides = [1, 1]} : vector<8x32xf32> to vector<8x8xf32>
    %48 = vector.extract_strided_slice %44 {offsets = [0, 24], sizes = [8, 8], strides = [1, 1]} : vector<8x32xf32> to vector<8x8xf32>
    %49 = vector.shape_cast %45 : vector<8x8xf32> to vector<1x8x8xf32>
    %50 = vector.shape_cast %46 : vector<8x8xf32> to vector<1x8x8xf32>
    %51 = vector.shape_cast %47 : vector<8x8xf32> to vector<1x8x8xf32>
    %52 = vector.shape_cast %48 : vector<8x8xf32> to vector<1x8x8xf32>
    %53 = tpu.concatenate %49, %50, %51, %52 in 0 : vector<1x8x8xf32>, vector<1x8x8xf32>, vector<1x8x8xf32>, vector<1x8x8xf32> -> vector<4x8x8xf32>
    %54 = arith.truncf %53 : vector<4x8x8xf32> to vector<4x8x8xbf16>
    "tpu.trace_start"() <{level = 10 : i32, message = "hqd,hkd->hqk"}> : () -> ()
    %cst_15 = arith.constant dense<0.000000e+00> : vector<4x8x8xf32>
    %55 = tpu.matmul %32, %43, %cst_15 {dimension_numbers = #tpu.dot_dimension_numbers<[2], [2], [1], [1], [0, 0, 0, 1, 1, 1], [0], [0]>} : vector<4x8x8xbf16>, vector<4x8x8xbf16>, vector<4x8x8xf32> -> vector<4x8x8xf32>
    "tpu.trace_stop"() : () -> ()
    %cst_16 = arith.constant dense<0xFF800000> : vector<4x8xf32>
    %56 = vector.multi_reduction <maximumf>, %55, %cst_16 [2] : vector<4x8x8xf32> to vector<4x8xf32>
    %57 = vector.shape_cast %56 : vector<4x8xf32> to vector<4x8x1xf32>
    %58 = vector.broadcast %57 : vector<4x8x1xf32> to vector<4x8x8xf32>
    %59 = arith.subf %55, %58 : vector<4x8x8xf32>
    %60 = math.exp %59 : vector<4x8x8xf32>
    %cst_17 = arith.constant dense<0.000000e+00> : vector<4x8xf32>
    %61 = vector.multi_reduction <add>, %60, %cst_17 [2] : vector<4x8x8xf32> to vector<4x8xf32>
    %62 = vector.shape_cast %61 : vector<4x8xf32> to vector<4x8x1xf32>
    %63 = tpu.reciprocal %62 {approx = true} : vector<4x8x1xf32> -> vector<4x8x1xf32>
    %64 = vector.broadcast %63 : vector<4x8x1xf32> to vector<4x8x8xf32>
    %65 = arith.mulf %60, %64 : vector<4x8x8xf32>
    %66 = arith.truncf %65 : vector<4x8x8xf32> to vector<4x8x8xbf16>
    "tpu.trace_start"() <{level = 10 : i32, message = "hqk,hkd->hqd"}> : () -> ()
    %cst_18 = arith.constant dense<0.000000e+00> : vector<4x8x8xf32>
    %67 = tpu.matmul %66, %54, %cst_18 {dimension_numbers = #tpu.dot_dimension_numbers<[2], [1], [1], [2], [0, 0, 0, 1, 1, 2], [0], [0]>} : vector<4x8x8xbf16>, vector<4x8x8xbf16>, vector<4x8x8xf32> -> vector<4x8x8xf32>
    "tpu.trace_stop"() : () -> ()
    %68 = vector.extract_strided_slice %67 {offsets = [0, 0, 0], sizes = [1, 8, 8], strides = [1, 1, 1]} : vector<4x8x8xf32> to vector<1x8x8xf32>
    %69 = vector.shape_cast %68 : vector<1x8x8xf32> to vector<8x8xf32>
    %70 = vector.extract_strided_slice %67 {offsets = [1, 0, 0], sizes = [1, 8, 8], strides = [1, 1, 1]} : vector<4x8x8xf32> to vector<1x8x8xf32>
    %71 = vector.shape_cast %70 : vector<1x8x8xf32> to vector<8x8xf32>
    %72 = vector.extract_strided_slice %67 {offsets = [2, 0, 0], sizes = [1, 8, 8], strides = [1, 1, 1]} : vector<4x8x8xf32> to vector<1x8x8xf32>
    %73 = vector.shape_cast %72 : vector<1x8x8xf32> to vector<8x8xf32>
    %74 = vector.extract_strided_slice %67 {offsets = [3, 0, 0], sizes = [1, 8, 8], strides = [1, 1, 1]} : vector<4x8x8xf32> to vector<1x8x8xf32>
    %75 = vector.shape_cast %74 : vector<1x8x8xf32> to vector<8x8xf32>
    %76 = tpu.concatenate %69, %71, %73, %75 in 1 : vector<8x8xf32>, vector<8x8xf32>, vector<8x8xf32>, vector<8x8xf32> -> vector<8x32xf32>
    %77 = arith.truncf %76 : vector<8x32xf32> to vector<8x32xbf16>
    %c0_19 = arith.constant 0 : index
    %c0_20 = arith.constant 0 : index
    %c0_21 = arith.constant 0 : index
    %78 = vector.load %arg6[%c0_19, %c0_20, %c0_21] : memref<2x32x32xbf16, #tpu.memory_space<vmem>>, vector<1x32x32xbf16>
    %79 = vector.shape_cast %78 : vector<1x32x32xbf16> to vector<32x32xbf16>
    %cst_22 = arith.constant dense<0.000000e+00> : vector<8x32xf32>
    %80 = tpu.matmul %77, %79, %cst_22 {dimension_numbers = #tpu.dot_dimension_numbers<[1], [0], [0], [1], [0, 0, 1, 1], [], []>} : vector<8x32xbf16>, vector<32x32xbf16>, vector<8x32xf32> -> vector<8x32xf32>
    %81 = vector.broadcast %8 : vector<1x32xf32> to vector<8x32xf32>
    %82 = arith.addf %80, %81 : vector<8x32xf32>
    %83 = arith.addf %5, %82 : vector<8x32xf32>
    %cst_23 = arith.constant dense<0.000000e+00> : vector<8xf32>
    %84 = vector.multi_reduction <add>, %83, %cst_23 [1] : vector<8x32xf32> to vector<8xf32>
    %85 = vector.shape_cast %84 : vector<8xf32> to vector<8x1xf32>
    %cst_24 = arith.constant 3.200000e+01 : f32
    %86 = vector.broadcast %cst_24 : f32 to vector<8x1xf32>
    %87 = arith.divf %85, %86 : vector<8x1xf32>
    %88 = vector.broadcast %87 : vector<8x1xf32> to vector<8x32xf32>
    %89 = arith.subf %83, %88 : vector<8x32xf32>
    %90 = arith.mulf %89, %89 : vector<8x32xf32>
    %cst_25 = arith.constant dense<0.000000e+00> : vector<8xf32>
    %91 = vector.multi_reduction <add>, %90, %cst_25 [1] : vector<8x32xf32> to vector<8xf32>
    %92 = vector.shape_cast %91 : vector<8xf32> to vector<8x1xf32>
    %cst_26 = arith.constant 3.200000e+01 : f32
    %93 = vector.broadcast %cst_26 : f32 to vector<8x1xf32>
    %94 = arith.divf %92, %93 : vector<8x1xf32>
    %95 = vector.broadcast %87 : vector<8x1xf32> to vector<8x32xf32>
    %96 = arith.subf %83, %95 : vector<8x32xf32>
    %cst_27 = arith.constant 9.99999974E-6 : f32
    %97 = vector.broadcast %cst_27 : f32 to vector<8x1xf32>
    %98 = arith.addf %94, %97 : vector<8x1xf32>
    %99 = math.rsqrt %98 : vector<8x1xf32>
    %100 = vector.broadcast %99 : vector<8x1xf32> to vector<8x32xf32>
    %101 = arith.mulf %96, %100 : vector<8x32xf32>
    %102 = vector.broadcast %9 : vector<1x32xf32> to vector<8x32xf32>
    %103 = arith.mulf %101, %102 : vector<8x32xf32>
    %104 = vector.broadcast %10 : vector<1x32xf32> to vector<8x32xf32>
    %105 = arith.addf %103, %104 : vector<8x32xf32>
    %106 = arith.truncf %105 : vector<8x32xf32> to vector<8x32xbf16>
    %c0_28 = arith.constant 0 : index
    %c0_29 = arith.constant 0 : index
    %c0_30 = arith.constant 0 : index
    %107 = vector.load %arg7[%c0_28, %c0_29, %c0_30] : memref<2x32x2048xbf16, #tpu.memory_space<vmem>>, vector<1x32x2048xbf16>
    %108 = vector.shape_cast %107 : vector<1x32x2048xbf16> to vector<32x2048xbf16>
    %cst_31 = arith.constant dense<0.000000e+00> : vector<8x2048xf32>
    %109 = tpu.matmul %106, %108, %cst_31 {dimension_numbers = #tpu.dot_dimension_numbers<[1], [0], [0], [1], [0, 0, 1, 1], [], []>} : vector<8x32xbf16>, vector<32x2048xbf16>, vector<8x2048xf32> -> vector<8x2048xf32>
    %c0_32 = arith.constant 0 : index
    %c0_33 = arith.constant 0 : index
    %c0_34 = arith.constant 0 : index
    %110 = vector.load %arg8[%c0_32, %c0_33, %c0_34] : memref<2x1x2048xf32, #tpu.memory_space<vmem>>, vector<1x1x2048xf32>
    %111 = vector.shape_cast %110 : vector<1x1x2048xf32> to vector<1x2048xf32>
    %112 = vector.broadcast %111 : vector<1x2048xf32> to vector<8x2048xf32>
    %113 = arith.addf %109, %112 : vector<8x2048xf32>
    %cst_35 = arith.constant 0.000000e+00 : f32
    %114 = vector.broadcast %cst_35 : f32 to vector<8x2048xf32>
    %115 = arith.maximumf %113, %114 : vector<8x2048xf32>
    %116 = arith.truncf %115 : vector<8x2048xf32> to vector<8x2048xbf16>
    %c0_36 = arith.constant 0 : index
    %c0_37 = arith.constant 0 : index
    %c0_38 = arith.constant 0 : index
    %117 = vector.load %arg9[%c0_36, %c0_37, %c0_38] : memref<2x2048x32xbf16, #tpu.memory_space<vmem>>, vector<1x2048x32xbf16>
    %118 = vector.shape_cast %117 : vector<1x2048x32xbf16> to vector<2048x32xbf16>
    %cst_39 = arith.constant dense<0.000000e+00> : vector<8x32xf32>
    %119 = tpu.matmul %116, %118, %cst_39 {dimension_numbers = #tpu.dot_dimension_numbers<[1], [0], [0], [1], [0, 0, 1, 1], [], []>} : vector<8x2048xbf16>, vector<2048x32xbf16>, vector<8x32xf32> -> vector<8x32xf32>
    %120 = vector.broadcast %11 : vector<1x32xf32> to vector<8x32xf32>
    %121 = arith.addf %119, %120 : vector<8x32xf32>
    %122 = arith.addf %105, %121 : vector<8x32xf32>
    %cst_40 = arith.constant dense<0.000000e+00> : vector<8xf32>
    %123 = vector.multi_reduction <add>, %122, %cst_40 [1] : vector<8x32xf32> to vector<8xf32>
    %124 = vector.shape_cast %123 : vector<8xf32> to vector<8x1xf32>
    %cst_41 = arith.constant 3.200000e+01 : f32
    %125 = vector.broadcast %cst_41 : f32 to vector<8x1xf32>
    %126 = arith.divf %124, %125 : vector<8x1xf32>
    %127 = vector.broadcast %126 : vector<8x1xf32> to vector<8x32xf32>
    %128 = arith.subf %122, %127 : vector<8x32xf32>
    %129 = arith.mulf %128, %128 : vector<8x32xf32>
    %cst_42 = arith.constant dense<0.000000e+00> : vector<8xf32>
    %130 = vector.multi_reduction <add>, %129, %cst_42 [1] : vector<8x32xf32> to vector<8xf32>
    %131 = vector.shape_cast %130 : vector<8xf32> to vector<8x1xf32>
    %cst_43 = arith.constant 3.200000e+01 : f32
    %132 = vector.broadcast %cst_43 : f32 to vector<8x1xf32>
    %133 = arith.divf %131, %132 : vector<8x1xf32>
    %134 = vector.broadcast %126 : vector<8x1xf32> to vector<8x32xf32>
    %135 = arith.subf %122, %134 : vector<8x32xf32>
    %cst_44 = arith.constant 9.99999974E-6 : f32
    %136 = vector.broadcast %cst_44 : f32 to vector<8x1xf32>
    %137 = arith.addf %133, %136 : vector<8x1xf32>
    %138 = math.rsqrt %137 : vector<8x1xf32>
    %139 = vector.broadcast %138 : vector<8x1xf32> to vector<8x32xf32>
    %140 = arith.mulf %135, %139 : vector<8x32xf32>
    %141 = vector.broadcast %12 : vector<1x32xf32> to vector<8x32xf32>
    %142 = arith.mulf %140, %141 : vector<8x32xf32>
    %143 = vector.broadcast %13 : vector<1x32xf32> to vector<8x32xf32>
    %144 = arith.addf %142, %143 : vector<8x32xf32>
    %c1 = arith.constant 1 : index
    %c0_45 = arith.constant 0 : index
    %c0_46 = arith.constant 0 : index
    %145 = vector.load %arg10[%c1, %c0_45, %c0_46] : memref<2x6x32xf32, #tpu.memory_space<vmem>>, vector<1x6x32xf32>
    %146 = vector.shape_cast %145 : vector<1x6x32xf32> to vector<6x32xf32>
    %147 = vector.extract_strided_slice %146 {offsets = [0, 0], sizes = [1, 32], strides = [1, 1]} : vector<6x32xf32> to vector<1x32xf32>
    %148 = vector.extract_strided_slice %146 {offsets = [1, 0], sizes = [1, 32], strides = [1, 1]} : vector<6x32xf32> to vector<1x32xf32>
    %149 = vector.extract_strided_slice %146 {offsets = [2, 0], sizes = [1, 32], strides = [1, 1]} : vector<6x32xf32> to vector<1x32xf32>
    %150 = vector.extract_strided_slice %146 {offsets = [3, 0], sizes = [1, 32], strides = [1, 1]} : vector<6x32xf32> to vector<1x32xf32>
    %151 = vector.extract_strided_slice %146 {offsets = [4, 0], sizes = [1, 32], strides = [1, 1]} : vector<6x32xf32> to vector<1x32xf32>
    %152 = vector.extract_strided_slice %146 {offsets = [5, 0], sizes = [1, 32], strides = [1, 1]} : vector<6x32xf32> to vector<1x32xf32>
    %153 = arith.truncf %144 : vector<8x32xf32> to vector<8x32xbf16>
    %c1_47 = arith.constant 1 : index
    %c0_48 = arith.constant 0 : index
    %c0_49 = arith.constant 0 : index
    %154 = vector.load %arg4[%c1_47, %c0_48, %c0_49] : memref<2x32x96xbf16, #tpu.memory_space<vmem>>, vector<1x32x96xbf16>
    %155 = vector.shape_cast %154 : vector<1x32x96xbf16> to vector<32x96xbf16>
    %cst_50 = arith.constant dense<0.000000e+00> : vector<8x96xf32>
    %156 = tpu.matmul %153, %155, %cst_50 {dimension_numbers = #tpu.dot_dimension_numbers<[1], [0], [0], [1], [0, 0, 1, 1], [], []>} : vector<8x32xbf16>, vector<32x96xbf16>, vector<8x96xf32> -> vector<8x96xf32>
    %c1_51 = arith.constant 1 : index
    %c0_52 = arith.constant 0 : index
    %c0_53 = arith.constant 0 : index
    %157 = vector.load %arg5[%c1_51, %c0_52, %c0_53] : memref<2x1x96xf32, #tpu.memory_space<vmem>>, vector<1x1x96xf32>
    %158 = vector.shape_cast %157 : vector<1x1x96xf32> to vector<1x96xf32>
    %159 = vector.broadcast %158 : vector<1x96xf32> to vector<8x96xf32>
    %160 = arith.addf %156, %159 : vector<8x96xf32>
    %161 = vector.extract_strided_slice %160 {offsets = [0, 0], sizes = [8, 32], strides = [1, 1]} : vector<8x96xf32> to vector<8x32xf32>
    %162 = vector.extract_strided_slice %161 {offsets = [0, 0], sizes = [8, 8], strides = [1, 1]} : vector<8x32xf32> to vector<8x8xf32>
    %163 = vector.extract_strided_slice %161 {offsets = [0, 8], sizes = [8, 8], strides = [1, 1]} : vector<8x32xf32> to vector<8x8xf32>
    %164 = vector.extract_strided_slice %161 {offsets = [0, 16], sizes = [8, 8], strides = [1, 1]} : vector<8x32xf32> to vector<8x8xf32>
    %165 = vector.extract_strided_slice %161 {offsets = [0, 24], sizes = [8, 8], strides = [1, 1]} : vector<8x32xf32> to vector<8x8xf32>
    %166 = vector.shape_cast %162 : vector<8x8xf32> to vector<1x8x8xf32>
    %167 = vector.shape_cast %163 : vector<8x8xf32> to vector<1x8x8xf32>
    %168 = vector.shape_cast %164 : vector<8x8xf32> to vector<1x8x8xf32>
    %169 = vector.shape_cast %165 : vector<8x8xf32> to vector<1x8x8xf32>
    %170 = tpu.concatenate %166, %167, %168, %169 in 0 : vector<1x8x8xf32>, vector<1x8x8xf32>, vector<1x8x8xf32>, vector<1x8x8xf32> -> vector<4x8x8xf32>
    %171 = arith.truncf %170 : vector<4x8x8xf32> to vector<4x8x8xbf16>
    %172 = vector.extract_strided_slice %160 {offsets = [0, 32], sizes = [8, 32], strides = [1, 1]} : vector<8x96xf32> to vector<8x32xf32>
    %173 = vector.extract_strided_slice %172 {offsets = [0, 0], sizes = [8, 8], strides = [1, 1]} : vector<8x32xf32> to vector<8x8xf32>
    %174 = vector.extract_strided_slice %172 {offsets = [0, 8], sizes = [8, 8], strides = [1, 1]} : vector<8x32xf32> to vector<8x8xf32>
    %175 = vector.extract_strided_slice %172 {offsets = [0, 16], sizes = [8, 8], strides = [1, 1]} : vector<8x32xf32> to vector<8x8xf32>
    %176 = vector.extract_strided_slice %172 {offsets = [0, 24], sizes = [8, 8], strides = [1, 1]} : vector<8x32xf32> to vector<8x8xf32>
    %177 = vector.shape_cast %173 : vector<8x8xf32> to vector<1x8x8xf32>
    %178 = vector.shape_cast %174 : vector<8x8xf32> to vector<1x8x8xf32>
    %179 = vector.shape_cast %175 : vector<8x8xf32> to vector<1x8x8xf32>
    %180 = vector.shape_cast %176 : vector<8x8xf32> to vector<1x8x8xf32>
    %181 = tpu.concatenate %177, %178, %179, %180 in 0 : vector<1x8x8xf32>, vector<1x8x8xf32>, vector<1x8x8xf32>, vector<1x8x8xf32> -> vector<4x8x8xf32>
    %182 = arith.truncf %181 : vector<4x8x8xf32> to vector<4x8x8xbf16>
    %183 = vector.extract_strided_slice %160 {offsets = [0, 64], sizes = [8, 32], strides = [1, 1]} : vector<8x96xf32> to vector<8x32xf32>
    %184 = vector.extract_strided_slice %183 {offsets = [0, 0], sizes = [8, 8], strides = [1, 1]} : vector<8x32xf32> to vector<8x8xf32>
    %185 = vector.extract_strided_slice %183 {offsets = [0, 8], sizes = [8, 8], strides = [1, 1]} : vector<8x32xf32> to vector<8x8xf32>
    %186 = vector.extract_strided_slice %183 {offsets = [0, 16], sizes = [8, 8], strides = [1, 1]} : vector<8x32xf32> to vector<8x8xf32>
    %187 = vector.extract_strided_slice %183 {offsets = [0, 24], sizes = [8, 8], strides = [1, 1]} : vector<8x32xf32> to vector<8x8xf32>
    %188 = vector.shape_cast %184 : vector<8x8xf32> to vector<1x8x8xf32>
    %189 = vector.shape_cast %185 : vector<8x8xf32> to vector<1x8x8xf32>
    %190 = vector.shape_cast %186 : vector<8x8xf32> to vector<1x8x8xf32>
    %191 = vector.shape_cast %187 : vector<8x8xf32> to vector<1x8x8xf32>
    %192 = tpu.concatenate %188, %189, %190, %191 in 0 : vector<1x8x8xf32>, vector<1x8x8xf32>, vector<1x8x8xf32>, vector<1x8x8xf32> -> vector<4x8x8xf32>
    %193 = arith.truncf %192 : vector<4x8x8xf32> to vector<4x8x8xbf16>
    "tpu.trace_start"() <{level = 10 : i32, message = "hqd,hkd->hqk"}> : () -> ()
    %cst_54 = arith.constant dense<0.000000e+00> : vector<4x8x8xf32>
    %194 = tpu.matmul %171, %182, %cst_54 {dimension_numbers = #tpu.dot_dimension_numbers<[2], [2], [1], [1], [0, 0, 0, 1, 1, 1], [0], [0]>} : vector<4x8x8xbf16>, vector<4x8x8xbf16>, vector<4x8x8xf32> -> vector<4x8x8xf32>
    "tpu.trace_stop"() : () -> ()
    %cst_55 = arith.constant dense<0xFF800000> : vector<4x8xf32>
    %195 = vector.multi_reduction <maximumf>, %194, %cst_55 [2] : vector<4x8x8xf32> to vector<4x8xf32>
    %196 = vector.shape_cast %195 : vector<4x8xf32> to vector<4x8x1xf32>
    %197 = vector.broadcast %196 : vector<4x8x1xf32> to vector<4x8x8xf32>
    %198 = arith.subf %194, %197 : vector<4x8x8xf32>
    %199 = math.exp %198 : vector<4x8x8xf32>
    %cst_56 = arith.constant dense<0.000000e+00> : vector<4x8xf32>
    %200 = vector.multi_reduction <add>, %199, %cst_56 [2] : vector<4x8x8xf32> to vector<4x8xf32>
    %201 = vector.shape_cast %200 : vector<4x8xf32> to vector<4x8x1xf32>
    %202 = tpu.reciprocal %201 {approx = true} : vector<4x8x1xf32> -> vector<4x8x1xf32>
    %203 = vector.broadcast %202 : vector<4x8x1xf32> to vector<4x8x8xf32>
    %204 = arith.mulf %199, %203 : vector<4x8x8xf32>
    %205 = arith.truncf %204 : vector<4x8x8xf32> to vector<4x8x8xbf16>
    "tpu.trace_start"() <{level = 10 : i32, message = "hqk,hkd->hqd"}> : () -> ()
    %cst_57 = arith.constant dense<0.000000e+00> : vector<4x8x8xf32>
    %206 = tpu.matmul %205, %193, %cst_57 {dimension_numbers = #tpu.dot_dimension_numbers<[2], [1], [1], [2], [0, 0, 0, 1, 1, 2], [0], [0]>} : vector<4x8x8xbf16>, vector<4x8x8xbf16>, vector<4x8x8xf32> -> vector<4x8x8xf32>
    "tpu.trace_stop"() : () -> ()
    %207 = vector.extract_strided_slice %206 {offsets = [0, 0, 0], sizes = [1, 8, 8], strides = [1, 1, 1]} : vector<4x8x8xf32> to vector<1x8x8xf32>
    %208 = vector.shape_cast %207 : vector<1x8x8xf32> to vector<8x8xf32>
    %209 = vector.extract_strided_slice %206 {offsets = [1, 0, 0], sizes = [1, 8, 8], strides = [1, 1, 1]} : vector<4x8x8xf32> to vector<1x8x8xf32>
    %210 = vector.shape_cast %209 : vector<1x8x8xf32> to vector<8x8xf32>
    %211 = vector.extract_strided_slice %206 {offsets = [2, 0, 0], sizes = [1, 8, 8], strides = [1, 1, 1]} : vector<4x8x8xf32> to vector<1x8x8xf32>
    %212 = vector.shape_cast %211 : vector<1x8x8xf32> to vector<8x8xf32>
    %213 = vector.extract_strided_slice %206 {offsets = [3, 0, 0], sizes = [1, 8, 8], strides = [1, 1, 1]} : vector<4x8x8xf32> to vector<1x8x8xf32>
    %214 = vector.shape_cast %213 : vector<1x8x8xf32> to vector<8x8xf32>
    %215 = tpu.concatenate %208, %210, %212, %214 in 1 : vector<8x8xf32>, vector<8x8xf32>, vector<8x8xf32>, vector<8x8xf32> -> vector<8x32xf32>
    %216 = arith.truncf %215 : vector<8x32xf32> to vector<8x32xbf16>
    %c1_58 = arith.constant 1 : index
    %c0_59 = arith.constant 0 : index
    %c0_60 = arith.constant 0 : index
    %217 = vector.load %arg6[%c1_58, %c0_59, %c0_60] : memref<2x32x32xbf16, #tpu.memory_space<vmem>>, vector<1x32x32xbf16>
    %218 = vector.shape_cast %217 : vector<1x32x32xbf16> to vector<32x32xbf16>
    %cst_61 = arith.constant dense<0.000000e+00> : vector<8x32xf32>
    %219 = tpu.matmul %216, %218, %cst_61 {dimension_numbers = #tpu.dot_dimension_numbers<[1], [0], [0], [1], [0, 0, 1, 1], [], []>} : vector<8x32xbf16>, vector<32x32xbf16>, vector<8x32xf32> -> vector<8x32xf32>
    %220 = vector.broadcast %147 : vector<1x32xf32> to vector<8x32xf32>
    %221 = arith.addf %219, %220 : vector<8x32xf32>
    %222 = arith.addf %144, %221 : vector<8x32xf32>
    %cst_62 = arith.constant dense<0.000000e+00> : vector<8xf32>
    %223 = vector.multi_reduction <add>, %222, %cst_62 [1] : vector<8x32xf32> to vector<8xf32>
    %224 = vector.shape_cast %223 : vector<8xf32> to vector<8x1xf32>
    %cst_63 = arith.constant 3.200000e+01 : f32
    %225 = vector.broadcast %cst_63 : f32 to vector<8x1xf32>
    %226 = arith.divf %224, %225 : vector<8x1xf32>
    %227 = vector.broadcast %226 : vector<8x1xf32> to vector<8x32xf32>
    %228 = arith.subf %222, %227 : vector<8x32xf32>
    %229 = arith.mulf %228, %228 : vector<8x32xf32>
    %cst_64 = arith.constant dense<0.000000e+00> : vector<8xf32>
    %230 = vector.multi_reduction <add>, %229, %cst_64 [1] : vector<8x32xf32> to vector<8xf32>
    %231 = vector.shape_cast %230 : vector<8xf32> to vector<8x1xf32>
    %cst_65 = arith.constant 3.200000e+01 : f32
    %232 = vector.broadcast %cst_65 : f32 to vector<8x1xf32>
    %233 = arith.divf %231, %232 : vector<8x1xf32>
    %234 = vector.broadcast %226 : vector<8x1xf32> to vector<8x32xf32>
    %235 = arith.subf %222, %234 : vector<8x32xf32>
    %cst_66 = arith.constant 9.99999974E-6 : f32
    %236 = vector.broadcast %cst_66 : f32 to vector<8x1xf32>
    %237 = arith.addf %233, %236 : vector<8x1xf32>
    %238 = math.rsqrt %237 : vector<8x1xf32>
    %239 = vector.broadcast %238 : vector<8x1xf32> to vector<8x32xf32>
    %240 = arith.mulf %235, %239 : vector<8x32xf32>
    %241 = vector.broadcast %148 : vector<1x32xf32> to vector<8x32xf32>
    %242 = arith.mulf %240, %241 : vector<8x32xf32>
    %243 = vector.broadcast %149 : vector<1x32xf32> to vector<8x32xf32>
    %244 = arith.addf %242, %243 : vector<8x32xf32>
    %245 = arith.truncf %244 : vector<8x32xf32> to vector<8x32xbf16>
    %c1_67 = arith.constant 1 : index
    %c0_68 = arith.constant 0 : index
    %c0_69 = arith.constant 0 : index
    %246 = vector.load %arg7[%c1_67, %c0_68, %c0_69] : memref<2x32x2048xbf16, #tpu.memory_space<vmem>>, vector<1x32x2048xbf16>
    %247 = vector.shape_cast %246 : vector<1x32x2048xbf16> to vector<32x2048xbf16>
    %cst_70 = arith.constant dense<0.000000e+00> : vector<8x2048xf32>
    %248 = tpu.matmul %245, %247, %cst_70 {dimension_numbers = #tpu.dot_dimension_numbers<[1], [0], [0], [1], [0, 0, 1, 1], [], []>} : vector<8x32xbf16>, vector<32x2048xbf16>, vector<8x2048xf32> -> vector<8x2048xf32>
    %c1_71 = arith.constant 1 : index
    %c0_72 = arith.constant 0 : index
    %c0_73 = arith.constant 0 : index
    %249 = vector.load %arg8[%c1_71, %c0_72, %c0_73] : memref<2x1x2048xf32, #tpu.memory_space<vmem>>, vector<1x1x2048xf32>
    %250 = vector.shape_cast %249 : vector<1x1x2048xf32> to vector<1x2048xf32>
    %251 = vector.broadcast %250 : vector<1x2048xf32> to vector<8x2048xf32>
    %252 = arith.addf %248, %251 : vector<8x2048xf32>
    %cst_74 = arith.constant 0.000000e+00 : f32
    %253 = vector.broadcast %cst_74 : f32 to vector<8x2048xf32>
    %254 = arith.maximumf %252, %253 : vector<8x2048xf32>
    %255 = arith.truncf %254 : vector<8x2048xf32> to vector<8x2048xbf16>
    %c1_75 = arith.constant 1 : index
    %c0_76 = arith.constant 0 : index
    %c0_77 = arith.constant 0 : index
    %256 = vector.load %arg9[%c1_75, %c0_76, %c0_77] : memref<2x2048x32xbf16, #tpu.memory_space<vmem>>, vector<1x2048x32xbf16>
    %257 = vector.shape_cast %256 : vector<1x2048x32xbf16> to vector<2048x32xbf16>
    %cst_78 = arith.constant dense<0.000000e+00> : vector<8x32xf32>
    %258 = tpu.matmul %255, %257, %cst_78 {dimension_numbers = #tpu.dot_dimension_numbers<[1], [0], [0], [1], [0, 0, 1, 1], [], []>} : vector<8x2048xbf16>, vector<2048x32xbf16>, vector<8x32xf32> -> vector<8x32xf32>
    %259 = vector.broadcast %150 : vector<1x32xf32> to vector<8x32xf32>
    %260 = arith.addf %258, %259 : vector<8x32xf32>
    %261 = arith.addf %244, %260 : vector<8x32xf32>
    %cst_79 = arith.constant dense<0.000000e+00> : vector<8xf32>
    %262 = vector.multi_reduction <add>, %261, %cst_79 [1] : vector<8x32xf32> to vector<8xf32>
    %263 = vector.shape_cast %262 : vector<8xf32> to vector<8x1xf32>
    %cst_80 = arith.constant 3.200000e+01 : f32
    %264 = vector.broadcast %cst_80 : f32 to vector<8x1xf32>
    %265 = arith.divf %263, %264 : vector<8x1xf32>
    %266 = vector.broadcast %265 : vector<8x1xf32> to vector<8x32xf32>
    %267 = arith.subf %261, %266 : vector<8x32xf32>
    %268 = arith.mulf %267, %267 : vector<8x32xf32>
    %cst_81 = arith.constant dense<0.000000e+00> : vector<8xf32>
    %269 = vector.multi_reduction <add>, %268, %cst_81 [1] : vector<8x32xf32> to vector<8xf32>
    %270 = vector.shape_cast %269 : vector<8xf32> to vector<8x1xf32>
    %cst_82 = arith.constant 3.200000e+01 : f32
    %271 = vector.broadcast %cst_82 : f32 to vector<8x1xf32>
    %272 = arith.divf %270, %271 : vector<8x1xf32>
    %273 = vector.broadcast %265 : vector<8x1xf32> to vector<8x32xf32>
    %274 = arith.subf %261, %273 : vector<8x32xf32>
    %cst_83 = arith.constant 9.99999974E-6 : f32
    %275 = vector.broadcast %cst_83 : f32 to vector<8x1xf32>
    %276 = arith.addf %272, %275 : vector<8x1xf32>
    %277 = math.rsqrt %276 : vector<8x1xf32>
    %278 = vector.broadcast %277 : vector<8x1xf32> to vector<8x32xf32>
    %279 = arith.mulf %274, %278 : vector<8x32xf32>
    %280 = vector.broadcast %151 : vector<1x32xf32> to vector<8x32xf32>
    %281 = arith.mulf %279, %280 : vector<8x32xf32>
    %282 = vector.broadcast %152 : vector<1x32xf32> to vector<8x32xf32>
    %283 = arith.addf %281, %282 : vector<8x32xf32>
    %284 = arith.truncf %283 : vector<8x32xf32> to vector<8x32xbf16>
    %c0_84 = arith.constant 0 : index
    %c0_85 = arith.constant 0 : index
    %285 = vector.load %arg11[%c0_84, %c0_85] : memref<32x16xbf16, #tpu.memory_space<vmem>>, vector<32x16xbf16>
    %cst_86 = arith.constant dense<0.000000e+00> : vector<8x16xf32>
    %286 = tpu.matmul %284, %285, %cst_86 {dimension_numbers = #tpu.dot_dimension_numbers<[1], [0], [0], [1], [0, 0, 1, 1], [], []>} : vector<8x32xbf16>, vector<32x16xbf16>, vector<8x16xf32> -> vector<8x16xf32>
    %c0_87 = arith.constant 0 : index
    %c0_88 = arith.constant 0 : index
    %287 = vector.load %arg12[%c0_87, %c0_88] : memref<1x16xf32, #tpu.memory_space<vmem>>, vector<1x16xf32>
    %288 = vector.broadcast %287 : vector<1x16xf32> to vector<8x16xf32>
    %289 = arith.addf %286, %288 : vector<8x16xf32>
    %c0_89 = arith.constant 0 : index
    %c0_90 = arith.constant 0 : index
    %290 = vector.load %arg13[%c0_89, %c0_90] : memref<8x16xf32, #tpu.memory_space<vmem>>, vector<8x16xf32>
    tpu.vector_store %arg13[%c0_89, %c0_90], %289 {strides = array<i32>} : memref<8x16xf32, #tpu.memory_space<vmem>>, vector<8x16xf32>,
    return
  }
  func.func @transform_0(%arg0: i32) -> (i32, i32) {
    %c0_i32 = arith.constant 0 : i32
    %c0_i32_0 = arith.constant 0 : i32
    return %arg0, %c0_i32 : i32, i32
  }
  func.func @transform_1(%arg0: i32) -> (i32, i32) {
    %c0_i32 = arith.constant 0 : i32
    %c0_i32_0 = arith.constant 0 : i32
    %c0_i32_1 = arith.constant 0 : i32
    return %c0_i32, %c0_i32_0 : i32, i32
  }
  func.func @transform_2(%arg0: i32) -> (i32, i32) {
    %c0_i32 = arith.constant 0 : i32
    %c0_i32_0 = arith.constant 0 : i32
    %c0_i32_1 = arith.constant 0 : i32
    return %c0_i32, %c0_i32_0 : i32, i32
  }
  func.func @transform_3(%arg0: i32) -> (i32, i32, i32) {
    %c0_i32 = arith.constant 0 : i32
    %c0_i32_0 = arith.constant 0 : i32
    %c0_i32_1 = arith.constant 0 : i32
    %c0_i32_2 = arith.constant 0 : i32
    return %c0_i32, %c0_i32_0, %c0_i32_1 : i32, i32, i32
  }
  func.func @transform_4(%arg0: i32) -> (i32, i32, i32) {
    %c0_i32 = arith.constant 0 : i32
    %c0_i32_0 = arith.constant 0 : i32
    %c0_i32_1 = arith.constant 0 : i32
    %c0_i32_2 = arith.constant 0 : i32
    return %c0_i32, %c0_i32_0, %c0_i32_1 : i32, i32, i32
  }
  func.func @transform_5(%arg0: i32) -> (i32, i32, i32) {
    %c0_i32 = arith.constant 0 : i32
    %c0_i32_0 = arith.constant 0 : i32
    %c0_i32_1 = arith.constant 0 : i32
    %c0_i32_2 = arith.constant 0 : i32
    return %c0_i32, %c0_i32_0, %c0_i32_1 : i32, i32, i32
  }
  func.func @transform_6(%arg0: i32) -> (i32, i32, i32) {
    %c0_i32 = arith.constant 0 : i32
    %c0_i32_0 = arith.constant 0 : i32
    %c0_i32_1 = arith.constant 0 : i32
    %c0_i32_2 = arith.constant 0 : i32
    return %c0_i32, %c0_i32_0, %c0_i32_1 : i32, i32, i32
  }
  func.func @transform_7(%arg0: i32) -> (i32, i32, i32) {
    %c0_i32 = arith.constant 0 : i32
    %c0_i32_0 = arith.constant 0 : i32
    %c0_i32_1 = arith.constant 0 : i32
    %c0_i32_2 = arith.constant 0 : i32
    return %c0_i32, %c0_i32_0, %c0_i32_1 : i32, i32, i32
  }
  func.func @transform_8(%arg0: i32) -> (i32, i32, i32) {
    %c0_i32 = arith.constant 0 : i32
    %c0_i32_0 = arith.constant 0 : i32
    %c0_i32_1 = arith.constant 0 : i32
    %c0_i32_2 = arith.constant 0 : i32
    return %c0_i32, %c0_i32_0, %c0_i32_1 : i32, i32, i32
  }
  func.func @transform_9(%arg0: i32) -> (i32, i32, i32) {
    %c0_i32 = arith.constant 0 : i32
    %c0_i32_0 = arith.constant 0 : i32
    %c0_i32_1 = arith.constant 0 : i32
    %c0_i32_2 = arith.constant 0 : i32
    return %c0_i32, %c0_i32_0, %c0_i32_1 : i32, i32, i32
  }
  func.func @transform_10(%arg0: i32) -> (i32, i32) {
    %c0_i32 = arith.constant 0 : i32
    %c0_i32_0 = arith.constant 0 : i32
    %c0_i32_1 = arith.constant 0 : i32
    return %c0_i32, %c0_i32_0 : i32, i32
  }
  func.func @transform_11(%arg0: i32) -> (i32, i32) {
    %c0_i32 = arith.constant 0 : i32
    %c0_i32_0 = arith.constant 0 : i32
    %c0_i32_1 = arith.constant 0 : i32
    return %c0_i32, %c0_i32_0 : i32, i32
  }
  func.func @transform_12(%arg0: i32) -> (i32, i32) {
    %c0_i32 = arith.constant 0 : i32
    %c0_i32_0 = arith.constant 0 : i32
    return %arg0, %c0_i32 : i32, i32
  }
}

</mosaic_0001>

<bundles_post_ra>
// kernel: tpu_custom_call.1
= control target key start
LH: loop header
LB: loop body
LE: loop exit
PB: predicated region body
PF: predicated region fallthrough
CT: control target
= control target key end

     0   :  { %s8576_s0 = inlined_call_operand.vmem [shape: f32[16,16], index: 0, kind: input, shape index: {}]   ;;  %s8577_s1 = inlined_call_operand.vmem [shape: bf16[16,32], index: 1, kind: input, shape index: {}]   ;;  %s8578_s2 = inlined_call_operand.vmem [shape: f32[16,32], index: 2, kind: input, shape index: {}]   ;;  %s8579_s3 = inlined_call_operand.vmem [shape: bf16[2,32,96], index: 3, kind: input, shape index: {}]   ;;  %s8580_s4 = inlined_call_operand.vmem [shape: f32[2,1,96], index: 4, kind: input, shape index: {}]   ;;  %s8581_s5 = inlined_call_operand.vmem [shape: bf16[2,32,32], index: 5, kind: input, shape index: {}]   ;;  %s8582_s6 = inlined_call_operand.vmem [shape: bf16[2,32,2048], index: 6, kind: input, shape index: {}]   ;;  %s8583_s7 = inlined_call_operand.vmem [shape: f32[2,1,2048], index: 7, kind: input, shape index: {}]   ;;  %s8584_s8 = inlined_call_operand.vmem [shape: bf16[2,2048,32], index: 8, kind: input, shape index: {}]   ;;  %s8585_s9 = inlined_call_operand.vmem [shape: f32[2,6,32], index: 9, kind: input, shape index: {}]   ;;  %s8586_s10 = inlined_call_operand.vmem [shape: bf16[32,16], index: 10, kind: input, shape index: {}]   ;;  %s8587_s11 = inlined_call_operand.vmem [shape: f32[1,16], index: 11, kind: input, shape index: {}]   ;;  %s8588_s12 = inlined_call_operand.hbm [shape: f32[16,16], index: 12, kind: output, shape index: {}]  }
   0x1   :  { %8599 = sst [smem:[#allocation5_spill]] %s8576_s0 }
   0x2   :  { %8600 = sst [smem:[#allocation6_spill]] %s8577_s1 }
   0x3   :  { %8601 = sst [smem:[#allocation7_spill]] %s8578_s2 }
   0x4   :  { %8602 = sst [smem:[#allocation8_spill]] %s8579_s3 }
   0x5   :  { %17 = vsyncpa [#allocation3], 0 }
   0x6   :  { %19 = vsyncpa [#allocation3 + $0x1], 0  ;;  %s6997_s21 = smov 0   ;;  %s6999_s22 = smov 0  }
   0x7   :  { %s7001_s23 = smov 0   ;;  %s7003_s24 = smov 0  }
   0x8 LB: > { %s7018_s25 = sadd.s32 4294967295, %s6921_s24   ;;  %s4745_s26 = sadd.s32 4294967294, %s6921_s24   ;;  %s6921_s24 = sphi %s7003_s24, %s8620_s24   ;;  %s6917_s23 = sphi %s7001_s23, %s8619_s23   ;;  %s6913_s22 = sphi %s6999_s22, %s8618_s22   ;;  %s6909_s21 = sphi %s6997_s21, %s8617_s21  }
   0x9   : > { %s7022_s27 = sadd.s32 1, %s6921_s24   ;;  %s289_s28 = sadd.s32 1, %s6917_s23 }
   0xa   : > { %s286_s29 = ssub.s32 %s6921_s24, %s7022_s27  ;;  %p299_p0 = scmp.ne.s32.totalorder %s6917_s23, %s6913_s22 }
   0xb   : > { %p287_p1 = scmp.eq.s32.totalorder %s286_s29, 0  ;;  %p300_p2 = scmp.eq.s32.totalorder %s7018_s25, 1 }
   0xc   : > { %p305_p3 = scmp.ne.s32.totalorder %s6913_s22, %s6909_s21  ;;  %p306_p4 = scmp.eq.s32.totalorder %s4745_s26, 1 }
   0xd   : > { %s7033_s30 = scalar_select %p287_p1, %s6917_s23, %s289_s28  }
   0xe   : > { %p7035_p5 = por %p300_p2, %p299_p0  ;;  %p7039_p6 = por %p306_p4, %p305_p3 }
   0xf   : > { %p4748_p7 = scmp.ge.s32.totalorder %s6921_s24, 1  ;;  %p364_p8 = scmp.lt.s32.totalorder %s6921_s24, 3 }
  0x11   : > { %p365_p9 = pnand %p4748_p7, %p364_p8 }
  0x12   : > { %s8605_s1 = sld [smem:[#allocation6_spill]] (!%p365_p9)  ;;  %p405_p10 = scmp.lt.s32.totalorder (!%p365_p9), %s7018_s25, 1 }
  0x13   : > { %368 = sbr.rel (%p365_p9) target bundleno = 4366 (0x110e), region = 68  ;;  %s8606_s3 = sld [smem:[#allocation8_spill]] (!%p365_p9) }
  0x14   : > { %s8607_s0 = sld [smem:[#allocation5_spill]] (!%p365_p9)  ;;  %s8597_s26 = smov (!%p365_p9), 104  }
  0x15   : > { %s8608_s2 = sld [smem:[#allocation7_spill]] (!%p365_p9)  ;;  %s8598_s28 = smov (!%p365_p9), 120  }
  0x16   : > { %s8591_s15 = smov (!%p365_p9), 96   ;;  %s8589_s16 = smov (!%p365_p9), 64  }
  0x17   : > { %s8593_s17 = smov (!%p365_p9), 16   ;;  %s8595_s18 = smov (!%p365_p9), 8  }
  0x18   : > { %v6433_v0 = vld [vmem:[%s8605_s1] sm:$0xff]  ;;  %s406_s19 = scalar_select %p405_p10, %s7018_s25, 1  ;;  %vm421_vm0 = vcmask 130048   ;;  %vm460_vm1 = vcmask 261120   ;;  %vm496_vm2 = vcmask 64512   ;;  %vm641_vm3 = vcmask 1043456  }
  0x19   : > { %v6435_v1 = vld [vmem:[%s8606_s3 + $0x8] sm:$0xff]  ;;  %432 = vmatpush.bf16.msra.mxu0 %v6433_v0  ;;  %v6434_v4 = vld [vmem:[%s8606_s3] sm:$0xff]  ;;  %vm735_vm4 = vcmask 195584  }
  0x1a   : > { %470 = vmatpush.bf16.msra.mxu1 %v6435_v1  ;;  %s4750_s20 = sshll.u32 %s406_s19, 3  ;;  %v6812_v10 = vld [vmem:[%s8580_s4] ss:$0 sm:$0xff]  ;;  %s8594_s19 = smov 24  }
  0x1b   : > { %s408_s29 = scalar_lea.vmem %s8607_s0, %s4750_s20  ;;  %v414_v5 = vld [vmem:[%s8608_s2] sm:$0xff]  ;;  %s8611_s20 = smov 112  }
  0x1c   : > { %v410_v2 = vld [vmem:[%s408_s29] sm:$0xff]  ;;  %s8596_s29 = smov 112  }
  0x1d   : > { %v411_v3 = vpack.c.bf16 %v410_v2, %v410_v2 }
  0x1e   : > { %471 = vmatpush.bf16.msra.mxu1 %v6434_v4 }
  0x1f   : > { %4755 = vmatmul.msk.bf16.vlgmr.msra.gmra.mxu0 %vm421_vm0, %v411_v3 }
  0x9c   : > { %v434_v6 = vpop.f32.mrf.mxu0 }
  0x9d   : > { %v7063_v7 = vadd.f32 %v434_v6, %v414_v5 }
  0x9f   : > { %v439_v8 = vpack.c.bf16 %v7063_v7, %v7063_v7 }
  0xa1   : > { %4764 = vmatmul.msk.bf16.vlgmr.msra.gmra.mxu1 %vm460_vm1, %v439_v8 }
  0xa4   : > { %v436_v9 = vpop.f32.mrf.mxu0 }
 0x11e   : > { %v473_v11 = vpop.f32.mrf.mxu1 }
 0x11f   : > { %v474_v12 = vadd.f32 %v6812_v10, %v473_v11 }
 0x121   : > { %484 = vrot.lane.b32.xlu1 %v474_v12, %s8597_s26  ;;  %478 = vrot.lane.b32.xlu0 %v474_v12, %s8598_s28  ;;  %v487_v14 = vpack.c.bf16 %v474_v12, %v474_v12  ;;  %s8609_s28 = smov 120  }
 0x123   : > { %v492_v15 = vunpack.c.l.b16 %v487_v14 }
 0x125   : > { %v7074_v16 = vpack.c.b16 %v492_v15, %v492_v15 }
 0x126   : > { %v475_v13 = vpop.f32.mrf.mxu1 }
 0x129   : > { %481 = vrot.lane.b32.xlu0 %v474_v12, %s8596_s29  ;;  %s8610_s29 = smov 104  }
 0x131   : > { %494 = vrot.lane.b32.xlu0 %v7074_v16, %s8591_s15 }
 0x193   : > { %v479_v17 = vpop.permute.xlu0 %478  ;;  %v485_v23 = vpop.permute.xlu1 %484 }
 0x194   : > { %v488_v18 = vpack.c.bf16 %v479_v17, %v479_v17  ;;  %v490_v25 = vpack.c.bf16 %v485_v23, %v485_v23 }
 0x196   : > { %v517_v19 = vunpack.c.l.b16 %v488_v18  ;;  %v565_v28 = vunpack.c.l.b16 %v490_v25 }
 0x198   : > { %v7078_v20 = vpack.c.b16 %v517_v19, %v517_v19  ;;  %v566_v30 = vpack.c.b16 %v565_v28, %v565_v28 }
 0x19a   : > { %519 = vrot.lane.b32.xlu1 %v7078_v20, %s8591_s15 }
 0x19b   : > { %v482_v21 = vpop.permute.xlu0 %481 }
 0x19c   : > { %v489_v22 = vpack.c.bf16 %v482_v21, %v482_v21 }
 0x19e   : > { %v541_v24 = vunpack.c.l.b16 %v489_v22 }
 0x1a0   : > { %v542_v26 = vpack.c.b16 %v541_v24, %v541_v24 }
 0x1a2   : > { %543 = vrot.lane.b32.xlu2 %v542_v26, %s8591_s15 }
 0x1a3   : > { %v495_v27 = vpop.permute.xlu0 %494 }
 0x1a4   : > { %v501_v29 = vsel %vm496_vm2, %v495_v27, 0 }
 0x1a5   : > { %510 = vmatpush.bf16.xpose.msra.mxu2 %v501_v29 }
 0x1aa   : > { %567 = vrot.lane.b32.xlu2 %v566_v30, %s8591_s15  ;;  %s8612_s15 = smov 96  }
 0x1ac   : > { %4765 = vmatmul.msk.bf16.vlgmr.msra.gmra.mxu2 %vm496_vm2, %v487_v14 }
 0x1fc   : > { %v544_v31 = vpop.permute.xlu2 %543 }
 0x1fd   : > { %v549_v32 = vsel %vm496_vm2, %v544_v31, 0 }
 0x1fe   : > { %558 = vmatpush.bf16.xpose.msrb.mxu0 %v549_v32 }
 0x204   : > { %v568_v33 = vpop.permute.xlu2 %567 }
 0x205   : > { %4767 = vmatmul.msk.bf16.vlgmr.msrb.gmra.mxu0 %vm496_vm2, %v489_v22  ;;  %v573_v34 = vsel %vm496_vm2, %v568_v33, 0 }
 0x206   : > { %582 = vmatpush.bf16.xpose.msrb.mxu1 %v573_v34 }
 0x20c   : > { %v520_v35 = vpop.permute.xlu1 %519 }
 0x20d   : > { %4768 = vmatmul.msk.bf16.vlgmr.msrb.gmra.mxu1 %vm496_vm2, %v490_v25  ;;  %v525_v36 = vsel %vm496_vm2, %v520_v35, 0 }
 0x20e   : > { %534 = vmatpush.bf16.xpose.msra.mxu3 %v525_v36 }
 0x215   : > { %4766 = vmatmul.msk.bf16.vlgmr.msra.gmra.mxu3 %vm496_vm2, %v488_v18 }
 0x22f   : > { %v512_v37 = vpop.f32.mrf.mxu2 }
 0x230   : > { %v588_v44 = vsel %vm496_vm2, %v512_v37, -inf }
 0x237   : > { %v514_v38 = vpop.f32.mrf.mxu2 }
 0x238   : > { %v6437_v38 = vld [vmem:[%s8581_s5 + $0x8] sm:$0xff] }
 0x282   : > { %v560_v39 = vpop.f32.mrf.mxu0 }
 0x283   : > { %v594_v40 = vsel %vm496_vm2, %v560_v39, -inf }
 0x284   : > { %595 = vmax.xlane.f32.xlu2 %v594_v40 }
 0x28a   : > { %v562_v41 = vpop.f32.mrf.mxu0  ;;  %v584_v42 = vpop.f32.mrf.mxu1 }
 0x28b   : > { %v597_v43 = vsel %vm496_vm2, %v584_v42, -inf }
 0x28c   : > { %598 = vmax.xlane.f32.xlu0 %v597_v43  ;;  %589 = vmax.xlane.f32.xlu2 %v588_v44 }
 0x292   : > { %v586_v45 = vpop.f32.mrf.mxu1 }
 0x298   : > { %v536_v46 = vpop.f32.mrf.mxu3 }
 0x299   : > { %v591_v47 = vsel %vm496_vm2, %v536_v46, -inf }
 0x29a   : > { %592 = vmax.xlane.f32.xlu1 %v591_v47  ;;  %v7130_v47 = vld [vmem:[%s8585_s9] sm:$0x3f] }
 0x2a0   : > { %v538_v48 = vpop.f32.mrf.mxu3 }
 0x2a1   : > { %v742_v48 = vperm.slane %v7130_v47, 0 }
 0x2f7   : > { %v596_v49 = vpop.xlane.xlu2 %595 }
 0x2f8   : > { %v602_v50 = vsub.f32 %v560_v39, %v596_v49  ;;  %v6436_v39 = vld [vmem:[%s8581_s5] sm:$0xff] }
 0x2fa   : > { %v608_v51 = vmul.f32 1.442695, %v602_v50 }
 0x2fc   : > { %6815 = vpow2.f32 %v608_v51 }
 0x2ff   : > { %v599_v52 = vpop.xlane.xlu0 %598  ;;  %v590_v0 = vpop.xlane.xlu2 %589 }
 0x300   : > { %v603_v53 = vsub.f32 %v584_v42, %v599_v52  ;;  %v600_v1 = vsub.f32 %v512_v37, %v590_v0 }
 0x302   : > { %v6816_v54 = vpop.eup %6815  ;;  %v610_v55 = vmul.f32 1.442695, %v603_v53  ;;  %v604_v2 = vmul.f32 1.442695, %v600_v1  ;;  %v4848_v1 = vld [vmem:[%s8582_s6 + $0x80] sm:$0xf] }
 0x303   : > { %v618_v56 = vsel %vm496_vm2, %v6816_v54, 0.0 }
 0x304   : > { %619 = vadd.xlane.f32.xlu2 %v618_v56  ;;  %6817 = vpow2.f32 %v610_v55 }
 0x30a   : > { %v6818_v57 = vpop.eup %6817 }
 0x30b   : > { %v621_v58 = vsel %vm496_vm2, %v6818_v57, 0.0 }
 0x30c   : > { %622 = vadd.xlane.f32.xlu0 %v621_v58 }
 0x30d   : > { %v593_v59 = vpop.xlane.xlu1 %592 }
 0x30e   : > { %v601_v60 = vsub.f32 %v536_v46, %v593_v59 }
 0x310   : > { %v606_v61 = vmul.f32 1.442695, %v601_v60 }
 0x312   : > { %6819 = vpow2.f32 %v606_v61 }
 0x313   : > { %6821 = vpow2.f32 %v604_v2  ;;  %v6462_v2 = vld [vmem:[%s8582_s6 + $0xbc] sm:$0xf0] }
 0x318   : > { %v6820_v62 = vpop.eup %6819 }
 0x319   : > { %v615_v63 = vsel %vm496_vm2, %v6820_v62, 0.0  ;;  %v6822_v3 = vpop.eup %6821 }
 0x31a   : > { %616 = vadd.xlane.f32.xlu1 %v615_v63  ;;  %v612_v4 = vsel %vm496_vm2, %v6822_v3, 0.0 }
 0x31c   : > { %679 = vrot.lane.b32.xlu2 %v542_v26, %s8589_s16 }
 0x320   : > { %700 = vrot.lane.b32.xlu0 %v566_v30, %s8589_s16 }
 0x328   : > { %636 = vrot.lane.b32.xlu0 %v7074_v16, %s8589_s16 }
 0x333   : > { %658 = vrot.lane.b32.xlu1 %v7078_v20, %s8589_s16  ;;  %s8614_s16 = smov 8  }
 0x35d   : > { %613 = vadd.xlane.f32.xlu1 %v612_v4  ;;  %v4849_v4 = vor.u32 %v6462_v2, %v4848_v1  ;;  %v4880_v2 = vld [vmem:[%s8582_s6 + $0xa0] sm:$0xf] }
 0x377   : > { %v620_v5 = vpop.xlane.xlu2 %619 }
 0x378   : > { %6823 = vrcp.f32 %v620_v5  ;;  %v4850_v5 = vld [vmem:[%s8582_s6 + $0xc0] sm:$0xf0] }
 0x37e   : > { %v6824_v6 = vpop.eup %6823 }
 0x37f   : > { %v630_v8 = vmul.f32 %v6824_v6, %v6816_v54  ;;  %v680_v9 = vpop.permute.xlu2 %679  ;;  %v623_v12 = vpop.xlane.xlu0 %622  ;;  %v6931_v54 = vmov 32.0   ;;  %v4856_v6 = vld [vmem:[%s8582_s6 + $0x88] sm:$0xf] }
 0x380   : > { %v685_v10 = vsel %vm641_vm3, %v680_v9, 0  ;;  %6825 = vrcp.f32 %v623_v12  ;;  %v4858_v12 = vld [vmem:[%s8582_s6 + $0xc8] sm:$0xf0] }
 0x381   : > { %v634_v11 = vpack.c.bf16 %v630_v8, %v630_v8  ;;  %694 = vmatpush.bf16.msra.mxu0 %v685_v10  ;;  %v6463_v8 = vld [vmem:[%s8582_s6 + $0xc4] sm:$0xf0] }
 0x382   : > { %v4857_v10 = vor.u32 %v6463_v8, %v4856_v6  ;;  %v6467_v6 = vld [vmem:[%s8582_s6 + $0xe4] sm:$0xf0]  ;;  %v6459_v8 = vld [vmem:[%s8582_s6 + $0xac] sm:$0xf] }
 0x384   : > { %4771 = vmatmul.msk.bf16.vlgmr.msra.gmra.mxu0 %vm496_vm2, %v634_v11  ;;  %v6455_v11 = vld [vmem:[%s8582_s6 + $0x8c] sm:$0xf] }
 0x386   : > { %v6826_v13 = vpop.eup %6825 }
 0x387   : > { %v631_v14 = vmul.f32 %v6826_v13, %v6818_v57  ;;  %v4861_v13 = vor.u32 %v6455_v11, %v4858_v12 }
 0x389   : > { %v635_v17 = vpack.c.bf16 %v631_v14, %v631_v14  ;;  %v4784_v14 = vld [vmem:[%s8582_s6] sm:$0xf] }
 0x38d   : > { %v617_v18 = vpop.xlane.xlu1 %616 }
 0x38e   : > { %6827 = vrcp.f32 %v617_v18  ;;  %v4786_v18 = vld [vmem:[%s8582_s6 + $0x40] sm:$0xf0] }
 0x392   : > { %v701_v15 = vpop.permute.xlu0 %700 }
 0x393   : > { %v706_v16 = vsel %vm641_vm3, %v701_v15, 0  ;;  %v6446_v15 = vld [vmem:[%s8582_s6 + $0x3c] sm:$0xf0] }
 0x394   : > { %715 = vmatpush.bf16.msra.mxu1 %v706_v16  ;;  %v6828_v21 = vpop.eup %6827  ;;  %v6438_v16 = vld [vmem:[%s8582_s6 + $0x4] sm:$0xf] }
 0x395   : > { %v629_v22 = vmul.f32 %v6828_v21, %v6820_v62  ;;  %v4789_v21 = vor.u32 %v6438_v16, %v4786_v18  ;;  %v4818_v18 = vld [vmem:[%s8582_s6 + $0x60] sm:$0xf0] }
 0x397   : > { %4772 = vmatmul.msk.bf16.vlgmr.msra.gmra.mxu1 %vm496_vm2, %v635_v17  ;;  %v633_v25 = vpack.c.bf16 %v629_v22, %v629_v22  ;;  %v4785_v17 = vor.u32 %v6446_v15, %v4784_v14  ;;  %v6450_v14 = vld [vmem:[%s8582_s6 + $0x5c] sm:$0xf0] }
 0x398   : > { %1069 = vmatpush.bf16.msrb.mxu1 %v4857_v10 }
 0x39a   : > { %v637_v19 = vpop.permute.xlu0 %636 }
 0x39b   : > { %v643_v20 = vsel %vm641_vm3, %v637_v19, 0  ;;  %v4792_v19 = vld [vmem:[%s8582_s6 + $0x8] sm:$0xf] }
 0x39c   : > { %652 = vmatpush.bf16.msrb.mxu2 %v643_v20  ;;  %v6447_v20 = vld [vmem:[%s8582_s6 + $0x44] sm:$0xf0] }
 0x39d   : > { %v4793_v22 = vor.u32 %v6447_v20, %v4792_v19  ;;  %v4824_v19 = vld [vmem:[%s8582_s6 + $0x28] sm:$0xf] }
 0x39e   : > { %v6451_v20 = vld [vmem:[%s8582_s6 + $0x64] sm:$0xf0] }
 0x39f   : > { %1070 = vmatpush.bf16.msrb.mxu1 %v4793_v22  ;;  %v4826_v22 = vld [vmem:[%s8582_s6 + $0x68] sm:$0xf0] }
 0x3a0   : > { %764 = vmatpush.bf16.msra.mxu2 %v6437_v38  ;;  %v4874_v38 = vld [vmem:[%s8582_s6 + $0xd8] sm:$0xf0] }
 0x3a4   : > { %765 = vmatpush.bf16.msra.mxu2 %v6436_v39  ;;  %v4800_v39 = vld [vmem:[%s8582_s6 + $0x10] sm:$0xf] }
 0x3a5   : > { %v659_v23 = vpop.permute.xlu1 %658 }
 0x3a6   : > { %v664_v24 = vsel %vm641_vm3, %v659_v23, 0  ;;  %v6439_v23 = vld [vmem:[%s8582_s6 + $0xc] sm:$0xf] }
 0x3a7   : > { %673 = vmatpush.bf16.msrb.mxu3 %v664_v24  ;;  %v4794_v24 = vld [vmem:[%s8582_s6 + $0x48] sm:$0xf0] }
 0x3aa   : > { %4770 = vmatmul.msk.bf16.vlgmr.msrb.gmra.mxu3 %vm496_vm2, %v633_v25  ;;  %v4797_v25 = vor.u32 %v6439_v23, %v4794_v24 }
 0x3ab   : > { %1043 = vmatpush.bf16.msra.mxu3 %v4849_v4  ;;  %v6458_v4 = vld [vmem:[%s8582_s6 + $0xa4] sm:$0xf] }
 0x3af   : > { %1044 = vmatpush.bf16.msra.mxu3 %v4785_v17  ;;  %v6442_v17 = vld [vmem:[%s8582_s6 + $0x24] sm:$0xf] }
 0x3b0   : > { %v4821_v24 = vor.u32 %v6442_v17, %v4818_v18  ;;  %v6478_v17 = vld [vmem:[%s8584_s8 + $0x40] sm:$0xff] }
 0x3b1   : > { %v6486_v18 = vld [vmem:[%s8584_s8 + $0x80] sm:$0xff] }
 0x3d0   : > { %v614_v26 = vpop.xlane.xlu1 %613 }
 0x3d1   : > { %6829 = vrcp.f32 %v614_v26 }
 0x3d2   : > { %6831 = vrcp.f32 %v6931_v54 }
 0x3d7   : > { %v6830_v27 = vpop.eup %6829 }
 0x3d8   : > { %v628_v28 = vmul.f32 %v6830_v27, %v6822_v3  ;;  %v6832_v55 = vpop.eup %6831  ;;  %v6454_v3 = vld [vmem:[%s8582_s6 + $0x84] sm:$0xf]  ;;  %v4864_v27 = vld [vmem:[%s8582_s6 + $0x90] sm:$0xf] }
 0x3d9   : > { %v776_v56 = vmul.f32 32.0, %v6832_v55  ;;  %vm780_vm5 = vweird.f32 %v6832_v55  ;;  %v4853_v9 = vor.u32 %v6454_v3, %v4850_v5  ;;  %v6466_v3 = vld [vmem:[%s8582_s6 + $0xdc] sm:$0xf0]  ;;  %v4882_v5 = vld [vmem:[%s8582_s6 + $0xe0] sm:$0xf0] }
 0x3da   : > { %v632_v29 = vpack.c.bf16 %v628_v28, %v628_v28  ;;  %v6464_v28 = vld [vmem:[%s8582_s6 + $0xcc] sm:$0xf0]  ;;  %v4881_v11 = vor.u32 %v6466_v3, %v4880_v2  ;;  %v4885_v12 = vor.u32 %v6458_v4, %v4882_v5  ;;  %v6490_v2 = vld [vmem:[%s8584_s8 + $0xa0] sm:$0xff]  ;;  %v6481_v5 = vld [vmem:[%s8584_s8 + $0x58] sm:$0xff] }
 0x3db   : > { %v777_v57 = vsub.f32 1.0, %v776_v56  ;;  %1056 = vmatpush.bf16.msrb.mxu0 %v4853_v9  ;;  %v4890_v9 = vld [vmem:[%s8582_s6 + $0xe8] sm:$0xf0]  ;;  %v6474_v3 = vld [vmem:[%s8584_s8 + $0x20] sm:$0xff] }
 0x3dc   : > { %4769 = vmatmul.msk.bf16.vlgmr.msrb.gmra.mxu2 %vm496_vm2, %v632_v29  ;;  %v6456_v29 = vld [vmem:[%s8582_s6 + $0x94] sm:$0xf]  ;;  %v4893_v16 = vor.u32 %v6459_v8, %v4890_v9  ;;  %v6498_v4 = vld [vmem:[%s8584_s8 + $0xe0] sm:$0xff]  ;;  %v6497_v8 = vld [vmem:[%s8584_s8 + $0xd8] sm:$0xff] }
 0x3dd   : > { %v778_v58 = vmul.f32 %v6832_v55, %v777_v57  ;;  %1082 = vmatpush.bf16.msrb.mxu2 %v4861_v13  ;;  %v4816_v13 = vld [vmem:[%s8582_s6 + $0x20] sm:$0xf]  ;;  %v6480_v9 = vld [vmem:[%s8584_s8 + $0x50] sm:$0xff] }
 0x3de   : > { %v4817_v23 = vor.u32 %v6450_v14, %v4816_v13  ;;  %v6479_v13 = vld [vmem:[%s8584_s8 + $0x48] sm:$0xff] }
 0x3df   : > { %v779_v59 = vadd.f32 %v6832_v55, %v778_v58  ;;  %1057 = vmatpush.bf16.msrb.mxu0 %v4789_v21  ;;  %v6443_v21 = vld [vmem:[%s8582_s6 + $0x2c] sm:$0xf] }
 0x3e0   : > { %v6487_v14 = vld [vmem:[%s8584_s8 + $0x88] sm:$0xff] }
 0x3e1   : > { %v7135_v60 = vsel %vm780_vm5, %v6832_v55, %v779_v59  ;;  %1083 = vmatpush.bf16.msrb.mxu2 %v4797_v25  ;;  %v4825_v25 = vor.u32 %v6451_v20, %v4824_v19  ;;  %v6517_v19 = vld [vmem:[%s8584_s8 + $0x178] sm:$0xff] }
 0x3e2   : > { %v6525_v20 = vld [vmem:[%s8584_s8 + $0x1b8] sm:$0xff] }
 0x401   : > { %v696_v30 = vpop.f32.mrf.mxu0 }
 0x402   : > { %726 = vrot.lane.b32.xlu0 %v696_v30, %s8593_s17  ;;  %s8613_s17 = smov 64  }
 0x409   : > { %v698_v31 = vpop.f32.mrf.mxu0 }
 0x40a   : > { %v4865_v31 = vor.u32 %v6464_v28, %v4864_v27  ;;  %v4896_v27 = vld [vmem:[%s8582_s6 + $0xb0] sm:$0xf] }
 0x40b   : > { %v6468_v28 = vld [vmem:[%s8582_s6 + $0xec] sm:$0xf0] }
 0x40c   : > { %1095 = vmatpush.bf16.msrb.mxu3 %v4865_v31  ;;  %v4904_v31 = vld [vmem:[%s8582_s6 + $0xb8] sm:$0xf] }
 0x414   : > { %v717_v32 = vpop.f32.mrf.mxu1 }
 0x41c   : > { %v719_v33 = vpop.f32.mrf.mxu1 }
 0x41d   : > { %v4872_v33 = vld [vmem:[%s8582_s6 + $0x98] sm:$0xf] }
 0x42d   : > { %v675_v34 = vpop.f32.mrf.mxu3 }
 0x42e   : > { %722 = vrot.lane.b32.xlu2 %v675_v34, %s8595_s18  ;;  %v6465_v34 = vld [vmem:[%s8582_s6 + $0xd4] sm:$0xf0]  ;;  %s8615_s18 = smov 16  }
 0x435   : > { %v677_v35 = vpop.f32.mrf.mxu3 }
 0x436   : > { %730 = vrot.lane.b32.xlu2 %v717_v32, %s8594_s19  ;;  %v4866_v32 = vld [vmem:[%s8582_s6 + $0xd0] sm:$0xf0]  ;;  %s8616_s19 = smov 24  }
 0x437   : > { %v4869_v35 = vor.u32 %v6456_v29, %v4866_v32  ;;  %v6460_v29 = vld [vmem:[%s8582_s6 + $0xb4] sm:$0xf]  ;;  %v6469_v32 = vld [vmem:[%s8582_s6 + $0xf4] sm:$0xf0] }
 0x439   : > { %1108 = vmatpush.bf16.msra.mxu0 %v4869_v35  ;;  %v4897_v35 = vor.u32 %v6468_v28, %v4896_v27  ;;  %v6508_v27 = vld [vmem:[%s8584_s8 + $0x130] sm:$0xff] }
 0x43a   : > { %v6532_v28 = vld [vmem:[%s8584_s8 + $0x1f0] sm:$0xff] }
 0x45f   : > { %v654_v36 = vpop.f32.mrf.mxu2 }
 0x467   : > { %v656_v37 = vpop.f32.mrf.mxu2 }
 0x468   : > { %v6457_v37 = vld [vmem:[%s8582_s6 + $0x9c] sm:$0xf] }
 0x474   : > { %v727_v42 = vpop.permute.xlu0 %726 }
 0x488   : > { %v723_v40 = vpop.permute.xlu2 %722 }
 0x489   : > { %v733_v41 = vsel %vm496_vm2, %v654_v36, %v723_v40  ;;  %v4873_v36 = vor.u32 %v6465_v34, %v4872_v33  ;;  %v6461_v33 = vld [vmem:[%s8582_s6 + $0xbc] sm:$0xf] }
 0x48a   : > { %v734_v44 = vsel %vm421_vm0, %v733_v41, %v727_v42  ;;  %v4877_v41 = vor.u32 %v6457_v37, %v4874_v38  ;;  %v6448_v42 = vld [vmem:[%s8582_s6 + $0x4c] sm:$0xf0]  ;;  %v4906_v34 = vld [vmem:[%s8582_s6 + $0xf8] sm:$0xf0] }
 0x48b   : > { %1121 = vmatpush.bf16.msra.mxu1 %v4873_v36  ;;  %v4832_v37 = vld [vmem:[%s8582_s6 + $0x30] sm:$0xf] }
 0x48c   : > { %v6452_v38 = vld [vmem:[%s8582_s6 + $0x6c] sm:$0xf0] }
 0x490   : > { %v731_v43 = vpop.permute.xlu2 %730 }
 0x491   : > { %v736_v45 = vsel %vm735_vm4, %v734_v44, %v731_v43  ;;  %v6440_v43 = vld [vmem:[%s8582_s6 + $0x14] sm:$0xf]  ;;  %v4801_v44 = vor.u32 %v6448_v42, %v4800_v39  ;;  %v4905_v39 = vor.u32 %v6469_v32, %v4904_v31  ;;  %v6507_v31 = vld [vmem:[%s8584_s8 + $0x128] sm:$0xff] }
 0x492   : > { %v737_v46 = vpack.c.bf16 %v736_v45, %v736_v45  ;;  %v4802_v45 = vld [vmem:[%s8582_s6 + $0x50] sm:$0xf0]  ;;  %v6531_v32 = vld [vmem:[%s8584_s8 + $0x1e8] sm:$0xff] }
 0x493   : > { %1096 = vmatpush.bf16.msrb.mxu3 %v4801_v44  ;;  %v4834_v42 = vld [vmem:[%s8582_s6 + $0x70] sm:$0xf0]  ;;  %v6453_v44 = vld [vmem:[%s8582_s6 + $0x74] sm:$0xf0] }
 0x494   : > { %4781 = vmatmul.msk.bf16.vlgmr.msra.gmra.mxu2 %vm460_vm1, %v737_v46  ;;  %v4808_v46 = vld [vmem:[%s8582_s6 + $0x18] sm:$0xf] }
 0x495   : > { %1134 = vmatpush.bf16.msra.mxu2 %v4877_v41  ;;  %v6444_v41 = vld [vmem:[%s8582_s6 + $0x34] sm:$0xf] }
 0x517   : > { %v767_v49 = vpop.f32.mrf.mxu2 }
 0x518   : > { %v768_v50 = vadd.f32 %v767_v49, %v742_v48  ;;  %v6449_v48 = vld [vmem:[%s8582_s6 + $0x54] sm:$0xf0]  ;;  %v4805_v49 = vor.u32 %v6440_v43, %v4802_v45  ;;  %v6445_v45 = vld [vmem:[%s8582_s6 + $0x3c] sm:$0xf] }
 0x519   : > { %v4840_v43 = vld [vmem:[%s8582_s6 + $0x38] sm:$0xf] }
 0x51a   : > { %v771_v51 = vadd.f32 %v768_v50, %v7063_v7  ;;  %v4809_v50 = vor.u32 %v6449_v48, %v4808_v46  ;;  %1109 = vmatpush.bf16.msra.mxu0 %v4805_v49  ;;  %v4842_v46 = vld [vmem:[%s8582_s6 + $0x78] sm:$0xf0]  ;;  %v4833_v48 = vor.u32 %v6452_v38, %v4832_v37  ;;  %v4837_v49 = vor.u32 %v6444_v41, %v4834_v42 }
 0x51b   : > { %v6513_v37 = vld [vmem:[%s8584_s8 + $0x158] sm:$0xff] }
 0x51c   : > { %v772_v52 = vsel %vm460_vm1, %v771_v51, 0.0  ;;  %1122 = vmatpush.bf16.msra.mxu1 %v4809_v50  ;;  %v4841_v50 = vor.u32 %v6453_v44, %v4840_v43  ;;  %v6521_v38 = vld [vmem:[%s8584_s8 + $0x198] sm:$0xff]  ;;  %v6511_v43 = vld [vmem:[%s8584_s8 + $0x148] sm:$0xff] }
 0x51d   : > { %773 = vadd.xlane.f32.xlu0 %v772_v52  ;;  %v4810_v52 = vld [vmem:[%s8582_s6 + $0x58] sm:$0xf0]  ;;  %v6519_v44 = vld [vmem:[%s8584_s8 + $0x188] sm:$0xff] }
 0x51e   : > { %v6505_v41 = vld [vmem:[%s8584_s8 + $0x118] sm:$0xff] }
 0x51f   : > { %v769_v53 = vpop.f32.mrf.mxu2  ;;  %v6529_v42 = vld [vmem:[%s8584_s8 + $0x1d8] sm:$0xff] }
 0x590   : > { %v774_v61 = vpop.xlane.xlu0 %773 }
 0x591   : > { %v782_v62 = vmul.f32 %v7135_v60, %v774_v61  ;;  %v801_v61 = vperm.slane %v7130_v47, 1 }
 0x593   : > { %v7138_v63 = vsub.f32 %v771_v51, %v782_v62  ;;  %v6441_v51 = vld [vmem:[%s8582_s6 + $0x1c] sm:$0xf] }
 0x594   : > { %v4813_v53 = vor.u32 %v6441_v51, %v4810_v52  ;;  %v4845_v51 = vor.u32 %v6445_v45, %v4842_v46  ;;  %v6485_v52 = vld [vmem:[%s8584_s8 + $0x78] sm:$0xff]  ;;  %v6504_v45 = vld [vmem:[%s8584_s8 + $0x110] sm:$0xff] }
 0x595   : > { %v784_v7 = vmul.f32 %v7138_v63, %v7138_v63  ;;  %v6528_v46 = vld [vmem:[%s8584_s8 + $0x1d0] sm:$0xff] }
 0x596   : > { %1135 = vmatpush.bf16.msra.mxu2 %v4813_v53  ;;  %v6493_v53 = vld [vmem:[%s8584_s8 + $0xb8] sm:$0xff] }
 0x597   : > { %v785_v0 = vsel %vm460_vm1, %v784_v7, 0.0  ;;  %v803_v7 = vperm.slane %v7130_v47, 2  ;;  %v4888_v47 = vld [vmem:[%s8582_s6 + $0xa8] sm:$0xf] }
 0x598   : > { %786 = vadd.xlane.f32.xlu2 %v785_v0  ;;  %v4889_v15 = vor.u32 %v6467_v6, %v4888_v47  ;;  %v6489_v47 = vld [vmem:[%s8584_s8 + $0x98] sm:$0xff] }
 0x599   : > { %v6473_v6 = vld [vmem:[%s8584_s8 + $0x18] sm:$0xff] }
 0x60b   : > { %v787_v26 = vpop.xlane.xlu2 %786 }
 0x60c   : > { %v788_v30 = vmul.f32 %v787_v26, %v7135_v60  ;;  %v4829_v26 = vor.u32 %v6443_v21, %v4826_v22  ;;  %v6470_v21 = vld [vmem:[%s8584_s8] sm:$0xff] }
 0x60d   : > { %v6494_v22 = vld [vmem:[%s8584_s8 + $0xc0] sm:$0xff] }
 0x60e   : > { %v789_v40 = vadd.f32 1e-05, %v788_v30  ;;  %v4898_v30 = vld [vmem:[%s8582_s6 + $0xf0] sm:$0xf0] }
 0x60f   : > { %v4901_v36 = vor.u32 %v6460_v29, %v4898_v30  ;;  %v6515_v29 = vld [vmem:[%s8584_s8 + $0x168] sm:$0xff] }
 0x610   : > { %6833 = vrsqrt.f32 %v789_v40  ;;  %vm796_vm7 = vweird.f32 %v789_v40  ;;  %v6523_v30 = vld [vmem:[%s8584_s8 + $0x1a8] sm:$0xff] }
 0x616   : > { %v6834_v54 = vpop.eup %6833 }
 0x617   : > { %v791_v55 = vmul.f32 %v6834_v54, %v789_v40  ;;  %vm797_vm6 = vweird.f32 %v6834_v54  ;;  %v4909_v40 = vor.u32 %v6461_v33, %v4906_v34  ;;  %v6514_v33 = vld [vmem:[%s8584_s8 + $0x160] sm:$0xff] }
 0x618   : > { %vm798_vm8 = vmor %vm796_vm7, %vm797_vm6  ;;  %v6522_v34 = vld [vmem:[%s8584_s8 + $0x1a0] sm:$0xff] }
 0x619   : > { %v792_v56 = vmul.f32 %v6834_v54, %v791_v55  ;;  %v6501_v55 = vld [vmem:[%s8584_s8 + $0xf8] sm:$0xff] }
 0x61b   : > { %v793_v57 = vmul.f32 0.5, %v792_v56  ;;  %v6484_v56 = vld [vmem:[%s8584_s8 + $0x70] sm:$0xff] }
 0x61d   : > { %v794_v58 = vsub.f32 1.5, %v793_v57  ;;  %v6492_v57 = vld [vmem:[%s8584_s8 + $0xb0] sm:$0xff] }
 0x61f   : > { %v795_v59 = vmul.f32 %v6834_v54, %v794_v58  ;;  %v6476_v58 = vld [vmem:[%s8584_s8 + $0x30] sm:$0xff] }
 0x621   : > { %v799_v62 = vsel %vm798_vm8, %v6834_v54, %v795_v59  ;;  %v6477_v54 = vld [vmem:[%s8584_s8 + $0x38] sm:$0xff]  ;;  %v6500_v59 = vld [vmem:[%s8584_s8 + $0xf0] sm:$0xff] }
 0x622   : > { %v800_v0 = vmul.f32 %v799_v62, %v7138_v63  ;;  %v6491_v62 = vld [vmem:[%s8584_s8 + $0xa8] sm:$0xff] }
 0x624   : > { %v802_v1 = vmul.f32 %v801_v61, %v800_v0  ;;  %v6483_v61 = vld [vmem:[%s8584_s8 + $0x68] sm:$0xff] }
 0x625   : > { %v6499_v0 = vld [vmem:[%s8584_s8 + $0xe8] sm:$0xff] }
 0x626   : > { %v7258_v63 = vadd.f32 %v803_v7, %v802_v1  ;;  %v6475_v7 = vld [vmem:[%s8584_s8 + $0x28] sm:$0xff]  ;;  %v6482_v1 = vld [vmem:[%s8584_s8 + $0x60] sm:$0xff] }
 0x628   : > { %v7271_v10 = vpack.c.bf16 %v7258_v63, %v7258_v63 }
 0x62a   : > { %4910 = vmatmul.msk.bf16.vlgmr.msra.gmra.mxu3 %vm460_vm1, %v7271_v10  ;;  %4911 = vmatmul.msk.bf16.vlgmr.msrb.gmra.mxu0 %vm460_vm1, %v7271_v10 }
 0x62b   : > { %4912 = vmatmul.msk.bf16.vlgmr.msrb.gmra.mxu1 %vm460_vm1, %v7271_v10  ;;  %4913 = vmatmul.msk.bf16.vlgmr.msrb.gmra.mxu2 %vm460_vm1, %v7271_v10 }
 0x62c   : > { %1147 = vmatpush.bf16.msra.mxu3 %v4881_v11  ;;  %1160 = vmatpush.bf16.msrb.mxu0 %v4885_v12  ;;  %v6488_v11 = vld [vmem:[%s8584_s8 + $0x90] sm:$0xff] }
 0x62d   : > { %1173 = vmatpush.bf16.msrb.mxu1 %v4889_v15  ;;  %1186 = vmatpush.bf16.msrb.mxu2 %v4893_v16  ;;  %v6472_v12 = vld [vmem:[%s8584_s8 + $0x10] sm:$0xff]  ;;  %v6471_v15 = vld [vmem:[%s8584_s8 + $0x8] sm:$0xff] }
 0x62e   : > { %v6495_v16 = vld [vmem:[%s8584_s8 + $0xc8] sm:$0xff] }
 0x630   : > { %1148 = vmatpush.bf16.msra.mxu3 %v4817_v23  ;;  %1161 = vmatpush.bf16.msrb.mxu0 %v4821_v24  ;;  %v6509_v23 = vld [vmem:[%s8584_s8 + $0x138] sm:$0xff] }
 0x631   : > { %1174 = vmatpush.bf16.msrb.mxu1 %v4825_v25  ;;  %1187 = vmatpush.bf16.msrb.mxu2 %v4829_v26  ;;  %v6533_v24 = vld [vmem:[%s8584_s8 + $0x1f8] sm:$0xff]  ;;  %v6516_v25 = vld [vmem:[%s8584_s8 + $0x170] sm:$0xff] }
 0x632   : > { %v6524_v26 = vld [vmem:[%s8584_s8 + $0x1b0] sm:$0xff] }
 0x63a   : > { %4914 = vmatmul.msk.bf16.vlgmr.msrb.gmra.mxu3 %vm460_vm1, %v7271_v10  ;;  %4915 = vmatmul.msk.bf16.vlgmr.msra.gmra.mxu0 %vm460_vm1, %v7271_v10 }
 0x63b   : > { %4916 = vmatmul.msk.bf16.vlgmr.msra.gmra.mxu1 %vm460_vm1, %v7271_v10  ;;  %4917 = vmatmul.msk.bf16.vlgmr.msra.gmra.mxu2 %vm460_vm1, %v7271_v10 }
 0x63c   : > { %1199 = vmatpush.bf16.msrb.mxu3 %v4897_v35  ;;  %1212 = vmatpush.bf16.msra.mxu0 %v4901_v36  ;;  %v6506_v35 = vld [vmem:[%s8584_s8 + $0x120] sm:$0xff] }
 0x63d   : > { %1225 = vmatpush.bf16.msra.mxu1 %v4905_v39  ;;  %1238 = vmatpush.bf16.msra.mxu2 %v4909_v40  ;;  %v6530_v36 = vld [vmem:[%s8584_s8 + $0x1e0] sm:$0xff]  ;;  %v6512_v39 = vld [vmem:[%s8584_s8 + $0x150] sm:$0xff] }
 0x63e   : > { %v6520_v40 = vld [vmem:[%s8584_s8 + $0x190] sm:$0xff] }
 0x640   : > { %1200 = vmatpush.bf16.msrb.mxu3 %v4833_v48  ;;  %1213 = vmatpush.bf16.msra.mxu0 %v4837_v49  ;;  %v6510_v48 = vld [vmem:[%s8584_s8 + $0x140] sm:$0xff] }
 0x641   : > { %1226 = vmatpush.bf16.msra.mxu1 %v4841_v50  ;;  %1239 = vmatpush.bf16.msra.mxu2 %v4845_v51  ;;  %v6518_v49 = vld [vmem:[%s8584_s8 + $0x180] sm:$0xff]  ;;  %v6503_v50 = vld [vmem:[%s8584_s8 + $0x108] sm:$0xff] }
 0x642   : > { %v6527_v51 = vld [vmem:[%s8584_s8 + $0x1c8] sm:$0xff] }
 0x64a   : > { %4918 = vmatmul.msk.bf16.vlgmr.msra.gmra.mxu3 %vm460_vm1, %v7271_v10  ;;  %4919 = vmatmul.msk.bf16.vlgmr.msrb.gmra.mxu0 %vm460_vm1, %v7271_v10 }
 0x64b   : > { %4920 = vmatmul.msk.bf16.vlgmr.msrb.gmra.mxu1 %vm460_vm1, %v7271_v10  ;;  %4921 = vmatmul.msk.bf16.vlgmr.msrb.gmra.mxu2 %vm460_vm1, %v7271_v10 }
 0x64c   : > { %2315 = vmatpush.bf16.msrb.mxu0 %v6485_v52  ;;  %2328 = vmatpush.bf16.msrb.mxu1 %v6493_v53  ;;  %v6502_v52 = vld [vmem:[%s8584_s8 + $0x100] sm:$0xff] }
 0x64d   : > { %2302 = vmatpush.bf16.msra.mxu3 %v6477_v54  ;;  %2341 = vmatpush.bf16.msrb.mxu2 %v6501_v55  ;;  %v6526_v53 = vld [vmem:[%s8584_s8 + $0x1c0] sm:$0xff] }
 0x64e   : > { %v7572_v54 = vld [vmem:[%s8583_s7] sm:$0xff] }
 0x64f   : > { %v843_v55 = vperm.slane %v7572_v54, 1 }
 0x650   : > { %2316 = vmatpush.bf16.msrb.mxu0 %v6484_v56  ;;  %2329 = vmatpush.bf16.msrb.mxu1 %v6492_v57  ;;  %v844_v56 = vperm.slane %v7572_v54, 2 }
 0x651   : > { %2303 = vmatpush.bf16.msra.mxu3 %v6476_v58  ;;  %2342 = vmatpush.bf16.msrb.mxu2 %v6500_v59 }
 0x654   : > { %2317 = vmatpush.bf16.msrb.mxu0 %v6483_v61  ;;  %2330 = vmatpush.bf16.msrb.mxu1 %v6491_v62 }
 0x655   : > { %2304 = vmatpush.bf16.msra.mxu3 %v6475_v7  ;;  %2343 = vmatpush.bf16.msrb.mxu2 %v6499_v0  ;;  %v842_v7 = vperm.slane %v7572_v54, 0 }
 0x658   : > { %2318 = vmatpush.bf16.msrb.mxu0 %v6482_v1  ;;  %2331 = vmatpush.bf16.msrb.mxu1 %v6490_v2  ;;  %v845_v1 = vperm.slane %v7572_v54, 3  ;;  %v6549_v2 = vld [vmem:[%s8584_s8 + $0x278] sm:$0xff] }
 0x659   : > { %2305 = vmatpush.bf16.msra.mxu3 %v6474_v3  ;;  %2344 = vmatpush.bf16.msrb.mxu2 %v6498_v4  ;;  %v6557_v4 = vld [vmem:[%s8584_s8 + $0x2b8] sm:$0xff] }
 0x65a   : > { %4922 = vmatmul.msk.bf16.vlgmr.msrb.gmra.mxu3 %vm460_vm1, %v7271_v10  ;;  %4923 = vmatmul.msk.bf16.vlgmr.msra.gmra.mxu0 %vm460_vm1, %v7271_v10 }
 0x65b   : > { %4924 = vmatmul.msk.bf16.vlgmr.msra.gmra.mxu1 %vm460_vm1, %v7271_v10  ;;  %4925 = vmatmul.msk.bf16.vlgmr.msra.gmra.mxu2 %vm460_vm1, %v7271_v10  ;;  %v6496_v10 = vld [vmem:[%s8584_s8 + $0xd0] sm:$0xff] }
 0x65c   : > { %2319 = vmatpush.bf16.msrb.mxu0 %v6481_v5  ;;  %2332 = vmatpush.bf16.msrb.mxu1 %v6489_v47 }
 0x65d   : > { %2306 = vmatpush.bf16.msra.mxu3 %v6473_v6  ;;  %2345 = vmatpush.bf16.msrb.mxu2 %v6497_v8 }
 0x660   : > { %2320 = vmatpush.bf16.msrb.mxu0 %v6480_v9  ;;  %2333 = vmatpush.bf16.msrb.mxu1 %v6488_v11 }
 0x661   : > { %2307 = vmatpush.bf16.msra.mxu3 %v6472_v12  ;;  %2346 = vmatpush.bf16.msrb.mxu2 %v6496_v10  ;;  %v6548_v12 = vld [vmem:[%s8584_s8 + $0x270] sm:$0xff] }
 0x664   : > { %2321 = vmatpush.bf16.msrb.mxu0 %v6479_v13  ;;  %2334 = vmatpush.bf16.msrb.mxu1 %v6487_v14  ;;  %v6556_v14 = vld [vmem:[%s8584_s8 + $0x2b0] sm:$0xff] }
 0x665   : > { %2308 = vmatpush.bf16.msra.mxu3 %v6471_v15  ;;  %2347 = vmatpush.bf16.msrb.mxu2 %v6495_v16  ;;  %v6541_v16 = vld [vmem:[%s8584_s8 + $0x238] sm:$0xff] }
 0x668   : > { %2322 = vmatpush.bf16.msrb.mxu0 %v6478_v17  ;;  %2335 = vmatpush.bf16.msrb.mxu1 %v6486_v18  ;;  %v6565_v18 = vld [vmem:[%s8584_s8 + $0x2f8] sm:$0xff] }
 0x669   : > { %2309 = vmatpush.bf16.msra.mxu3 %v6470_v21  ;;  %2348 = vmatpush.bf16.msrb.mxu2 %v6494_v22  ;;  %v6555_v21 = vld [vmem:[%s8584_s8 + $0x2a8] sm:$0xff]  ;;  %v847_v22 = vperm.slane %v7572_v54, 5 }
 0x66c   : > { %2367 = vmatpush.bf16.msra.mxu0 %v6517_v19  ;;  %2380 = vmatpush.bf16.msra.mxu1 %v6525_v20  ;;  %v6547_v20 = vld [vmem:[%s8584_s8 + $0x268] sm:$0xff] }
 0x66d   : > { %2354 = vmatpush.bf16.msrb.mxu3 %v6509_v23  ;;  %2393 = vmatpush.bf16.msra.mxu2 %v6533_v24  ;;  %v848_v24 = vperm.slane %v7572_v54, 6 }
 0x670   : > { %2368 = vmatpush.bf16.msra.mxu0 %v6516_v25  ;;  %2381 = vmatpush.bf16.msra.mxu1 %v6524_v26  ;;  %v6540_v25 = vld [vmem:[%s8584_s8 + $0x230] sm:$0xff] }
 0x671   : > { %2355 = vmatpush.bf16.msrb.mxu3 %v6508_v27  ;;  %2394 = vmatpush.bf16.msra.mxu2 %v6532_v28  ;;  %v6564_v27 = vld [vmem:[%s8584_s8 + $0x2f0] sm:$0xff] }
 0x674   : > { %2369 = vmatpush.bf16.msra.mxu0 %v6515_v29  ;;  %2382 = vmatpush.bf16.msra.mxu1 %v6523_v30  ;;  %v6546_v29 = vld [vmem:[%s8584_s8 + $0x260] sm:$0xff] }
 0x675   : > { %2356 = vmatpush.bf16.msrb.mxu3 %v6507_v31  ;;  %2395 = vmatpush.bf16.msra.mxu2 %v6531_v32  ;;  %v6554_v32 = vld [vmem:[%s8584_s8 + $0x2a0] sm:$0xff] }
 0x678   : > { %2370 = vmatpush.bf16.msra.mxu0 %v6514_v33  ;;  %2383 = vmatpush.bf16.msra.mxu1 %v6522_v34  ;;  %v6539_v34 = vld [vmem:[%s8584_s8 + $0x228] sm:$0xff] }
 0x679   : > { %2357 = vmatpush.bf16.msrb.mxu3 %v6506_v35  ;;  %2396 = vmatpush.bf16.msra.mxu2 %v6530_v36  ;;  %v6563_v36 = vld [vmem:[%s8584_s8 + $0x2e8] sm:$0xff] }
 0x67c   : > { %2371 = vmatpush.bf16.msra.mxu0 %v6513_v37  ;;  %2384 = vmatpush.bf16.msra.mxu1 %v6521_v38  ;;  %v846_v37 = vperm.slane %v7572_v54, 4 }
 0x67d   : > { %2358 = vmatpush.bf16.msrb.mxu3 %v6505_v41  ;;  %2397 = vmatpush.bf16.msra.mxu2 %v6529_v42  ;;  %v6553_v42 = vld [vmem:[%s8584_s8 + $0x298] sm:$0xff] }
 0x680   : > { %2372 = vmatpush.bf16.msra.mxu0 %v6512_v39  ;;  %2385 = vmatpush.bf16.msra.mxu1 %v6520_v40  ;;  %v849_v39 = vperm.slane %v7572_v54, 7  ;;  %v6545_v40 = vld [vmem:[%s8584_s8 + $0x258] sm:$0xff] }
 0x681   : > { %2359 = vmatpush.bf16.msrb.mxu3 %v6504_v45  ;;  %2398 = vmatpush.bf16.msra.mxu2 %v6528_v46  ;;  %v6538_v45 = vld [vmem:[%s8584_s8 + $0x220] sm:$0xff] }
 0x684   : > { %2373 = vmatpush.bf16.msra.mxu0 %v6511_v43  ;;  %2386 = vmatpush.bf16.msra.mxu1 %v6519_v44 }
 0x685   : > { %2360 = vmatpush.bf16.msrb.mxu3 %v6503_v50  ;;  %2399 = vmatpush.bf16.msra.mxu2 %v6527_v51 }
 0x688   : > { %2374 = vmatpush.bf16.msra.mxu0 %v6510_v48  ;;  %2387 = vmatpush.bf16.msra.mxu1 %v6518_v49  ;;  %v6562_v49 = vld [vmem:[%s8584_s8 + $0x2e0] sm:$0xff] }
 0x689   : > { %2361 = vmatpush.bf16.msrb.mxu3 %v6502_v52  ;;  %2400 = vmatpush.bf16.msra.mxu2 %v6526_v53  ;;  %v6544_v52 = vld [vmem:[%s8584_s8 + $0x250] sm:$0xff] }
 0x6a7   : > { %v1059_v57 = vpop.f32.mrf.mxu0 }
 0x6a8   : > { %v1060_v58 = vadd.f32 %v1059_v57, %v843_v55  ;;  %v1072_v59 = vpop.f32.mrf.mxu1  ;;  %v6552_v55 = vld [vmem:[%s8584_s8 + $0x290] sm:$0xff]  ;;  %v6537_v57 = vld [vmem:[%s8584_s8 + $0x218] sm:$0xff] }
 0x6a9   : > { %v1073_v61 = vadd.f32 %v1072_v59, %v844_v56 }
 0x6aa   : > { %v1246_v62 = vmax.f32 %v1060_v58, 0.0  ;;  %v7648_v58 = vld [vmem:[%s8583_s7 + $0x8] sm:$0xff] }
 0x6ab   : > { %v1247_v0 = vmax.f32 %v1073_v61, 0.0  ;;  %v6561_v61 = vld [vmem:[%s8584_s8 + $0x2d8] sm:$0xff] }
 0x6ac   : > { %v1262_v3 = vpack.c.bf16 %v1246_v62, %v1246_v62 }
 0x6ad   : > { %v1263_v5 = vpack.c.bf16 %v1247_v0, %v1247_v0  ;;  %v1046_v47 = vpop.f32.mrf.mxu3  ;;  %v6551_v0 = vld [vmem:[%s8584_s8 + $0x288] sm:$0xff] }
 0x6ae   : > { %v1047_v6 = vadd.f32 %v1046_v47, %v842_v7  ;;  %v1085_v8 = vpop.f32.mrf.mxu2  ;;  %2323 = vmatmul.bf16.vlgmr.msrb.gmra.mxu0 %v1262_v3  ;;  %v6543_v7 = vld [vmem:[%s8584_s8 + $0x248] sm:$0xff]  ;;  %v852_v3 = vperm.slane %v7648_v58, 2  ;;  %v6560_v47 = vld [vmem:[%s8584_s8 + $0x2d0] sm:$0xff] }
 0x6af   : > { %v1086_v9 = vadd.f32 %v1085_v8, %v845_v1  ;;  %2336 = vmatmul.bf16.vlgmr.msrb.gmra.mxu1 %v1263_v5  ;;  %2419 = vmatpush.bf16.msrb.mxu0 %v6549_v2  ;;  %v1061_v11 = vpop.f32.mrf.mxu0  ;;  %v851_v1 = vperm.slane %v7648_v58, 1  ;;  %v6542_v8 = vld [vmem:[%s8584_s8 + $0x240] sm:$0xff] }
 0x6b0   : > { %v1245_v10 = vmax.f32 %v1047_v6, 0.0  ;;  %2432 = vmatpush.bf16.msrb.mxu1 %v6557_v4  ;;  %v1074_v13 = vpop.f32.mrf.mxu1  ;;  %v6536_v4 = vld [vmem:[%s8584_s8 + $0x210] sm:$0xff] }
 0x6b1   : > { %v1248_v15 = vmax.f32 %v1086_v9, 0.0 }
 0x6b2   : > { %v1261_v17 = vpack.c.bf16 %v1245_v10, %v1245_v10  ;;  %v6581_v10 = vld [vmem:[%s8584_s8 + $0x378] sm:$0xff] }
 0x6b3   : > { %v1264_v19 = vpack.c.bf16 %v1248_v15, %v1248_v15  ;;  %2420 = vmatpush.bf16.msrb.mxu0 %v6548_v12  ;;  %v6550_v12 = vld [vmem:[%s8584_s8 + $0x280] sm:$0xff]  ;;  %v6535_v15 = vld [vmem:[%s8584_s8 + $0x208] sm:$0xff] }
 0x6b4   : > { %2433 = vmatpush.bf16.msrb.mxu1 %v6556_v14  ;;  %2310 = vmatmul.bf16.vlgmr.msra.gmra.mxu3 %v1261_v17  ;;  %v6589_v14 = vld [vmem:[%s8584_s8 + $0x3b8] sm:$0xff]  ;;  %v6559_v17 = vld [vmem:[%s8584_s8 + $0x2c8] sm:$0xff] }
 0x6b5   : > { %2349 = vmatmul.bf16.vlgmr.msrb.gmra.mxu2 %v1264_v19  ;;  %2406 = vmatpush.bf16.msra.mxu3 %v6541_v16  ;;  %v1048_v23 = vpop.f32.mrf.mxu3 }
 0x6b6   : > { %2445 = vmatpush.bf16.msrb.mxu2 %v6565_v18  ;;  %v1087_v26 = vpop.f32.mrf.mxu2  ;;  %v850_v18 = vperm.slane %v7648_v58, 0 }
 0x6b7   : > { %2421 = vmatpush.bf16.msrb.mxu0 %v6547_v20  ;;  %v1111_v28 = vpop.f32.mrf.mxu0  ;;  %v853_v20 = vperm.slane %v7648_v58, 3  ;;  %v6534_v26 = vld [vmem:[%s8584_s8 + $0x200] sm:$0xff] }
 0x6b8   : > { %2434 = vmatpush.bf16.msrb.mxu1 %v6555_v21  ;;  %v1112_v30 = vadd.f32 %v1111_v28, %v847_v22  ;;  %v1124_v31 = vpop.f32.mrf.mxu1  ;;  %v6580_v22 = vld [vmem:[%s8584_s8 + $0x370] sm:$0xff] }
 0x6b9   : > { %v1125_v33 = vadd.f32 %v1124_v31, %v848_v24  ;;  %2407 = vmatpush.bf16.msra.mxu3 %v6540_v25  ;;  %v6588_v25 = vld [vmem:[%s8584_s8 + $0x3b0] sm:$0xff] }
 0x6ba   : > { %v1250_v35 = vmax.f32 %v1112_v30, 0.0  ;;  %2446 = vmatpush.bf16.msrb.mxu2 %v6564_v27  ;;  %v6573_v30 = vld [vmem:[%s8584_s8 + $0x338] sm:$0xff] }
 0x6bb   : > { %v1251_v38 = vmax.f32 %v1125_v33, 0.0  ;;  %2422 = vmatpush.bf16.msrb.mxu0 %v6546_v29  ;;  %v6558_v29 = vld [vmem:[%s8584_s8 + $0x2c0] sm:$0xff]  ;;  %v6597_v33 = vld [vmem:[%s8584_s8 + $0x3f8] sm:$0xff] }
 0x6bc   : > { %v1266_v41 = vpack.c.bf16 %v1250_v35, %v1250_v35  ;;  %2435 = vmatpush.bf16.msrb.mxu1 %v6554_v32 }
 0x6bd   : > { %v1267_v43 = vpack.c.bf16 %v1251_v38, %v1251_v38  ;;  %2408 = vmatpush.bf16.msra.mxu3 %v6539_v34  ;;  %v1098_v44 = vpop.f32.mrf.mxu3  ;;  %v6587_v38 = vld [vmem:[%s8584_s8 + $0x3a8] sm:$0xff] }
 0x6be   : > { %2447 = vmatpush.bf16.msrb.mxu2 %v6563_v36  ;;  %v1099_v46 = vadd.f32 %v1098_v44, %v846_v37  ;;  %v1137_v48 = vpop.f32.mrf.mxu2  ;;  %2375 = vmatmul.bf16.vlgmr.msra.gmra.mxu0 %v1266_v41  ;;  %v6579_v36 = vld [vmem:[%s8584_s8 + $0x368] sm:$0xff] }
 0x6bf   : > { %v1138_v50 = vadd.f32 %v1137_v48, %v849_v39  ;;  %2388 = vmatmul.bf16.vlgmr.msra.gmra.mxu1 %v1267_v43  ;;  %2423 = vmatpush.bf16.msrb.mxu0 %v6545_v40  ;;  %v1113_v51 = vpop.f32.mrf.mxu0  ;;  %v6572_v40 = vld [vmem:[%s8584_s8 + $0x330] sm:$0xff]  ;;  %v6578_v43 = vld [vmem:[%s8584_s8 + $0x360] sm:$0xff]  ;;  %v6571_v48 = vld [vmem:[%s8584_s8 + $0x328] sm:$0xff] }
 0x6c0   : > { %v1249_v53 = vmax.f32 %v1099_v46, 0.0  ;;  %2436 = vmatpush.bf16.msrb.mxu1 %v6553_v42  ;;  %v1126_v54 = vpop.f32.mrf.mxu1  ;;  %v6596_v42 = vld [vmem:[%s8584_s8 + $0x3f0] sm:$0xff] }
 0x6c1   : > { %v1252_v56 = vmax.f32 %v1138_v50, 0.0  ;;  %2409 = vmatpush.bf16.msra.mxu3 %v6538_v45  ;;  %v6586_v45 = vld [vmem:[%s8584_s8 + $0x3a0] sm:$0xff]  ;;  %v6595_v50 = vld [vmem:[%s8584_s8 + $0x3e8] sm:$0xff] }
 0x6c2   : > { %v1265_v59 = vpack.c.bf16 %v1249_v53, %v1249_v53  ;;  %2448 = vmatpush.bf16.msrb.mxu2 %v6562_v49  ;;  %v6585_v53 = vld [vmem:[%s8584_s8 + $0x398] sm:$0xff]  ;;  %v6570_v54 = vld [vmem:[%s8584_s8 + $0x320] sm:$0xff] }
 0x6c3   : > { %v1268_v62 = vpack.c.bf16 %v1252_v56, %v1252_v56  ;;  %2424 = vmatpush.bf16.msrb.mxu0 %v6544_v52  ;;  %v6577_v52 = vld [vmem:[%s8584_s8 + $0x358] sm:$0xff]  ;;  %v6576_v56 = vld [vmem:[%s8584_s8 + $0x350] sm:$0xff] }
 0x6c4   : > { %2437 = vmatpush.bf16.msrb.mxu1 %v6552_v55  ;;  %2362 = vmatmul.bf16.vlgmr.msrb.gmra.mxu3 %v1265_v59  ;;  %v6594_v55 = vld [vmem:[%s8584_s8 + $0x3e0] sm:$0xff] }
 0x6c5   : > { %2401 = vmatmul.bf16.vlgmr.msra.gmra.mxu2 %v1268_v62  ;;  %2410 = vmatpush.bf16.msra.mxu3 %v6537_v57  ;;  %v1100_v2 = vpop.f32.mrf.mxu3  ;;  %v855_v57 = vperm.slane %v7648_v58, 5  ;;  %v856_v62 = vperm.slane %v7648_v58, 6 }
 0x6c6   : > { %2449 = vmatpush.bf16.msrb.mxu2 %v6561_v61  ;;  %v1139_v5 = vpop.f32.mrf.mxu2  ;;  %v6584_v61 = vld [vmem:[%s8584_s8 + $0x390] sm:$0xff]  ;;  %v6593_v2 = vld [vmem:[%s8584_s8 + $0x3d8] sm:$0xff] }
 0x6c7   : > { %2425 = vmatpush.bf16.msrb.mxu0 %v6543_v7  ;;  %v1163_v6 = vpop.f32.mrf.mxu0 }
 0x6c8   : > { %2438 = vmatpush.bf16.msrb.mxu1 %v6551_v0  ;;  %v1164_v9 = vadd.f32 %v1163_v6, %v851_v1  ;;  %v1176_v11 = vpop.f32.mrf.mxu1  ;;  %v6569_v0 = vld [vmem:[%s8584_s8 + $0x318] sm:$0xff] }
 0x6c9   : > { %v1177_v13 = vadd.f32 %v1176_v11, %v852_v3  ;;  %2411 = vmatpush.bf16.msra.mxu3 %v6536_v4  ;;  %v6575_v4 = vld [vmem:[%s8584_s8 + $0x348] sm:$0xff]  ;;  %v6592_v11 = vld [vmem:[%s8584_s8 + $0x3d0] sm:$0xff] }
 0x6ca   : > { %v1254_v16 = vmax.f32 %v1164_v9, 0.0  ;;  %2450 = vmatpush.bf16.msrb.mxu2 %v6560_v47  ;;  %v6583_v47 = vld [vmem:[%s8584_s8 + $0x388] sm:$0xff]  ;;  %v854_v9 = vperm.slane %v7648_v58, 4 }
 0x6cb   : > { %v1255_v19 = vmax.f32 %v1177_v13, 0.0  ;;  %2426 = vmatpush.bf16.msrb.mxu0 %v6542_v8  ;;  %v6568_v8 = vld [vmem:[%s8584_s8 + $0x310] sm:$0xff] }
 0x6cc   : > { %v1270_v21 = vpack.c.bf16 %v1254_v16, %v1254_v16  ;;  %2439 = vmatpush.bf16.msrb.mxu1 %v6550_v12  ;;  %v857_v12 = vperm.slane %v7648_v58, 7 }
 0x6cd   : > { %v1271_v23 = vpack.c.bf16 %v1255_v19, %v1255_v19  ;;  %2412 = vmatpush.bf16.msra.mxu3 %v6535_v15  ;;  %v1150_v24 = vpop.f32.mrf.mxu3  ;;  %v6582_v15 = vld [vmem:[%s8584_s8 + $0x380] sm:$0xff]  ;;  %v6591_v19 = vld [vmem:[%s8584_s8 + $0x3c8] sm:$0xff] }
 0x6ce   : > { %2451 = vmatpush.bf16.msrb.mxu2 %v6559_v17  ;;  %v1151_v27 = vadd.f32 %v1150_v24, %v850_v18  ;;  %v1189_v28 = vpop.f32.mrf.mxu2  ;;  %2427 = vmatmul.bf16.vlgmr.msrb.gmra.mxu0 %v1270_v21  ;;  %v6567_v18 = vld [vmem:[%s8584_s8 + $0x308] sm:$0xff] }
 0x6cf   : > { %2471 = vmatpush.bf16.msra.mxu0 %v6581_v10  ;;  %v1190_v31 = vadd.f32 %v1189_v28, %v853_v20  ;;  %2440 = vmatmul.bf16.vlgmr.msrb.gmra.mxu1 %v1271_v23  ;;  %v1165_v32 = vpop.f32.mrf.mxu0  ;;  %v6574_v10 = vld [vmem:[%s8584_s8 + $0x340] sm:$0xff] }
 0x6d0   : > { %2484 = vmatpush.bf16.msra.mxu1 %v6589_v14  ;;  %v1253_v34 = vmax.f32 %v1151_v27, 0.0  ;;  %v1178_v35 = vpop.f32.mrf.mxu1  ;;  %v6566_v23 = vld [vmem:[%s8584_s8 + $0x300] sm:$0xff] }
 0x6d1   : > { %v1256_v37 = vmax.f32 %v1190_v31, 0.0  ;;  %2413 = vmatpush.bf16.msra.mxu3 %v6534_v26 }
 0x6d2   : > { %v1269_v39 = vpack.c.bf16 %v1253_v34, %v1253_v34  ;;  %2452 = vmatpush.bf16.msrb.mxu2 %v6558_v29 }
 0x6d3   : > { %2472 = vmatpush.bf16.msra.mxu0 %v6580_v22  ;;  %v1272_v41 = vpack.c.bf16 %v1256_v37, %v1256_v37 }
 0x6d4   : > { %2485 = vmatpush.bf16.msra.mxu1 %v6588_v25  ;;  %2414 = vmatmul.bf16.vlgmr.msra.gmra.mxu3 %v1269_v39  ;;  %v6590_v25 = vld [vmem:[%s8584_s8 + $0x3c0] sm:$0xff] }
 0x6d5   : > { %2458 = vmatpush.bf16.msrb.mxu3 %v6573_v30  ;;  %2453 = vmatmul.bf16.vlgmr.msrb.gmra.mxu2 %v1272_v41  ;;  %v1152_v44 = vpop.f32.mrf.mxu3  ;;  %v7790_v41 = vld [vmem:[%s8585_s9] sm:$0x3f] }
 0x6d6   : > { %2497 = vmatpush.bf16.msra.mxu2 %v6597_v33  ;;  %v1191_v46 = vpop.f32.mrf.mxu2 }
 0x6d7   : > { %2473 = vmatpush.bf16.msra.mxu0 %v6579_v36  ;;  %v1215_v49 = vpop.f32.mrf.mxu0 }
 0x6d8   : > { %2486 = vmatpush.bf16.msra.mxu1 %v6587_v38  ;;  %v1228_v51 = vpop.f32.mrf.mxu1  ;;  %v1216_v5 = vadd.f32 %v1215_v49, %v855_v57 }
 0x6d9   : > { %2459 = vmatpush.bf16.msrb.mxu3 %v6572_v40  ;;  %v1229_v6 = vadd.f32 %v1228_v51, %v856_v62 }
 0x6da   : > { %2498 = vmatpush.bf16.msra.mxu2 %v6596_v42  ;;  %v1258_v13 = vmax.f32 %v1216_v5, 0.0  ;;  %v1533_v42 = vperm.slane %v7790_v41, 3 }
 0x6db   : > { %2474 = vmatpush.bf16.msra.mxu0 %v6578_v43  ;;  %v1259_v16 = vmax.f32 %v1229_v6, 0.0 }
 0x6dc   : > { %2487 = vmatpush.bf16.msra.mxu1 %v6586_v45  ;;  %v1274_v21 = vpack.c.bf16 %v1258_v13, %v1258_v13 }
 0x6dd   : > { %2460 = vmatpush.bf16.msrb.mxu3 %v6571_v48  ;;  %v1202_v59 = vpop.f32.mrf.mxu3  ;;  %v1275_v22 = vpack.c.bf16 %v1259_v16, %v1259_v16 }
 0x6de   : > { %2499 = vmatpush.bf16.msra.mxu2 %v6595_v50  ;;  %v1241_v7 = vpop.f32.mrf.mxu2  ;;  %v1203_v58 = vadd.f32 %v1202_v59, %v854_v9 }
 0x6df   : > { %2475 = vmatpush.bf16.msra.mxu0 %v6577_v52  ;;  %v1217_v1 = vpop.f32.mrf.mxu0  ;;  %v1242_v20 = vadd.f32 %v1241_v7, %v857_v12 }
 0x6e0   : > { %2488 = vmatpush.bf16.msra.mxu1 %v6585_v53  ;;  %v1230_v3 = vpop.f32.mrf.mxu1  ;;  %v1257_v24 = vmax.f32 %v1203_v58, 0.0 }
 0x6e1   : > { %2461 = vmatpush.bf16.msrb.mxu3 %v6570_v54  ;;  %v1260_v26 = vmax.f32 %v1242_v20, 0.0 }
 0x6e2   : > { %2500 = vmatpush.bf16.msra.mxu2 %v6594_v55  ;;  %v1273_v27 = vpack.c.bf16 %v1257_v24, %v1257_v24  ;;  %v6599_v24 = vld [vmem:[%s8606_s3 + $0x18] sm:$0xff] }
 0x6e3   : > { %2476 = vmatpush.bf16.msra.mxu0 %v6576_v56  ;;  %v1276_v28 = vpack.c.bf16 %v1260_v26, %v1260_v26 }
 0x6e4   : > { %2489 = vmatpush.bf16.msra.mxu1 %v6584_v61 }
 0x6e5   : > { %2462 = vmatpush.bf16.msrb.mxu3 %v6569_v0  ;;  %v1204_v14 = vpop.f32.mrf.mxu3 }
 0x6e6   : > { %2501 = vmatpush.bf16.msra.mxu2 %v6593_v2  ;;  %v1243_v17 = vpop.f32.mrf.mxu2 }
 0x6e7   : > { %2477 = vmatpush.bf16.msra.mxu0 %v6575_v4 }
 0x6e8   : > { %2490 = vmatpush.bf16.msra.mxu1 %v6583_v47 }
 0x6e9   : > { %2463 = vmatpush.bf16.msrb.mxu3 %v6568_v8 }
 0x6ea   : > { %2502 = vmatpush.bf16.msra.mxu2 %v6592_v11 }
 0x6eb   : > { %2478 = vmatpush.bf16.msra.mxu0 %v6574_v10 }
 0x6ec   : > { %2491 = vmatpush.bf16.msra.mxu1 %v6582_v15 }
 0x6ed   : > { %2464 = vmatpush.bf16.msrb.mxu3 %v6567_v18 }
 0x6ee   : > { %2503 = vmatpush.bf16.msra.mxu2 %v6591_v19  ;;  %2479 = vmatmul.bf16.vlgmr.msra.gmra.mxu0 %v1274_v21 }
 0x6ef   : > { %2492 = vmatmul.bf16.vlgmr.msra.gmra.mxu1 %v1275_v22 }
 0x6f1   : > { %2465 = vmatpush.bf16.msrb.mxu3 %v6566_v23 }
 0x6f2   : > { %2504 = vmatpush.bf16.msra.mxu2 %v6590_v25 }
 0x6f4   : > { %2466 = vmatmul.bf16.vlgmr.msrb.gmra.mxu3 %v1273_v27 }
 0x6f5   : > { %2505 = vmatmul.bf16.vlgmr.msra.gmra.mxu2 %v1276_v28  ;;  %2571 = vmatpush.bf16.msra.mxu3 %v6599_v24 }
 0x72b   : > { %v2324_v29 = vpop.f32.mrf.mxu0 }
 0x72c   : > { %v2337_v30 = vpop.f32.mrf.mxu1 }
 0x733   : > { %v2326_v31 = vpop.f32.mrf.mxu0 }
 0x734   : > { %v2339_v32 = vpop.f32.mrf.mxu1 }
 0x737   : > { %v2311_v33 = vpop.f32.mrf.mxu3 }
 0x738   : > { %v2350_v34 = vpop.f32.mrf.mxu2  ;;  %v2312_v45 = vadd.f32 %v2311_v33, %v1533_v42  ;;  %v6813_v42 = vld [vmem:[%s8580_s4 + $0x1] ss:$0 sm:$0xff] }
 0x73a   : > { %v2325_v49 = vadd.f32 %v2324_v29, %v2312_v45 }
 0x73b   : > { %v2376_v35 = vpop.f32.mrf.mxu0 }
 0x73c   : > { %v2389_v36 = vpop.f32.mrf.mxu1  ;;  %v2338_v52 = vadd.f32 %v2337_v30, %v2325_v49 }
 0x73e   : > { %v2351_v55 = vadd.f32 %v2350_v34, %v2338_v52  ;;  %v2533_v34 = vperm.slane %v7790_v41, 4 }
 0x73f   : > { %v2313_v37 = vpop.f32.mrf.mxu3 }
 0x740   : > { %v2352_v38 = vpop.f32.mrf.mxu2 }
 0x743   : > { %v2378_v39 = vpop.f32.mrf.mxu0 }
 0x744   : > { %v2391_v40 = vpop.f32.mrf.mxu1 }
 0x747   : > { %v2363_v43 = vpop.f32.mrf.mxu3 }
 0x748   : > { %v2402_v44 = vpop.f32.mrf.mxu2  ;;  %v2364_v59 = vadd.f32 %v2363_v43, %v2351_v55 }
 0x74a   : > { %v2377_v61 = vadd.f32 %v2376_v35, %v2364_v59 }
 0x74b   : > { %v2428_v46 = vpop.f32.mrf.mxu0 }
 0x74c   : > { %v2441_v48 = vpop.f32.mrf.mxu1  ;;  %v2390_v0 = vadd.f32 %v2389_v36, %v2377_v61  ;;  %v2535_v36 = vperm.slane %v7790_v41, 5 }
 0x74e   : > { %v2403_v1 = vadd.f32 %v2402_v44, %v2390_v0 }
 0x74f   : > { %v2365_v50 = vpop.f32.mrf.mxu3 }
 0x750   : > { %v2404_v51 = vpop.f32.mrf.mxu2 }
 0x753   : > { %v2430_v53 = vpop.f32.mrf.mxu0 }
 0x754   : > { %v2443_v54 = vpop.f32.mrf.mxu1 }
 0x757   : > { %v2415_v56 = vpop.f32.mrf.mxu3 }
 0x758   : > { %v2454_v57 = vpop.f32.mrf.mxu2  ;;  %v2416_v2 = vadd.f32 %v2415_v56, %v2403_v1 }
 0x75a   : > { %v2429_v5 = vadd.f32 %v2428_v46, %v2416_v2 }
 0x75c   : > { %v2442_v47 = vadd.f32 %v2441_v48, %v2429_v5 }
 0x75e   : > { %v2455_v9 = vadd.f32 %v2454_v57, %v2442_v47 }
 0x75f   : > { %v2417_v62 = vpop.f32.mrf.mxu3 }
 0x760   : > { %v2456_v7 = vpop.f32.mrf.mxu2 }
 0x76b   : > { %v2480_v3 = vpop.f32.mrf.mxu0 }
 0x76c   : > { %v2493_v4 = vpop.f32.mrf.mxu1 }
 0x773   : > { %v2482_v6 = vpop.f32.mrf.mxu0 }
 0x774   : > { %v2495_v8 = vpop.f32.mrf.mxu1 }
 0x777   : > { %v2467_v11 = vpop.f32.mrf.mxu3 }
 0x778   : > { %v2468_v12 = vadd.f32 %v2467_v11, %v2455_v9  ;;  %v2506_v10 = vpop.f32.mrf.mxu2 }
 0x77a   : > { %v2481_v13 = vadd.f32 %v2480_v3, %v2468_v12 }
 0x77c   : > { %v2494_v14 = vadd.f32 %v2493_v4, %v2481_v13 }
 0x77e   : > { %v2507_v15 = vadd.f32 %v2506_v10, %v2494_v14 }
 0x77f   : > { %v2469_v16 = vpop.f32.mrf.mxu3 }
 0x780   : > { %v2508_v17 = vpop.f32.mrf.mxu2  ;;  %v2510_v18 = vadd.f32 %v2507_v15, %v7258_v63  ;;  %v6598_v63 = vld [vmem:[%s8606_s3 + $0x10] sm:$0xff] }
 0x781   : > { %2572 = vmatpush.bf16.msra.mxu3 %v6598_v63 }
 0x782   : > { %v2511_v58 = vsel %vm460_vm1, %v2510_v18, 0.0 }
 0x783   : > { %2512 = vadd.xlane.f32.xlu1 %v2511_v58 }
 0x7f6   : > { %v2513_v19 = vpop.xlane.xlu1 %2512 }
 0x7f7   : > { %v2514_v20 = vmul.f32 %v2513_v19, %v7135_v60 }
 0x7f9   : > { %v2515_v21 = vsub.f32 %v2510_v18, %v2514_v20 }
 0x7fb   : > { %v2516_v22 = vmul.f32 %v2515_v21, %v2515_v21 }
 0x7fd   : > { %v2517_v23 = vsel %vm460_vm1, %v2516_v22, 0.0 }
 0x7fe   : > { %2518 = vadd.xlane.f32.xlu1 %v2517_v23 }
 0x871   : > { %v2519_v25 = vpop.xlane.xlu1 %2518 }
 0x872   : > { %v2520_v26 = vmul.f32 %v2519_v25, %v7135_v60 }
 0x874   : > { %v2521_v27 = vadd.f32 1e-05, %v2520_v26 }
 0x876   : > { %6835 = vrsqrt.f32 %v2521_v27  ;;  %vm2528_vm10 = vweird.f32 %v2521_v27 }
 0x87c   : > { %v6836_v28 = vpop.eup %6835 }
 0x87d   : > { %v2523_v29 = vmul.f32 %v6836_v28, %v2521_v27  ;;  %vm2529_vm9 = vweird.f32 %v6836_v28 }
 0x87e   : > { %vm2530_vm11 = vmor %vm2528_vm10, %vm2529_vm9 }
 0x87f   : > { %v2524_v30 = vmul.f32 %v6836_v28, %v2523_v29 }
 0x881   : > { %v2525_v31 = vmul.f32 0.5, %v2524_v30 }
 0x883   : > { %v2526_v32 = vsub.f32 1.5, %v2525_v31 }
 0x885   : > { %v2527_v33 = vmul.f32 %v6836_v28, %v2526_v32 }
 0x887   : > { %v2531_v35 = vsel %vm2530_vm11, %v6836_v28, %v2527_v33 }
 0x888   : > { %v2532_v37 = vmul.f32 %v2531_v35, %v2515_v21 }
 0x88a   : > { %v2534_v38 = vmul.f32 %v2533_v34, %v2532_v37 }
 0x88c   : > { %v7806_v39 = vadd.f32 %v2535_v36, %v2534_v38 }
 0x88e   : > { %v2539_v40 = vpack.c.bf16 %v7806_v39, %v7806_v39 }
 0x890   : > { %5452 = vmatmul.msk.bf16.vlgmr.msra.gmra.mxu3 %vm460_vm1, %v2539_v40 }
 0x913   : > { %v2574_v43 = vpop.f32.mrf.mxu3 }
 0x914   : > { %v2575_v44 = vadd.f32 %v6813_v42, %v2574_v43 }
 0x916   : > { %2579 = vrot.lane.b32.xlu2 %v2575_v44, %s8609_s28  ;;  %2585 = vrot.lane.b32.xlu0 %v2575_v44, %s8610_s29  ;;  %v2588_v59 = vpack.c.bf16 %v2575_v44, %v2575_v44  ;;  %s402_s28 = sand.u32 1, %s6913_s22   ;;  %s6430_s29 = sshll.u32 %s7018_s25, 3 }
 0x917   : > { %2582 = vrot.lane.b32.xlu1 %v2575_v44, %s8611_s20  ;;  %s4749_s20 = sshll.u32 %s402_s28, 3  ;;  %s4671_s25 = scalar_lea.sflag [#allocation3], %s402_s28 }
 0x918   : > { %v2593_v61 = vunpack.c.l.b16 %v2588_v59  ;;  %s404_s2 = scalar_lea.vmem [#allocation2], %s4749_s20  ;;  %s6879_s20 = scalar_lea.hbm %s8588_s12, 16 }
 0x919   : > { %s4683_s0 = sshll.u32 %s404_s2, 4  ;;  %s4684_s0 = int_to_ptr.vmem [resolvable:$true] %s4683_s0 }
 0x91a   : > { %v2594_v62 = vpack.c.b16 %v2593_v61, %v2593_v61 }
 0x91b   : > { %v2576_v41 = vpop.f32.mrf.mxu3 }
 0x970   : > { %v2580_v45 = vpop.permute.xlu2 %2579 }
 0x971   : > { %v2589_v46 = vpack.c.bf16 %v2580_v45, %v2580_v45 }
 0x973   : > { %v2617_v48 = vunpack.c.l.b16 %v2589_v46 }
 0x975   : > { %v2618_v49 = vpack.c.b16 %v2617_v48, %v2617_v48 }
 0x977   : > { %2619 = vrot.lane.b32.xlu2 %v2618_v49, %s8612_s15 }
 0x988   : > { %v2586_v50 = vpop.permute.xlu0 %2585 }
 0x989   : > { %v2591_v51 = vpack.c.bf16 %v2586_v50, %v2586_v50  ;;  %v2583_v52 = vpop.permute.xlu1 %2582 }
 0x98a   : > { %v2590_v53 = vpack.c.bf16 %v2583_v52, %v2583_v52 }
 0x98b   : > { %v2665_v54 = vunpack.c.l.b16 %v2591_v51 }
 0x98c   : > { %v2641_v55 = vunpack.c.l.b16 %v2590_v53 }
 0x98d   : > { %v2666_v56 = vpack.c.b16 %v2665_v54, %v2665_v54 }
 0x98e   : > { %v2642_v57 = vpack.c.b16 %v2641_v55, %v2641_v55 }
 0x98f   : > { %2667 = vrot.lane.b32.xlu1 %v2666_v56, %s8612_s15 }
 0x990   : > { %2643 = vrot.lane.b32.xlu0 %v2642_v57, %s8612_s15 }
 0x998   : > { %2595 = vrot.lane.b32.xlu0 %v2594_v62, %s8612_s15 }
 0x9d1   : > { %v2620_v7 = vpop.permute.xlu2 %2619 }
 0x9d2   : > { %v2625_v0 = vsel %vm496_vm2, %v2620_v7, 0 }
 0x9d3   : > { %2634 = vmatpush.bf16.xpose.msrb.mxu1 %v2625_v0 }
 0x9da   : > { %5454 = vmatmul.msk.bf16.vlgmr.msrb.gmra.mxu1 %vm496_vm2, %v2589_v46 }
 0xa01   : > { %v2668_v1 = vpop.permute.xlu1 %2667 }
 0xa02   : > { %v2644_v2 = vpop.permute.xlu0 %2643  ;;  %v2673_v3 = vsel %vm496_vm2, %v2668_v1, 0 }
 0xa03   : > { %v2649_v4 = vsel %vm496_vm2, %v2644_v2, 0  ;;  %2682 = vmatpush.bf16.xpose.msrb.mxu3 %v2673_v3 }
 0xa04   : > { %2658 = vmatpush.bf16.xpose.msrb.mxu2 %v2649_v4 }
 0xa0a   : > { %v2596_v5 = vpop.permute.xlu0 %2595  ;;  %5456 = vmatmul.msk.bf16.vlgmr.msrb.gmra.mxu3 %vm496_vm2, %v2591_v51 }
 0xa0b   : > { %v2601_v47 = vsel %vm496_vm2, %v2596_v5, 0  ;;  %5455 = vmatmul.msk.bf16.vlgmr.msrb.gmra.mxu2 %vm496_vm2, %v2590_v53 }
 0xa0c   : > { %2610 = vmatpush.bf16.xpose.msrb.mxu0 %v2601_v47 }
 0xa13   : > { %5453 = vmatmul.msk.bf16.vlgmr.msrb.gmra.mxu0 %vm496_vm2, %v2588_v59 }
 0xa57   : > { %v2636_v6 = vpop.f32.mrf.mxu1 }
 0xa58   : > { %v2691_v8 = vsel %vm496_vm2, %v2636_v6, -inf }
 0xa59   : > { %2692 = vmax.xlane.f32.xlu0 %v2691_v8  ;;  %v6601_v8 = vld [vmem:[%s8581_s5 + $0x18] sm:$0xff] }
 0xa5f   : > { %v2638_v9 = vpop.f32.mrf.mxu1 }
 0xa8d   : > { %v2684_v11 = vpop.f32.mrf.mxu3 }
 0xa8e   : > { %v2660_v12 = vpop.f32.mrf.mxu2  ;;  %v2697_v10 = vsel %vm496_vm2, %v2684_v11, -inf }
 0xa8f   : > { %v2694_v13 = vsel %vm496_vm2, %v2660_v12, -inf  ;;  %2698 = vmax.xlane.f32.xlu2 %v2697_v10 }
 0xa90   : > { %2695 = vmax.xlane.f32.xlu1 %v2694_v13  ;;  %v2612_v14 = vpop.f32.mrf.mxu0 }
 0xa91   : > { %v2688_v17 = vsel %vm496_vm2, %v2612_v14, -inf }
 0xa95   : > { %v2686_v15 = vpop.f32.mrf.mxu3 }
 0xa96   : > { %v2662_v16 = vpop.f32.mrf.mxu2 }
 0xa98   : > { %2689 = vmax.xlane.f32.xlu1 %v2688_v17  ;;  %v2614_v18 = vpop.f32.mrf.mxu0 }
 0xa99   : > { %v7865_v18 = vld [vmem:[%s8585_s9 + $0x8] sm:$0x3f] }
 0xacc   : > { %v2693_v58 = vpop.xlane.xlu0 %2692 }
 0xacd   : > { %v2701_v19 = vsub.f32 %v2636_v6, %v2693_v58  ;;  %v2841_v58 = vperm.slane %v7865_v18, 0 }
 0xacf   : > { %v2706_v20 = vmul.f32 1.442695, %v2701_v19 }
 0xad1   : > { %6837 = vpow2.f32 %v2706_v20 }
 0xad7   : > { %v6838_v21 = vpop.eup %6837 }
 0xad8   : > { %v2715_v22 = vsel %vm496_vm2, %v6838_v21, 0.0 }
 0xad9   : > { %2716 = vadd.xlane.f32.xlu1 %v2715_v22 }
 0xaf2   : > { %2757 = vrot.lane.b32.xlu1 %v2618_v49, %s8613_s17 }
 0xb02   : > { %v2699_v23 = vpop.xlane.xlu2 %2698 }
 0xb03   : > { %v2703_v24 = vsub.f32 %v2684_v11, %v2699_v23  ;;  %v2696_v63 = vpop.xlane.xlu1 %2695  ;;  %v6600_v11 = vld [vmem:[%s8581_s5 + $0x10] sm:$0xff] }
 0xb04   : > { %v2702_v25 = vsub.f32 %v2660_v12, %v2696_v63 }
 0xb05   : > { %v2710_v26 = vmul.f32 1.442695, %v2703_v24 }
 0xb06   : > { %v2708_v27 = vmul.f32 1.442695, %v2702_v25 }
 0xb07   : > { %6839 = vpow2.f32 %v2710_v26 }
 0xb08   : > { %6841 = vpow2.f32 %v2708_v27 }
 0xb0b   : > { %v2690_v32 = vpop.xlane.xlu1 %2689 }
 0xb0c   : > { %v2700_v33 = vsub.f32 %v2612_v14, %v2690_v32  ;;  %v5582_v32 = vld [vmem:[%s8582_s6 + $0x188] sm:$0xf] }
 0xb0d   : > { %v6840_v28 = vpop.eup %6839 }
 0xb0e   : > { %v6842_v29 = vpop.eup %6841  ;;  %v2721_v30 = vsel %vm496_vm2, %v6840_v28, 0.0  ;;  %v2704_v34 = vmul.f32 1.442695, %v2700_v33  ;;  %v6627_v33 = vld [vmem:[%s8582_s6 + $0x1c4] sm:$0xf0] }
 0xb0f   : > { %v2718_v31 = vsel %vm496_vm2, %v6842_v29, 0.0  ;;  %2722 = vadd.xlane.f32.xlu0 %v2721_v30 }
 0xb10   : > { %2719 = vadd.xlane.f32.xlu2 %v2718_v31  ;;  %6843 = vpow2.f32 %v2704_v34  ;;  %v5576_v31 = vld [vmem:[%s8582_s6 + $0x1c0] sm:$0xf0] }
 0xb16   : > { %v6844_v35 = vpop.eup %6843 }
 0xb17   : > { %v2712_v36 = vsel %vm496_vm2, %v6844_v35, 0.0 }
 0xb23   : > { %2799 = vrot.lane.b32.xlu0 %v2666_v56, %s8613_s17 }
 0xb28   : > { %2778 = vrot.lane.b32.xlu2 %v2642_v57, %s8613_s17 }
 0xb30   : > { %2736 = vrot.lane.b32.xlu2 %v2594_v62, %s8613_s17 }
 0xb4c   : > { %v2717_v37 = vpop.xlane.xlu1 %2716 }
 0xb4d   : > { %2713 = vadd.xlane.f32.xlu0 %v2712_v36  ;;  %6845 = vrcp.f32 %v2717_v37  ;;  %v6619_v36 = vld [vmem:[%s8582_s6 + $0x18c] sm:$0xf] }
 0xb4e   : > { %v5584_v37 = vld [vmem:[%s8582_s6 + $0x1c8] sm:$0xf0] }
 0xb53   : > { %v6846_v38 = vpop.eup %6845 }
 0xb54   : > { %v2729_v40 = vmul.f32 %v6846_v38, %v6838_v21  ;;  %v5587_v38 = vor.u32 %v6619_v36, %v5584_v37 }
 0xb56   : > { %v2733_v44 = vpack.c.bf16 %v2729_v40, %v2729_v40  ;;  %v5510_v40 = vld [vmem:[%s8582_s6 + $0x100] sm:$0xf] }
 0xb64   : > { %v2758_v42 = vpop.permute.xlu1 %2757 }
 0xb65   : > { %v2763_v43 = vsel %vm641_vm3, %v2758_v42, 0  ;;  %v6610_v42 = vld [vmem:[%s8582_s6 + $0x13c] sm:$0xf0] }
 0xb66   : > { %2772 = vmatpush.bf16.msra.mxu1 %v2763_v43  ;;  %v6602_v43 = vld [vmem:[%s8582_s6 + $0x104] sm:$0xf] }
 0xb69   : > { %5458 = vmatmul.msk.bf16.vlgmr.msra.gmra.mxu1 %vm496_vm2, %v2733_v44  ;;  %v5511_v44 = vor.u32 %v6610_v42, %v5510_v40  ;;  %v6614_v40 = vld [vmem:[%s8582_s6 + $0x15c] sm:$0xf0] }
 0xb82   : > { %v2723_v45 = vpop.xlane.xlu0 %2722 }
 0xb83   : > { %v2720_v41 = vpop.xlane.xlu2 %2719 }
 0xb84   : > { %6847 = vrcp.f32 %v2720_v41  ;;  %v5512_v41 = vld [vmem:[%s8582_s6 + $0x140] sm:$0xf0] }
 0xb85   : > { %6849 = vrcp.f32 %v2723_v45  ;;  %v5518_v45 = vld [vmem:[%s8582_s6 + $0x108] sm:$0xf] }
 0xb8a   : > { %v6848_v46 = vpop.eup %6847 }
 0xb8b   : > { %v2730_v48 = vmul.f32 %v6848_v46, %v6842_v29  ;;  %v2779_v49 = vpop.permute.xlu2 %2778  ;;  %v6850_v52 = vpop.eup %6849  ;;  %v6618_v29 = vld [vmem:[%s8582_s6 + $0x184] sm:$0xf]  ;;  %v6611_v46 = vld [vmem:[%s8582_s6 + $0x144] sm:$0xf0] }
 0xb8c   : > { %v2784_v50 = vsel %vm641_vm3, %v2779_v49, 0  ;;  %v2731_v54 = vmul.f32 %v6850_v52, %v6840_v28  ;;  %v5574_v28 = vld [vmem:[%s8582_s6 + $0x180] sm:$0xf]  ;;  %v5579_v34 = vor.u32 %v6618_v29, %v5576_v31  ;;  %v5519_v49 = vor.u32 %v6611_v46, %v5518_v45  ;;  %v5608_v31 = vld [vmem:[%s8582_s6 + $0x1e0] sm:$0xf0] }
 0xb8d   : > { %v2734_v51 = vpack.c.bf16 %v2730_v48, %v2730_v48  ;;  %2793 = vmatpush.bf16.msra.mxu2 %v2784_v50  ;;  %v5515_v48 = vor.u32 %v6602_v43, %v5512_v41  ;;  %v6603_v50 = vld [vmem:[%s8582_s6 + $0x10c] sm:$0xf]  ;;  %v6630_v29 = vld [vmem:[%s8582_s6 + $0x1dc] sm:$0xf0]  ;;  %v5544_v41 = vld [vmem:[%s8582_s6 + $0x160] sm:$0xf0] }
 0xb8e   : > { %v2735_v59 = vpack.c.bf16 %v2731_v54, %v2731_v54  ;;  %v5590_v54 = vld [vmem:[%s8582_s6 + $0x190] sm:$0xf]  ;;  %v5550_v45 = vld [vmem:[%s8582_s6 + $0x128] sm:$0xf] }
 0xb8f   : > { %v6615_v46 = vld [vmem:[%s8582_s6 + $0x164] sm:$0xf0] }
 0xb90   : > { %5459 = vmatmul.msk.bf16.vlgmr.msra.gmra.mxu2 %vm496_vm2, %v2734_v51  ;;  %v5520_v51 = vld [vmem:[%s8582_s6 + $0x148] sm:$0xf0] }
 0xb91   : > { %3150 = vmatpush.bf16.msrb.mxu2 %v5579_v34  ;;  %v5523_v52 = vor.u32 %v6603_v50, %v5520_v51  ;;  %v5616_v34 = vld [vmem:[%s8582_s6 + $0x1e8] sm:$0xf0] }
 0xb93   : > { %v2737_v53 = vpop.permute.xlu2 %2736 }
 0xb94   : > { %v2742_v55 = vsel %vm641_vm3, %v2737_v53, 0 }
 0xb95   : > { %2751 = vmatpush.bf16.msra.mxu0 %v2742_v55  ;;  %v2800_v56 = vpop.permute.xlu0 %2799  ;;  %3151 = vmatpush.bf16.msrb.mxu2 %v5515_v48  ;;  %v6628_v55 = vld [vmem:[%s8582_s6 + $0x1cc] sm:$0xf0]  ;;  %v6607_v48 = vld [vmem:[%s8582_s6 + $0x12c] sm:$0xf] }
 0xb96   : > { %v2805_v57 = vsel %vm641_vm3, %v2800_v56, 0  ;;  %v6620_v56 = vld [vmem:[%s8582_s6 + $0x194] sm:$0xf] }
 0xb97   : > { %2814 = vmatpush.bf16.msra.mxu3 %v2805_v57 }
 0xb99   : > { %2863 = vmatpush.bf16.msrb.mxu0 %v6601_v8  ;;  %v6604_v8 = vld [vmem:[%s8582_s6 + $0x114] sm:$0xf] }
 0xb9a   : > { %5460 = vmatmul.msk.bf16.vlgmr.msra.gmra.mxu3 %vm496_vm2, %v2735_v59  ;;  %v5591_v59 = vor.u32 %v6628_v55, %v5590_v54  ;;  %v5622_v54 = vld [vmem:[%s8582_s6 + $0x1b0] sm:$0xf] }
 0xb9b   : > { %v6632_v55 = vld [vmem:[%s8582_s6 + $0x1ec] sm:$0xf0] }
 0xb9d   : > { %2864 = vmatpush.bf16.msrb.mxu0 %v6600_v11  ;;  %v5528_v11 = vld [vmem:[%s8582_s6 + $0x150] sm:$0xf0] }
 0xbc0   : > { %v2714_v61 = vpop.xlane.xlu0 %2713 }
 0xbc1   : > { %6851 = vrcp.f32 %v2714_v61  ;;  %v5592_v61 = vld [vmem:[%s8582_s6 + $0x1d0] sm:$0xf0] }
 0xbc7   : > { %v6852_v62 = vpop.eup %6851 }
 0xbc8   : > { %v2728_v7 = vmul.f32 %v6852_v62, %v6844_v35  ;;  %v5583_v35 = vor.u32 %v6627_v33, %v5582_v32  ;;  %v5598_v62 = vld [vmem:[%s8582_s6 + $0x198] sm:$0xf]  ;;  %v6631_v32 = vld [vmem:[%s8582_s6 + $0x1e4] sm:$0xf0]  ;;  %v6623_v33 = vld [vmem:[%s8582_s6 + $0x1ac] sm:$0xf] }
 0xbc9   : > { %v5619_v43 = vor.u32 %v6623_v33, %v5616_v34  ;;  %v6653_v33 = vld [vmem:[%s8584_s8 + $0x498] sm:$0xff]  ;;  %v6636_v34 = vld [vmem:[%s8584_s8 + $0x410] sm:$0xff] }
 0xbca   : > { %v2732_v0 = vpack.c.bf16 %v2728_v7, %v2728_v7  ;;  %3163 = vmatpush.bf16.msrb.mxu3 %v5583_v35  ;;  %v6629_v7 = vld [vmem:[%s8582_s6 + $0x1d4] sm:$0xf0] }
 0xbcc   : > { %5457 = vmatmul.msk.bf16.vlgmr.msra.gmra.mxu0 %vm496_vm2, %v2732_v0  ;;  %v5595_v0 = vor.u32 %v6620_v56, %v5592_v61  ;;  %v6624_v56 = vld [vmem:[%s8582_s6 + $0x1b4] sm:$0xf]  ;;  %v6633_v61 = vld [vmem:[%s8582_s6 + $0x1f4] sm:$0xf0] }
 0xbcd   : > { %3176 = vmatpush.bf16.msra.mxu0 %v5587_v38  ;;  %v5542_v38 = vld [vmem:[%s8582_s6 + $0x120] sm:$0xf] }
 0xbce   : > { %3164 = vmatpush.bf16.msrb.mxu3 %v5519_v49  ;;  %3202 = vmatpush.bf16.msra.mxu2 %v5595_v0  ;;  %v5552_v49 = vld [vmem:[%s8582_s6 + $0x168] sm:$0xf0]  ;;  %v5543_v50 = vor.u32 %v6614_v40, %v5542_v38  ;;  %v5623_v0 = vor.u32 %v6632_v55, %v5622_v54  ;;  %v6680_v54 = vld [vmem:[%s8584_s8 + $0x570] sm:$0xff] }
 0xbcf   : > { %v6635_v38 = vld [vmem:[%s8584_s8 + $0x408] sm:$0xff]  ;;  %v6688_v55 = vld [vmem:[%s8584_s8 + $0x5b0] sm:$0xff] }
 0xbd0   : > { %v6659_v40 = vld [vmem:[%s8584_s8 + $0x4c8] sm:$0xff] }
 0xbd1   : > { %3177 = vmatpush.bf16.msra.mxu0 %v5523_v52  ;;  %v5551_v52 = vor.u32 %v6615_v46, %v5550_v45  ;;  %v6673_v45 = vld [vmem:[%s8584_s8 + $0x538] sm:$0xff] }
 0xbd2   : > { %v6697_v46 = vld [vmem:[%s8584_s8 + $0x5f8] sm:$0xff] }
 0xbe6   : > { %v2774_v1 = vpop.f32.mrf.mxu1 }
 0xbe7   : > { %2821 = vrot.lane.b32.xlu1 %v2774_v1, %s8614_s16  ;;  %v5599_v1 = vor.u32 %v6629_v7, %v5598_v62  ;;  %v6625_v62 = vld [vmem:[%s8582_s6 + $0x1bc] sm:$0xf]  ;;  %s4681_s16 = scalar_lea.hbm %s8588_s12, %s6430_s29 }
 0xbe8   : > { %v5632_v7 = vld [vmem:[%s8582_s6 + $0x1f8] sm:$0xf0]  ;;  %s4685_s26 = sshll.u32 %s4681_s16, 4  ;;  %s4686_s26 = int_to_ptr.hbm [resolvable:$true] %s4685_s26 }
 0xbe9   : > { %3215 = vmatpush.bf16.msra.mxu3 %v5599_v1  ;;  %s6873_s1 = sshra.s32 %s4686_s26, 4  ;;  %s6874_s1 = int_to_ptr.hbm [resolvable:$true] %s6873_s1 }
 0xbea   : > { %s6875_s3 = scalar_lea.hbm %s6874_s1, 8  ;;  %p6880_p0 = scmp.lt.s32.totalorder %s6874_s1, %s8588_s12 }
 0xbeb   : > { %p6876_p11 = scmp.ne.s32.totalorder %s6874_s1, %s6875_s3  ;;  %p6881_p1 = scmp.lt.s32.totalorder %s6879_s20, %s6875_s3 }
 0xbed   : > { %p6877_p12 = pnand %p6876_p11, %p7035_p5  ;;  %p6882_p2 = por %p6881_p1, %p6880_p0 }
 0xbee   : > { %v2776_v2 = vpop.f32.mrf.mxu1 }
 0xbef   : > { %v6621_v2 = vld [vmem:[%s8582_s6 + $0x19c] sm:$0xf]  ;;  %p6878_p13 = pneg %p6877_p12 }
 0xbf1   : > { %p6883_p3 = pnand %p6882_p2, %p6878_p13 }
 0xc13   : > { %v2795_v3 = vpop.f32.mrf.mxu2 }
 0xc14   : > { %2825 = vrot.lane.b32.xlu2 %v2795_v3, %s8615_s18  ;;  %v5600_v3 = vld [vmem:[%s8582_s6 + $0x1d8] sm:$0xf0] }
 0xc1b   : > { %v2797_v4 = vpop.f32.mrf.mxu2 }
 0xc1c   : > { %v5526_v4 = vld [vmem:[%s8582_s6 + $0x110] sm:$0xf] }
 0xc1d   : > { %v2816_v5 = vpop.f32.mrf.mxu3 }
 0xc1e   : > { %2829 = vrot.lane.b32.xlu1 %v2816_v5, %s8616_s19 }
 0xc25   : > { %v2818_v47 = vpop.f32.mrf.mxu3 }
 0xc26   : > { %v5603_v47 = vor.u32 %v6621_v2, %v5600_v3  ;;  %v5558_v2 = vld [vmem:[%s8582_s6 + $0x130] sm:$0xf] }
 0xc27   : > { %v6616_v3 = vld [vmem:[%s8582_s6 + $0x16c] sm:$0xf0] }
 0xc49   : > { %v2753_v6 = vpop.f32.mrf.mxu0 }
 0xc51   : > { %v2755_v9 = vpop.f32.mrf.mxu0 }
 0xc59   : > { %v2822_v12 = vpop.permute.xlu1 %2821 }
 0xc5a   : > { %v2832_v13 = vsel %vm496_vm2, %v2753_v6, %v2822_v12  ;;  %v6612_v6 = vld [vmem:[%s8582_s6 + $0x14c] sm:$0xf0]  ;;  %v5534_v12 = vld [vmem:[%s8582_s6 + $0x118] sm:$0xf] }
 0xc5b   : > { %v5527_v9 = vor.u32 %v6612_v6, %v5526_v4  ;;  %v5560_v6 = vld [vmem:[%s8582_s6 + $0x170] sm:$0xf0] }
 0xc6e   : > { %v2826_v10 = vpop.permute.xlu2 %2825 }
 0xc6f   : > { %v2833_v14 = vsel %vm421_vm0, %v2832_v13, %v2826_v10  ;;  %v6613_v10 = vld [vmem:[%s8582_s6 + $0x154] sm:$0xf0]  ;;  %v5531_v13 = vor.u32 %v6604_v8, %v5528_v11  ;;  %v6609_v11 = vld [vmem:[%s8582_s6 + $0x13c] sm:$0xf] }
 0xc70   : > { %v5566_v8 = vld [vmem:[%s8582_s6 + $0x138] sm:$0xf] }
 0xc71   : > { %3203 = vmatpush.bf16.msra.mxu2 %v5531_v13 }
 0xc90   : > { %v2830_v15 = vpop.permute.xlu1 %2829 }
 0xc91   : > { %v2834_v16 = vsel %vm735_vm4, %v2833_v14, %v2830_v15  ;;  %v5535_v14 = vor.u32 %v6613_v10, %v5534_v12  ;;  %v6605_v15 = vld [vmem:[%s8582_s6 + $0x11c] sm:$0xf]  ;;  %v5559_v10 = vor.u32 %v6616_v3, %v5558_v2 }
 0xc92   : > { %v2835_v17 = vpack.c.bf16 %v2834_v16, %v2834_v16  ;;  %v5536_v16 = vld [vmem:[%s8582_s6 + $0x158] sm:$0xf0] }
 0xc93   : > { %3216 = vmatpush.bf16.msra.mxu3 %v5535_v14  ;;  %v5568_v12 = vld [vmem:[%s8582_s6 + $0x178] sm:$0xf0] }
 0xc94   : > { %5473 = vmatmul.msk.bf16.vlgmr.msrb.gmra.mxu0 %vm460_vm1, %v2835_v17  ;;  %v5539_v17 = vor.u32 %v6605_v15, %v5536_v16  ;;  %v5571_v15 = vor.u32 %v6609_v11, %v5568_v12  ;;  %v6641_v16 = vld [vmem:[%s8584_s8 + $0x438] sm:$0xff]  ;;  %v6676_v11 = vld [vmem:[%s8584_s8 + $0x550] sm:$0xff] }
 0xc95   : > { %3228 = vmatpush.bf16.msrb.mxu0 %v5603_v47  ;;  %v6608_v47 = vld [vmem:[%s8582_s6 + $0x134] sm:$0xf]  ;;  %v6669_v2 = vld [vmem:[%s8584_s8 + $0x518] sm:$0xff] }
 0xc96   : > { %v5563_v13 = vor.u32 %v6608_v47, %v5560_v6  ;;  %v6693_v3 = vld [vmem:[%s8584_s8 + $0x5d8] sm:$0xff]  ;;  %v6684_v12 = vld [vmem:[%s8584_s8 + $0x590] sm:$0xff] }
 0xc97   : > { %v6677_v47 = vld [vmem:[%s8584_s8 + $0x558] sm:$0xff] }
 0xc98   : > { %v6685_v6 = vld [vmem:[%s8584_s8 + $0x598] sm:$0xff] }
 0xc99   : > { %3229 = vmatpush.bf16.msrb.mxu0 %v5539_v17  ;;  %v6665_v17 = vld [vmem:[%s8584_s8 + $0x4f8] sm:$0xff] }
 0xd11   : > { %v2866_v19 = vpop.f32.mrf.mxu0 }
 0xd12   : > { %v2867_v20 = vadd.f32 %v2866_v19, %v2841_v58 }
 0xd14   : > { %v2870_v21 = vadd.f32 %v2867_v20, %v7806_v39  ;;  %v6626_v39 = vld [vmem:[%s8582_s6 + $0x1bc] sm:$0xf0] }
 0xd15   : > { %v5575_v30 = vor.u32 %v6626_v39, %v5574_v28  ;;  %v5606_v39 = vld [vmem:[%s8582_s6 + $0x1a0] sm:$0xf] }
 0xd16   : > { %v2871_v22 = vsel %vm460_vm1, %v2870_v21, 0.0  ;;  %v5607_v36 = vor.u32 %v6630_v29, %v5606_v39  ;;  %v6662_v39 = vld [vmem:[%s8584_s8 + $0x4e0] sm:$0xff] }
 0xd17   : > { %2872 = vadd.xlane.f32.xlu2 %v2871_v22  ;;  %3137 = vmatpush.bf16.msrb.mxu1 %v5575_v30  ;;  %v6622_v30 = vld [vmem:[%s8582_s6 + $0x1a4] sm:$0xf] }
 0xd18   : > { %v5611_v37 = vor.u32 %v6622_v30, %v5608_v31  ;;  %v6646_v29 = vld [vmem:[%s8584_s8 + $0x460] sm:$0xff]  ;;  %v6637_v31 = vld [vmem:[%s8584_s8 + $0x418] sm:$0xff] }
 0xd19   : > { %v2868_v23 = vpop.f32.mrf.mxu0  ;;  %v6654_v30 = vld [vmem:[%s8584_s8 + $0x4a0] sm:$0xff] }
 0xd1b   : > { %3138 = vmatpush.bf16.msrb.mxu1 %v5511_v44  ;;  %v6606_v44 = vld [vmem:[%s8582_s6 + $0x124] sm:$0xf] }
 0xd1c   : > { %v5547_v51 = vor.u32 %v6606_v44, %v5544_v41  ;;  %v6634_v44 = vld [vmem:[%s8584_s8 + $0x400] sm:$0xff] }
 0xd1d   : > { %v6658_v41 = vld [vmem:[%s8584_s8 + $0x4c0] sm:$0xff] }
 0xd1f   : > { %3189 = vmatpush.bf16.msra.mxu1 %v5591_v59  ;;  %v5630_v59 = vld [vmem:[%s8582_s6 + $0x1b8] sm:$0xf] }
 0xd20   : > { %v5631_v4 = vor.u32 %v6633_v61, %v5630_v59  ;;  %v6679_v59 = vld [vmem:[%s8584_s8 + $0x568] sm:$0xff] }
 0xd21   : > { %v6687_v61 = vld [vmem:[%s8584_s8 + $0x5a8] sm:$0xff] }
 0xd23   : > { %3190 = vmatpush.bf16.msra.mxu1 %v5527_v9  ;;  %v6617_v9 = vld [vmem:[%s8582_s6 + $0x174] sm:$0xf0] }
 0xd24   : > { %v5567_v14 = vor.u32 %v6617_v9, %v5566_v8  ;;  %v6667_v8 = vld [vmem:[%s8584_s8 + $0x508] sm:$0xff] }
 0xd25   : > { %v6691_v9 = vld [vmem:[%s8584_s8 + $0x5c8] sm:$0xff] }
 0xd8a   : > { %v2873_v24 = vpop.xlane.xlu2 %2872 }
 0xd8b   : > { %v2874_v63 = vmul.f32 %v2873_v24, %v7135_v60  ;;  %v2893_v24 = vperm.slane %v7865_v18, 1 }
 0xd8d   : > { %v7871_v25 = vsub.f32 %v2870_v21, %v2874_v63 }
 0xd8f   : > { %v2876_v26 = vmul.f32 %v7871_v25, %v7871_v25 }
 0xd91   : > { %v2877_v27 = vsel %vm460_vm1, %v2876_v26, 0.0  ;;  %v2895_v26 = vperm.slane %v7865_v18, 2  ;;  %v5614_v18 = vld [vmem:[%s8582_s6 + $0x1a8] sm:$0xf] }
 0xd92   : > { %2878 = vadd.xlane.f32.xlu1 %v2877_v27  ;;  %v5615_v42 = vor.u32 %v6631_v32, %v5614_v18  ;;  %v6661_v18 = vld [vmem:[%s8584_s8 + $0x4d8] sm:$0xff] }
 0xd93   : > { %v6645_v32 = vld [vmem:[%s8584_s8 + $0x458] sm:$0xff] }
 0xe05   : > { %v2879_v53 = vpop.xlane.xlu1 %2878 }
 0xe06   : > { %v2880_v57 = vmul.f32 %v2879_v53, %v7135_v60  ;;  %v5555_v53 = vor.u32 %v6607_v48, %v5552_v49  ;;  %v6642_v48 = vld [vmem:[%s8584_s8 + $0x440] sm:$0xff] }
 0xe07   : > { %v6650_v49 = vld [vmem:[%s8584_s8 + $0x480] sm:$0xff] }
 0xe08   : > { %v2881_v5 = vadd.f32 1e-05, %v2880_v57  ;;  %v5624_v57 = vld [vmem:[%s8582_s6 + $0x1f0] sm:$0xf0] }
 0xe09   : > { %v5627_v1 = vor.u32 %v6624_v56, %v5624_v57  ;;  %v6671_v56 = vld [vmem:[%s8584_s8 + $0x528] sm:$0xff] }
 0xe0a   : > { %6853 = vrsqrt.f32 %v2881_v5  ;;  %vm2888_vm13 = vweird.f32 %v2881_v5  ;;  %v6695_v57 = vld [vmem:[%s8584_s8 + $0x5e8] sm:$0xff] }
 0xe10   : > { %v6854_v58 = vpop.eup %6853 }
 0xe11   : > { %v2883_v19 = vmul.f32 %v6854_v58, %v2881_v5  ;;  %vm2889_vm12 = vweird.f32 %v6854_v58  ;;  %v5635_v5 = vor.u32 %v6625_v62, %v5632_v7  ;;  %v6670_v62 = vld [vmem:[%s8584_s8 + $0x520] sm:$0xff] }
 0xe12   : > { %vm2890_vm14 = vmor %vm2888_vm13, %vm2889_vm12  ;;  %v6694_v7 = vld [vmem:[%s8584_s8 + $0x5e0] sm:$0xff] }
 0xe13   : > { %v2884_v20 = vmul.f32 %v6854_v58, %v2883_v19  ;;  %v6657_v19 = vld [vmem:[%s8584_s8 + $0x4b8] sm:$0xff] }
 0xe15   : > { %v2885_v21 = vmul.f32 0.5, %v2884_v20  ;;  %v6640_v20 = vld [vmem:[%s8584_s8 + $0x430] sm:$0xff] }
 0xe17   : > { %v2886_v22 = vsub.f32 1.5, %v2885_v21  ;;  %v6664_v21 = vld [vmem:[%s8584_s8 + $0x4f0] sm:$0xff] }
 0xe19   : > { %v2887_v23 = vmul.f32 %v6854_v58, %v2886_v22  ;;  %v6648_v22 = vld [vmem:[%s8584_s8 + $0x470] sm:$0xff] }
 0xe1b   : > { %v2891_v63 = vsel %vm2890_vm14, %v6854_v58, %v2887_v23  ;;  %v6649_v58 = vld [vmem:[%s8584_s8 + $0x478] sm:$0xff]  ;;  %v6656_v23 = vld [vmem:[%s8584_s8 + $0x4b0] sm:$0xff] }
 0xe1c   : > { %v2892_v27 = vmul.f32 %v2891_v63, %v7871_v25  ;;  %v6663_v63 = vld [vmem:[%s8584_s8 + $0x4e8] sm:$0xff] }
 0xe1e   : > { %v2894_v28 = vmul.f32 %v2893_v24, %v2892_v27  ;;  %v6639_v24 = vld [vmem:[%s8584_s8 + $0x428] sm:$0xff] }
 0xe1f   : > { %v6655_v27 = vld [vmem:[%s8584_s8 + $0x4a8] sm:$0xff] }
 0xe20   : > { %v7991_v25 = vadd.f32 %v2895_v26, %v2894_v28  ;;  %v6647_v26 = vld [vmem:[%s8584_s8 + $0x468] sm:$0xff]  ;;  %v6638_v28 = vld [vmem:[%s8584_s8 + $0x420] sm:$0xff] }
 0xe22   : > { %v8004_v35 = vpack.c.bf16 %v7991_v25, %v7991_v25 }
 0xe24   : > { %5636 = vmatmul.msk.bf16.vlgmr.msrb.gmra.mxu1 %vm460_vm1, %v8004_v35  ;;  %5637 = vmatmul.msk.bf16.vlgmr.msrb.gmra.mxu2 %vm460_vm1, %v8004_v35 }
 0xe25   : > { %5638 = vmatmul.msk.bf16.vlgmr.msrb.gmra.mxu3 %vm460_vm1, %v8004_v35  ;;  %5639 = vmatmul.msk.bf16.vlgmr.msra.gmra.mxu0 %vm460_vm1, %v8004_v35 }
 0xe26   : > { %3241 = vmatpush.bf16.msrb.mxu1 %v5607_v36  ;;  %3254 = vmatpush.bf16.msrb.mxu2 %v5611_v37  ;;  %v6660_v36 = vld [vmem:[%s8584_s8 + $0x4d0] sm:$0xff] }
 0xe27   : > { %3267 = vmatpush.bf16.msrb.mxu3 %v5615_v42  ;;  %3280 = vmatpush.bf16.msra.mxu0 %v5619_v43  ;;  %v6644_v37 = vld [vmem:[%s8584_s8 + $0x450] sm:$0xff]  ;;  %v6643_v42 = vld [vmem:[%s8584_s8 + $0x448] sm:$0xff] }
 0xe28   : > { %v6651_v43 = vld [vmem:[%s8584_s8 + $0x488] sm:$0xff] }
 0xe2a   : > { %3242 = vmatpush.bf16.msrb.mxu1 %v5543_v50  ;;  %3255 = vmatpush.bf16.msrb.mxu2 %v5547_v51  ;;  %v6681_v50 = vld [vmem:[%s8584_s8 + $0x578] sm:$0xff] }
 0xe2b   : > { %3268 = vmatpush.bf16.msrb.mxu3 %v5551_v52  ;;  %3281 = vmatpush.bf16.msra.mxu0 %v5555_v53  ;;  %v6689_v51 = vld [vmem:[%s8584_s8 + $0x5b8] sm:$0xff]  ;;  %v6672_v52 = vld [vmem:[%s8584_s8 + $0x530] sm:$0xff] }
 0xe2c   : > { %v6696_v53 = vld [vmem:[%s8584_s8 + $0x5f0] sm:$0xff] }
 0xe34   : > { %5640 = vmatmul.msk.bf16.vlgmr.msra.gmra.mxu1 %vm460_vm1, %v8004_v35  ;;  %5641 = vmatmul.msk.bf16.vlgmr.msra.gmra.mxu2 %vm460_vm1, %v8004_v35 }
 0xe35   : > { %5642 = vmatmul.msk.bf16.vlgmr.msra.gmra.mxu3 %vm460_vm1, %v8004_v35  ;;  %5643 = vmatmul.msk.bf16.vlgmr.msrb.gmra.mxu0 %vm460_vm1, %v8004_v35 }
 0xe36   : > { %3293 = vmatpush.bf16.msra.mxu1 %v5623_v0  ;;  %3306 = vmatpush.bf16.msra.mxu2 %v5627_v1  ;;  %v6678_v0 = vld [vmem:[%s8584_s8 + $0x560] sm:$0xff] }
 0xe37   : > { %3319 = vmatpush.bf16.msra.mxu3 %v5631_v4  ;;  %3332 = vmatpush.bf16.msrb.mxu0 %v5635_v5  ;;  %v6686_v1 = vld [vmem:[%s8584_s8 + $0x5a0] sm:$0xff]  ;;  %v6668_v4 = vld [vmem:[%s8584_s8 + $0x510] sm:$0xff] }
 0xe38   : > { %v6692_v5 = vld [vmem:[%s8584_s8 + $0x5d0] sm:$0xff] }
 0xe3a   : > { %3294 = vmatpush.bf16.msra.mxu1 %v5559_v10  ;;  %3307 = vmatpush.bf16.msra.mxu2 %v5563_v13  ;;  %v6666_v10 = vld [vmem:[%s8584_s8 + $0x500] sm:$0xff] }
 0xe3b   : > { %3320 = vmatpush.bf16.msra.mxu3 %v5567_v14  ;;  %3333 = vmatpush.bf16.msrb.mxu0 %v5571_v15  ;;  %v6690_v13 = vld [vmem:[%s8584_s8 + $0x5c0] sm:$0xff]  ;;  %v6675_v14 = vld [vmem:[%s8584_s8 + $0x548] sm:$0xff] }
 0xe3c   : > { %v6683_v15 = vld [vmem:[%s8584_s8 + $0x588] sm:$0xff] }
 0xe44   : > { %5644 = vmatmul.msk.bf16.vlgmr.msrb.gmra.mxu1 %vm460_vm1, %v8004_v35  ;;  %5645 = vmatmul.msk.bf16.vlgmr.msrb.gmra.mxu2 %vm460_vm1, %v8004_v35 }
 0xe45   : > { %5646 = vmatmul.msk.bf16.vlgmr.msrb.gmra.mxu3 %vm460_vm1, %v8004_v35  ;;  %5647 = vmatmul.msk.bf16.vlgmr.msra.gmra.mxu0 %vm460_vm1, %v8004_v35 }
 0xe46   : > { %4397 = vmatpush.bf16.msrb.mxu1 %v6641_v16  ;;  %4436 = vmatpush.bf16.msra.mxu0 %v6665_v17  ;;  %v6674_v16 = vld [vmem:[%s8584_s8 + $0x540] sm:$0xff] }
 0xe47   : > { %4410 = vmatpush.bf16.msrb.mxu2 %v6649_v58  ;;  %4423 = vmatpush.bf16.msrb.mxu3 %v6657_v19  ;;  %v6682_v17 = vld [vmem:[%s8584_s8 + $0x580] sm:$0xff]  ;;  %v8305_v58 = vld [vmem:[%s8583_s7 + $0x10] sm:$0xff] }
 0xe48   : > { %v2936_v19 = vperm.slane %v8305_v58, 0 }
 0xe4a   : > { %4398 = vmatpush.bf16.msrb.mxu1 %v6640_v20  ;;  %4437 = vmatpush.bf16.msra.mxu0 %v6664_v21  ;;  %v2939_v20 = vperm.slane %v8305_v58, 3 }
 0xe4b   : > { %4411 = vmatpush.bf16.msrb.mxu2 %v6648_v22  ;;  %4424 = vmatpush.bf16.msrb.mxu3 %v6656_v23 }
 0xe4e   : > { %4399 = vmatpush.bf16.msrb.mxu1 %v6639_v24  ;;  %4438 = vmatpush.bf16.msra.mxu0 %v6663_v63 }
 0xe4f   : > { %4412 = vmatpush.bf16.msrb.mxu2 %v6647_v26  ;;  %4425 = vmatpush.bf16.msrb.mxu3 %v6655_v27  ;;  %v2937_v26 = vperm.slane %v8305_v58, 1 }
 0xe52   : > { %4400 = vmatpush.bf16.msrb.mxu1 %v6638_v28  ;;  %4439 = vmatpush.bf16.msra.mxu0 %v6662_v39  ;;  %v2938_v28 = vperm.slane %v8305_v58, 2  ;;  %v6705_v39 = vld [vmem:[%s8584_s8 + $0x638] sm:$0xff] }
 0xe53   : > { %4413 = vmatpush.bf16.msrb.mxu2 %v6646_v29  ;;  %4426 = vmatpush.bf16.msrb.mxu3 %v6654_v30  ;;  %v6729_v30 = vld [vmem:[%s8584_s8 + $0x6f8] sm:$0xff] }
 0xe54   : > { %5648 = vmatmul.msk.bf16.vlgmr.msra.gmra.mxu1 %vm460_vm1, %v8004_v35  ;;  %5649 = vmatmul.msk.bf16.vlgmr.msra.gmra.mxu2 %vm460_vm1, %v8004_v35 }
 0xe55   : > { %5650 = vmatmul.msk.bf16.vlgmr.msra.gmra.mxu3 %vm460_vm1, %v8004_v35  ;;  %5651 = vmatmul.msk.bf16.vlgmr.msrb.gmra.mxu0 %vm460_vm1, %v8004_v35  ;;  %v6652_v35 = vld [vmem:[%s8584_s8 + $0x490] sm:$0xff] }
 0xe56   : > { %4401 = vmatpush.bf16.msrb.mxu1 %v6637_v31  ;;  %4440 = vmatpush.bf16.msra.mxu0 %v6661_v18 }
 0xe57   : > { %4414 = vmatpush.bf16.msrb.mxu2 %v6645_v32  ;;  %4427 = vmatpush.bf16.msrb.mxu3 %v6653_v33 }
 0xe5a   : > { %4402 = vmatpush.bf16.msrb.mxu1 %v6636_v34  ;;  %4441 = vmatpush.bf16.msra.mxu0 %v6660_v36 }
 0xe5b   : > { %4415 = vmatpush.bf16.msrb.mxu2 %v6644_v37  ;;  %4428 = vmatpush.bf16.msrb.mxu3 %v6652_v35  ;;  %v6704_v37 = vld [vmem:[%s8584_s8 + $0x630] sm:$0xff] }
 0xe5e   : > { %4403 = vmatpush.bf16.msrb.mxu1 %v6635_v38  ;;  %4442 = vmatpush.bf16.msra.mxu0 %v6659_v40  ;;  %v6728_v40 = vld [vmem:[%s8584_s8 + $0x6f0] sm:$0xff] }
 0xe5f   : > { %4416 = vmatpush.bf16.msrb.mxu2 %v6643_v42  ;;  %4429 = vmatpush.bf16.msrb.mxu3 %v6651_v43  ;;  %v6713_v43 = vld [vmem:[%s8584_s8 + $0x678] sm:$0xff] }
 0xe62   : > { %4404 = vmatpush.bf16.msrb.mxu1 %v6634_v44  ;;  %4443 = vmatpush.bf16.msra.mxu0 %v6658_v41  ;;  %v6721_v41 = vld [vmem:[%s8584_s8 + $0x6b8] sm:$0xff] }
 0xe63   : > { %4417 = vmatpush.bf16.msrb.mxu2 %v6642_v48  ;;  %4430 = vmatpush.bf16.msrb.mxu3 %v6650_v49  ;;  %v6727_v48 = vld [vmem:[%s8584_s8 + $0x6e8] sm:$0xff]  ;;  %v2940_v49 = vperm.slane %v8305_v58, 4 }
 0xe66   : > { %4449 = vmatpush.bf16.msra.mxu1 %v6673_v45  ;;  %4488 = vmatpush.bf16.msrb.mxu0 %v6697_v46  ;;  %v6703_v46 = vld [vmem:[%s8584_s8 + $0x628] sm:$0xff] }
 0xe67   : > { %4462 = vmatpush.bf16.msra.mxu2 %v6681_v50  ;;  %4475 = vmatpush.bf16.msra.mxu3 %v6689_v51  ;;  %v2943_v51 = vperm.slane %v8305_v58, 7 }
 0xe6a   : > { %4450 = vmatpush.bf16.msra.mxu1 %v6672_v52  ;;  %4489 = vmatpush.bf16.msrb.mxu0 %v6696_v53  ;;  %v6712_v52 = vld [vmem:[%s8584_s8 + $0x670] sm:$0xff] }
 0xe6b   : > { %4463 = vmatpush.bf16.msra.mxu2 %v6680_v54  ;;  %4476 = vmatpush.bf16.msra.mxu3 %v6688_v55  ;;  %v6720_v54 = vld [vmem:[%s8584_s8 + $0x6b0] sm:$0xff] }
 0xe6e   : > { %4451 = vmatpush.bf16.msra.mxu1 %v6671_v56  ;;  %4490 = vmatpush.bf16.msrb.mxu0 %v6695_v57  ;;  %v6702_v56 = vld [vmem:[%s8584_s8 + $0x620] sm:$0xff] }
 0xe6f   : > { %4464 = vmatpush.bf16.msra.mxu2 %v6679_v59  ;;  %4477 = vmatpush.bf16.msra.mxu3 %v6687_v61  ;;  %v6726_v61 = vld [vmem:[%s8584_s8 + $0x6e0] sm:$0xff] }
 0xe72   : > { %4452 = vmatpush.bf16.msra.mxu1 %v6670_v62  ;;  %4491 = vmatpush.bf16.msrb.mxu0 %v6694_v7  ;;  %v6711_v7 = vld [vmem:[%s8584_s8 + $0x668] sm:$0xff] }
 0xe73   : > { %4465 = vmatpush.bf16.msra.mxu2 %v6678_v0  ;;  %4478 = vmatpush.bf16.msra.mxu3 %v6686_v1  ;;  %v6719_v1 = vld [vmem:[%s8584_s8 + $0x6a8] sm:$0xff] }
 0xe76   : > { %4453 = vmatpush.bf16.msra.mxu1 %v6669_v2  ;;  %4492 = vmatpush.bf16.msrb.mxu0 %v6693_v3  ;;  %v2941_v2 = vperm.slane %v8305_v58, 5 }
 0xe77   : > { %4466 = vmatpush.bf16.msra.mxu2 %v6677_v47  ;;  %4479 = vmatpush.bf16.msra.mxu3 %v6685_v6  ;;  %v6725_v6 = vld [vmem:[%s8584_s8 + $0x6d8] sm:$0xff] }
 0xe7a   : > { %4454 = vmatpush.bf16.msra.mxu1 %v6668_v4  ;;  %4493 = vmatpush.bf16.msrb.mxu0 %v6692_v5  ;;  %v2942_v4 = vperm.slane %v8305_v58, 6  ;;  %v6701_v5 = vld [vmem:[%s8584_s8 + $0x618] sm:$0xff] }
 0xe7b   : > { %4467 = vmatpush.bf16.msra.mxu2 %v6676_v11  ;;  %4480 = vmatpush.bf16.msra.mxu3 %v6684_v12  ;;  %v6710_v11 = vld [vmem:[%s8584_s8 + $0x660] sm:$0xff] }
 0xe7e   : > { %4455 = vmatpush.bf16.msra.mxu1 %v6667_v8  ;;  %4494 = vmatpush.bf16.msrb.mxu0 %v6691_v9 }
 0xe7f   : > { %4468 = vmatpush.bf16.msra.mxu2 %v6675_v14  ;;  %4481 = vmatpush.bf16.msra.mxu3 %v6683_v15 }
 0xe82   : > { %4456 = vmatpush.bf16.msra.mxu1 %v6666_v10  ;;  %4495 = vmatpush.bf16.msrb.mxu0 %v6690_v13  ;;  %v6718_v13 = vld [vmem:[%s8584_s8 + $0x6a0] sm:$0xff] }
 0xe83   : > { %4469 = vmatpush.bf16.msra.mxu2 %v6674_v16  ;;  %4482 = vmatpush.bf16.msra.mxu3 %v6682_v17  ;;  %v6700_v16 = vld [vmem:[%s8584_s8 + $0x610] sm:$0xff] }
 0xea1   : > { %v3140_v21 = vpop.f32.mrf.mxu1 }
 0xea2   : > { %v3141_v22 = vadd.f32 %v3140_v21, %v2936_v19  ;;  %v3179_v23 = vpop.f32.mrf.mxu0  ;;  %v6724_v19 = vld [vmem:[%s8584_s8 + $0x6d0] sm:$0xff]  ;;  %v6709_v21 = vld [vmem:[%s8584_s8 + $0x658] sm:$0xff] }
 0xea3   : > { %v3180_v24 = vadd.f32 %v3179_v23, %v2939_v20 }
 0xea4   : > { %v3339_v63 = vmax.f32 %v3141_v22, 0.0  ;;  %v8381_v22 = vld [vmem:[%s8583_s7 + $0x18] sm:$0xff] }
 0xea5   : > { %v3342_v27 = vmax.f32 %v3180_v24, 0.0  ;;  %v6717_v24 = vld [vmem:[%s8584_s8 + $0x698] sm:$0xff] }
 0xea6   : > { %v3355_v29 = vpack.c.bf16 %v3339_v63, %v3339_v63 }
 0xea7   : > { %v3358_v31 = vpack.c.bf16 %v3342_v27, %v3342_v27  ;;  %v3153_v18 = vpop.f32.mrf.mxu2  ;;  %v6723_v27 = vld [vmem:[%s8584_s8 + $0x6c8] sm:$0xff] }
 0xea8   : > { %v3154_v32 = vadd.f32 %v3153_v18, %v2937_v26  ;;  %v3166_v33 = vpop.f32.mrf.mxu3  ;;  %4405 = vmatmul.bf16.vlgmr.msrb.gmra.mxu1 %v3355_v29  ;;  %v6699_v26 = vld [vmem:[%s8584_s8 + $0x608] sm:$0xff]  ;;  %v2947_v29 = vperm.slane %v8381_v22, 3  ;;  %v6716_v18 = vld [vmem:[%s8584_s8 + $0x690] sm:$0xff] }
 0xea9   : > { %v3167_v34 = vadd.f32 %v3166_v33, %v2938_v28  ;;  %4444 = vmatmul.bf16.vlgmr.msra.gmra.mxu0 %v3358_v31  ;;  %4501 = vmatpush.bf16.msrb.mxu1 %v6705_v39  ;;  %v3142_v36 = vpop.f32.mrf.mxu1  ;;  %v2944_v28 = vperm.slane %v8381_v22, 0  ;;  %v6698_v33 = vld [vmem:[%s8584_s8 + $0x600] sm:$0xff] }
 0xeaa   : > { %v3340_v35 = vmax.f32 %v3154_v32, 0.0  ;;  %4540 = vmatpush.bf16.msra.mxu0 %v6729_v30  ;;  %v3181_v38 = vpop.f32.mrf.mxu0  ;;  %v6708_v30 = vld [vmem:[%s8584_s8 + $0x650] sm:$0xff] }
 0xeab   : > { %v3341_v42 = vmax.f32 %v3167_v34, 0.0 }
 0xeac   : > { %v3356_v44 = vpack.c.bf16 %v3340_v35, %v3340_v35  ;;  %v6737_v35 = vld [vmem:[%s8584_s8 + $0x738] sm:$0xff] }
 0xead   : > { %v3357_v45 = vpack.c.bf16 %v3341_v42, %v3341_v42  ;;  %4502 = vmatpush.bf16.msrb.mxu1 %v6704_v37  ;;  %v6722_v37 = vld [vmem:[%s8584_s8 + $0x6c0] sm:$0xff]  ;;  %v6707_v42 = vld [vmem:[%s8584_s8 + $0x648] sm:$0xff] }
 0xeae   : > { %4541 = vmatpush.bf16.msra.mxu0 %v6728_v40  ;;  %4418 = vmatmul.bf16.vlgmr.msrb.gmra.mxu2 %v3356_v44  ;;  %v6761_v40 = vld [vmem:[%s8584_s8 + $0x7f8] sm:$0xff]  ;;  %v6715_v44 = vld [vmem:[%s8584_s8 + $0x688] sm:$0xff] }
 0xeaf   : > { %4431 = vmatmul.bf16.vlgmr.msrb.gmra.mxu3 %v3357_v45  ;;  %4514 = vmatpush.bf16.msrb.mxu2 %v6713_v43  ;;  %v3155_v50 = vpop.f32.mrf.mxu2 }
 0xeb0   : > { %4527 = vmatpush.bf16.msrb.mxu3 %v6721_v41  ;;  %v3168_v53 = vpop.f32.mrf.mxu3  ;;  %v2945_v41 = vperm.slane %v8381_v22, 1 }
 0xeb1   : > { %4503 = vmatpush.bf16.msrb.mxu1 %v6703_v46  ;;  %v3192_v55 = vpop.f32.mrf.mxu1  ;;  %v2946_v46 = vperm.slane %v8381_v22, 2  ;;  %v6706_v53 = vld [vmem:[%s8584_s8 + $0x640] sm:$0xff] }
 0xeb2   : > { %4542 = vmatpush.bf16.msra.mxu0 %v6727_v48  ;;  %v3193_v57 = vadd.f32 %v3192_v55, %v2940_v49  ;;  %v3231_v59 = vpop.f32.mrf.mxu0  ;;  %v6736_v49 = vld [vmem:[%s8584_s8 + $0x730] sm:$0xff] }
 0xeb3   : > { %v3232_v62 = vadd.f32 %v3231_v59, %v2943_v51  ;;  %4515 = vmatpush.bf16.msrb.mxu2 %v6712_v52  ;;  %v6760_v52 = vld [vmem:[%s8584_s8 + $0x7f0] sm:$0xff] }
 0xeb4   : > { %v3343_v0 = vmax.f32 %v3193_v57, 0.0  ;;  %4528 = vmatpush.bf16.msrb.mxu3 %v6720_v54  ;;  %v6745_v57 = vld [vmem:[%s8584_s8 + $0x778] sm:$0xff] }
 0xeb5   : > { %v3346_v3 = vmax.f32 %v3232_v62, 0.0  ;;  %4504 = vmatpush.bf16.msrb.mxu1 %v6702_v56  ;;  %v6714_v56 = vld [vmem:[%s8584_s8 + $0x680] sm:$0xff]  ;;  %v6753_v62 = vld [vmem:[%s8584_s8 + $0x7b8] sm:$0xff] }
 0xeb6   : > { %v3359_v47 = vpack.c.bf16 %v3343_v0, %v3343_v0  ;;  %4543 = vmatpush.bf16.msra.mxu0 %v6726_v61 }
 0xeb7   : > { %v3362_v8 = vpack.c.bf16 %v3346_v3, %v3346_v3  ;;  %4516 = vmatpush.bf16.msrb.mxu2 %v6711_v7  ;;  %v3205_v9 = vpop.f32.mrf.mxu2  ;;  %v6759_v3 = vld [vmem:[%s8584_s8 + $0x7e8] sm:$0xff] }
 0xeb8   : > { %4529 = vmatpush.bf16.msrb.mxu3 %v6719_v1  ;;  %v3206_v12 = vadd.f32 %v3205_v9, %v2941_v2  ;;  %v3218_v10 = vpop.f32.mrf.mxu3  ;;  %4457 = vmatmul.bf16.vlgmr.msra.gmra.mxu1 %v3359_v47  ;;  %v6735_v1 = vld [vmem:[%s8584_s8 + $0x728] sm:$0xff] }
 0xeb9   : > { %v3219_v14 = vadd.f32 %v3218_v10, %v2942_v4  ;;  %4496 = vmatmul.bf16.vlgmr.msrb.gmra.mxu0 %v3362_v8  ;;  %4505 = vmatpush.bf16.msrb.mxu1 %v6701_v5  ;;  %v3194_v15 = vpop.f32.mrf.mxu1  ;;  %v6744_v5 = vld [vmem:[%s8584_s8 + $0x770] sm:$0xff]  ;;  %v6734_v8 = vld [vmem:[%s8584_s8 + $0x720] sm:$0xff]  ;;  %v6743_v10 = vld [vmem:[%s8584_s8 + $0x768] sm:$0xff] }
 0xeba   : > { %v3344_v17 = vmax.f32 %v3206_v12, 0.0  ;;  %4544 = vmatpush.bf16.msra.mxu0 %v6725_v6  ;;  %v3233_v58 = vpop.f32.mrf.mxu0  ;;  %v6752_v6 = vld [vmem:[%s8584_s8 + $0x7b0] sm:$0xff] }
 0xebb   : > { %v3345_v20 = vmax.f32 %v3219_v14, 0.0  ;;  %4517 = vmatpush.bf16.msrb.mxu2 %v6710_v11  ;;  %v6758_v11 = vld [vmem:[%s8584_s8 + $0x7e0] sm:$0xff]  ;;  %v6751_v14 = vld [vmem:[%s8584_s8 + $0x7a8] sm:$0xff] }
 0xebc   : > { %v3360_v23 = vpack.c.bf16 %v3344_v17, %v3344_v17  ;;  %4530 = vmatpush.bf16.msrb.mxu3 %v6718_v13  ;;  %v6757_v17 = vld [vmem:[%s8584_s8 + $0x7d8] sm:$0xff]  ;;  %v6742_v58 = vld [vmem:[%s8584_s8 + $0x760] sm:$0xff] }
 0xebd   : > { %v3361_v63 = vpack.c.bf16 %v3345_v20, %v3345_v20  ;;  %4506 = vmatpush.bf16.msrb.mxu1 %v6700_v16  ;;  %v6733_v16 = vld [vmem:[%s8584_s8 + $0x718] sm:$0xff]  ;;  %v6732_v20 = vld [vmem:[%s8584_s8 + $0x710] sm:$0xff] }
 0xebe   : > { %4545 = vmatpush.bf16.msra.mxu0 %v6724_v19  ;;  %4470 = vmatmul.bf16.vlgmr.msra.gmra.mxu2 %v3360_v23  ;;  %v6750_v19 = vld [vmem:[%s8584_s8 + $0x7a0] sm:$0xff] }
 0xebf   : > { %4483 = vmatmul.bf16.vlgmr.msra.gmra.mxu3 %v3361_v63  ;;  %4518 = vmatpush.bf16.msrb.mxu2 %v6709_v21  ;;  %v3207_v39 = vpop.f32.mrf.mxu2  ;;  %v2948_v21 = vperm.slane %v8381_v22, 4  ;;  %v2951_v63 = vperm.slane %v8381_v22, 7 }
 0xec0   : > { %4531 = vmatpush.bf16.msrb.mxu3 %v6717_v24  ;;  %v3220_v31 = vpop.f32.mrf.mxu3  ;;  %v6756_v24 = vld [vmem:[%s8584_s8 + $0x7d0] sm:$0xff]  ;;  %v6749_v39 = vld [vmem:[%s8584_s8 + $0x798] sm:$0xff] }
 0xec1   : > { %4507 = vmatpush.bf16.msrb.mxu1 %v6699_v26  ;;  %v3244_v32 = vpop.f32.mrf.mxu1 }
 0xec2   : > { %4546 = vmatpush.bf16.msra.mxu0 %v6723_v27  ;;  %v3245_v34 = vadd.f32 %v3244_v32, %v2944_v28  ;;  %v3283_v36 = vpop.f32.mrf.mxu0  ;;  %v6741_v27 = vld [vmem:[%s8584_s8 + $0x758] sm:$0xff] }
 0xec3   : > { %v3284_v38 = vadd.f32 %v3283_v36, %v2947_v29  ;;  %4519 = vmatpush.bf16.msrb.mxu2 %v6708_v30  ;;  %v6731_v30 = vld [vmem:[%s8584_s8 + $0x708] sm:$0xff]  ;;  %v6748_v36 = vld [vmem:[%s8584_s8 + $0x790] sm:$0xff] }
 0xec4   : > { %v3347_v43 = vmax.f32 %v3245_v34, 0.0  ;;  %4532 = vmatpush.bf16.msrb.mxu3 %v6716_v18  ;;  %v6755_v18 = vld [vmem:[%s8584_s8 + $0x7c8] sm:$0xff]  ;;  %v2949_v34 = vperm.slane %v8381_v22, 5 }
 0xec5   : > { %v3350_v45 = vmax.f32 %v3284_v38, 0.0  ;;  %4508 = vmatpush.bf16.msrb.mxu1 %v6698_v33  ;;  %v6740_v33 = vld [vmem:[%s8584_s8 + $0x750] sm:$0xff] }
 0xec6   : > { %v3363_v48 = vpack.c.bf16 %v3347_v43, %v3347_v43  ;;  %4547 = vmatpush.bf16.msra.mxu0 %v6722_v37  ;;  %v2950_v37 = vperm.slane %v8381_v22, 6 }
 0xec7   : > { %v3366_v50 = vpack.c.bf16 %v3350_v45, %v3350_v45  ;;  %4520 = vmatpush.bf16.msrb.mxu2 %v6707_v42  ;;  %v3257_v51 = vpop.f32.mrf.mxu2  ;;  %v6754_v42 = vld [vmem:[%s8584_s8 + $0x7c0] sm:$0xff]  ;;  %v6747_v45 = vld [vmem:[%s8584_s8 + $0x788] sm:$0xff] }
 0xec8   : > { %4533 = vmatpush.bf16.msrb.mxu3 %v6715_v44  ;;  %v3258_v54 = vadd.f32 %v3257_v51, %v2945_v41  ;;  %v3270_v55 = vpop.f32.mrf.mxu3  ;;  %4509 = vmatmul.bf16.vlgmr.msrb.gmra.mxu1 %v3363_v48  ;;  %v6739_v41 = vld [vmem:[%s8584_s8 + $0x748] sm:$0xff] }
 0xec9   : > { %4553 = vmatpush.bf16.msra.mxu1 %v6737_v35  ;;  %v3271_v59 = vadd.f32 %v3270_v55, %v2946_v46  ;;  %4548 = vmatmul.bf16.vlgmr.msra.gmra.mxu0 %v3366_v50  ;;  %v3246_v61 = vpop.f32.mrf.mxu1  ;;  %v6730_v35 = vld [vmem:[%s8584_s8 + $0x700] sm:$0xff] }
 0xeca   : > { %4592 = vmatpush.bf16.msrb.mxu0 %v6761_v40  ;;  %v3348_v7 = vmax.f32 %v3258_v54, 0.0  ;;  %v3285_v0 = vpop.f32.mrf.mxu0  ;;  %v6738_v50 = vld [vmem:[%s8584_s8 + $0x740] sm:$0xff] }
 0xecb   : > { %v3349_v2 = vmax.f32 %v3271_v59, 0.0  ;;  %4521 = vmatpush.bf16.msrb.mxu2 %v6706_v53 }
 0xecc   : > { %v3364_v4 = vpack.c.bf16 %v3348_v7, %v3348_v7  ;;  %4534 = vmatpush.bf16.msrb.mxu3 %v6714_v56 }
 0xecd   : > { %4554 = vmatpush.bf16.msra.mxu1 %v6736_v49  ;;  %v3365_v47 = vpack.c.bf16 %v3349_v2, %v3349_v2 }
 0xece   : > { %4593 = vmatpush.bf16.msrb.mxu0 %v6760_v52  ;;  %4522 = vmatmul.bf16.vlgmr.msrb.gmra.mxu2 %v3364_v4  ;;  %v6746_v52 = vld [vmem:[%s8584_s8 + $0x780] sm:$0xff] }
 0xecf   : > { %4566 = vmatpush.bf16.msra.mxu2 %v6745_v57  ;;  %4535 = vmatmul.bf16.vlgmr.msrb.gmra.mxu3 %v3365_v47  ;;  %v3259_v9 = vpop.f32.mrf.mxu2  ;;  %v8523_v47 = vld [vmem:[%s8585_s9 + $0x8] sm:$0x3f] }
 0xed0   : > { %4579 = vmatpush.bf16.msra.mxu3 %v6753_v62  ;;  %v3272_v12 = vpop.f32.mrf.mxu3 }
 0xed1   : > { %4555 = vmatpush.bf16.msra.mxu1 %v6735_v1  ;;  %v3296_v13 = vpop.f32.mrf.mxu1 }
 0xed2   : > { %4594 = vmatpush.bf16.msrb.mxu0 %v6759_v3  ;;  %v3335_v15 = vpop.f32.mrf.mxu0  ;;  %v3297_v31 = vadd.f32 %v3296_v13, %v2948_v21 }
 0xed3   : > { %4567 = vmatpush.bf16.msra.mxu2 %v6744_v5  ;;  %v3336_v32 = vadd.f32 %v3335_v15, %v2951_v63 }
 0xed4   : > { %4580 = vmatpush.bf16.msra.mxu3 %v6752_v6  ;;  %v3351_v38 = vmax.f32 %v3297_v31, 0.0  ;;  %v3628_v6 = vperm.slane %v8523_v47, 3 }
 0xed5   : > { %4556 = vmatpush.bf16.msra.mxu1 %v6734_v8  ;;  %v3354_v43 = vmax.f32 %v3336_v32, 0.0 }
 0xed6   : > { %4595 = vmatpush.bf16.msrb.mxu0 %v6758_v11  ;;  %v3367_v48 = vpack.c.bf16 %v3351_v38, %v3351_v38 }
 0xed7   : > { %4568 = vmatpush.bf16.msra.mxu2 %v6743_v10  ;;  %v3309_v23 = vpop.f32.mrf.mxu2  ;;  %v3370_v49 = vpack.c.bf16 %v3354_v43, %v3354_v43 }
 0xed8   : > { %4581 = vmatpush.bf16.msra.mxu3 %v6751_v14  ;;  %v3322_v26 = vpop.f32.mrf.mxu3  ;;  %v3310_v22 = vadd.f32 %v3309_v23, %v2949_v34 }
 0xed9   : > { %4557 = vmatpush.bf16.msra.mxu1 %v6733_v16  ;;  %v3298_v28 = vpop.f32.mrf.mxu1  ;;  %v3323_v46 = vadd.f32 %v3322_v26, %v2950_v37 }
 0xeda   : > { %4596 = vmatpush.bf16.msrb.mxu0 %v6757_v17  ;;  %v3337_v29 = vpop.f32.mrf.mxu0  ;;  %v3352_v51 = vmax.f32 %v3310_v22, 0.0 }
 0xedb   : > { %4569 = vmatpush.bf16.msra.mxu2 %v6742_v58  ;;  %v3353_v53 = vmax.f32 %v3323_v46, 0.0 }
 0xedc   : > { %4582 = vmatpush.bf16.msra.mxu3 %v6750_v19  ;;  %v3368_v54 = vpack.c.bf16 %v3352_v51, %v3352_v51  ;;  %v6763_v51 = vld [vmem:[%s8586_s10 + $0x8] sm:$0xff] }
 0xedd   : > { %4558 = vmatpush.bf16.msra.mxu1 %v6732_v20  ;;  %v3369_v55 = vpack.c.bf16 %v3353_v53, %v3353_v53 }
 0xede   : > { %4597 = vmatpush.bf16.msrb.mxu0 %v6756_v24 }
 0xedf   : > { %4570 = vmatpush.bf16.msra.mxu2 %v6741_v27  ;;  %v3311_v40 = vpop.f32.mrf.mxu2 }
 0xee0   : > { %4583 = vmatpush.bf16.msra.mxu3 %v6749_v39  ;;  %v3324_v44 = vpop.f32.mrf.mxu3 }
 0xee1   : > { %4559 = vmatpush.bf16.msra.mxu1 %v6731_v30 }
 0xee2   : > { %4598 = vmatpush.bf16.msrb.mxu0 %v6755_v18 }
 0xee3   : > { %4571 = vmatpush.bf16.msra.mxu2 %v6740_v33 }
 0xee4   : > { %4584 = vmatpush.bf16.msra.mxu3 %v6748_v36 }
 0xee5   : > { %4560 = vmatpush.bf16.msra.mxu1 %v6730_v35 }
 0xee6   : > { %4599 = vmatpush.bf16.msrb.mxu0 %v6754_v42 }
 0xee7   : > { %4572 = vmatpush.bf16.msra.mxu2 %v6739_v41 }
 0xee8   : > { %4585 = vmatpush.bf16.msra.mxu3 %v6747_v45  ;;  %4561 = vmatmul.bf16.vlgmr.msra.gmra.mxu1 %v3367_v48 }
 0xee9   : > { %4600 = vmatmul.bf16.vlgmr.msrb.gmra.mxu0 %v3370_v49  ;;  %4662 = vmatpush.bf16.msrb.mxu1 %v6763_v51 }
 0xeeb   : > { %4573 = vmatpush.bf16.msra.mxu2 %v6738_v50 }
 0xeec   : > { %4586 = vmatpush.bf16.msra.mxu3 %v6746_v52 }
 0xeee   : > { %4574 = vmatmul.bf16.vlgmr.msra.gmra.mxu2 %v3368_v54 }
 0xeef   : > { %4587 = vmatmul.bf16.vlgmr.msra.gmra.mxu3 %v3369_v55 }
 0xf25   : > { %v4406_v56 = vpop.f32.mrf.mxu1 }
 0xf26   : > { %v4445_v57 = vpop.f32.mrf.mxu0  ;;  %v4407_v11 = vadd.f32 %v4406_v56, %v3628_v6 }
 0xf2d   : > { %v4408_v59 = vpop.f32.mrf.mxu1 }
 0xf2e   : > { %v4447_v61 = vpop.f32.mrf.mxu0 }
 0xf31   : > { %v4419_v62 = vpop.f32.mrf.mxu2 }
 0xf32   : > { %v4432_v7 = vpop.f32.mrf.mxu3  ;;  %v4420_v13 = vadd.f32 %v4419_v62, %v4407_v11 }
 0xf34   : > { %v4433_v16 = vadd.f32 %v4432_v7, %v4420_v13  ;;  %v4628_v7 = vperm.slane %v8523_v47, 4 }
 0xf35   : > { %v4458_v0 = vpop.f32.mrf.mxu1 }
 0xf36   : > { %v4497_v1 = vpop.f32.mrf.mxu0  ;;  %v4446_v19 = vadd.f32 %v4445_v57, %v4433_v16 }
 0xf38   : > { %v4459_v23 = vadd.f32 %v4458_v0, %v4446_v19 }
 0xf39   : > { %v4421_v2 = vpop.f32.mrf.mxu2 }
 0xf3a   : > { %v4434_v3 = vpop.f32.mrf.mxu3 }
 0xf3d   : > { %v4460_v4 = vpop.f32.mrf.mxu1 }
 0xf3e   : > { %v4499_v5 = vpop.f32.mrf.mxu0 }
 0xf3f   : > { %v6814_v5 = vld [vmem:[%s8587_s11] ss:$0 sm:$0xff] }
 0xf41   : > { %v4471_v8 = vpop.f32.mrf.mxu2 }
 0xf42   : > { %v4484_v9 = vpop.f32.mrf.mxu3  ;;  %v4472_v24 = vadd.f32 %v4471_v8, %v4459_v23 }
 0xf44   : > { %v4485_v63 = vadd.f32 %v4484_v9, %v4472_v24 }
 0xf45   : > { %v4510_v12 = vpop.f32.mrf.mxu1 }
 0xf46   : > { %v4549_v10 = vpop.f32.mrf.mxu0  ;;  %v4498_v28 = vadd.f32 %v4497_v1, %v4485_v63  ;;  %v4630_v1 = vperm.slane %v8523_v47, 5 }
 0xf48   : > { %v4511_v39 = vadd.f32 %v4510_v12, %v4498_v28 }
 0xf49   : > { %v4473_v14 = vpop.f32.mrf.mxu2 }
 0xf4a   : > { %v4486_v15 = vpop.f32.mrf.mxu3 }
 0xf4d   : > { %v4512_v17 = vpop.f32.mrf.mxu1 }
 0xf4e   : > { %v4551_v58 = vpop.f32.mrf.mxu0 }
 0xf51   : > { %v4523_v20 = vpop.f32.mrf.mxu2 }
 0xf52   : > { %v4536_v21 = vpop.f32.mrf.mxu3  ;;  %v4524_v30 = vadd.f32 %v4523_v20, %v4511_v39 }
 0xf54   : > { %v4537_v18 = vadd.f32 %v4536_v21, %v4524_v30 }
 0xf56   : > { %v4550_v33 = vadd.f32 %v4549_v10, %v4537_v18 }
 0xf59   : > { %v4525_v26 = vpop.f32.mrf.mxu2 }
 0xf5a   : > { %v4538_v27 = vpop.f32.mrf.mxu3 }
 0xf65   : > { %v4562_v29 = vpop.f32.mrf.mxu1 }
 0xf66   : > { %v4601_v31 = vpop.f32.mrf.mxu0  ;;  %v4563_v36 = vadd.f32 %v4562_v29, %v4550_v33 }
 0xf6d   : > { %v4564_v32 = vpop.f32.mrf.mxu1 }
 0xf6e   : > { %v4603_v34 = vpop.f32.mrf.mxu0 }
 0xf71   : > { %v4575_v37 = vpop.f32.mrf.mxu2 }
 0xf72   : > { %v4576_v35 = vadd.f32 %v4575_v37, %v4563_v36  ;;  %v4588_v38 = vpop.f32.mrf.mxu3 }
 0xf74   : > { %v4589_v40 = vadd.f32 %v4588_v38, %v4576_v35 }
 0xf76   : > { %v4602_v42 = vadd.f32 %v4601_v31, %v4589_v40 }
 0xf78   : > { %v4605_v43 = vadd.f32 %v4602_v42, %v7991_v25  ;;  %v6762_v25 = vld [vmem:[%s8586_s10] sm:$0xff] }
 0xf79   : > { %v4577_v44 = vpop.f32.mrf.mxu2  ;;  %4663 = vmatpush.bf16.msrb.mxu1 %v6762_v25 }
 0xf7a   : > { %v4590_v41 = vpop.f32.mrf.mxu3  ;;  %v4606_v22 = vsel %vm460_vm1, %v4605_v43, 0.0 }
 0xf7b   : > { %4607 = vadd.xlane.f32.xlu0 %v4606_v22 }
 0xfee   : > { %v4608_v45 = vpop.xlane.xlu0 %4607 }
 0xfef   : > { %v4609_v46 = vmul.f32 %v4608_v45, %v7135_v60 }
 0xff1   : > { %v4610_v48 = vsub.f32 %v4605_v43, %v4609_v46 }
 0xff3   : > { %v4611_v49 = vmul.f32 %v4610_v48, %v4610_v48 }
 0xff5   : > { %v4612_v50 = vsel %vm460_vm1, %v4611_v49, 0.0 }
 0xff6   : > { %4613 = vadd.xlane.f32.xlu0 %v4612_v50 }
0x1069   : > { %v4614_v52 = vpop.xlane.xlu0 %4613 }
0x106a   : > { %v4615_v53 = vmul.f32 %v4614_v52, %v7135_v60 }
0x106c   : > { %v4616_v54 = vadd.f32 1e-05, %v4615_v53 }
0x106e   : > { %6855 = vrsqrt.f32 %v4616_v54  ;;  %vm4623_vm2 = vweird.f32 %v4616_v54 }
0x1074   : > { %v6856_v55 = vpop.eup %6855 }
0x1075   : > { %v4618_v56 = vmul.f32 %v6856_v55, %v4616_v54  ;;  %vm4624_vm15 = vweird.f32 %v6856_v55 }
0x1076   : > { %vm4625_vm3 = vmor %vm4623_vm2, %vm4624_vm15 }
0x1077   : > { %v4619_v57 = vmul.f32 %v6856_v55, %v4618_v56 }
0x1079   : > { %v4620_v59 = vmul.f32 0.5, %v4619_v57 }
0x107b   : > { %v4621_v61 = vsub.f32 1.5, %v4620_v59 }
0x107d   : > { %v4622_v62 = vmul.f32 %v6856_v55, %v4621_v61 }
0x107f   : > { %v4626_v0 = vsel %vm4625_vm3, %v6856_v55, %v4622_v62 }
0x1080   : > { %v4627_v2 = vmul.f32 %v4626_v0, %v4610_v48 }
0x1082   : > { %v4629_v60 = vmul.f32 %v4628_v7, %v4627_v2 }
0x1084   : > { %v4631_v3 = vadd.f32 %v4630_v1, %v4629_v60 }
0x1086   : > { %v4632_v4 = vpack.c.bf16 %v4631_v3, %v4631_v3 }
0x1088   : > { %6428 = vmatmul.msk.bf16.vlgmr.msrb.gmra.mxu1 %vm460_vm1, %v4632_v4 }
0x1105   : > { %v4665_v47 = vpop.f32.mrf.mxu1 }
0x1106   : > { %v4666_v6 = vadd.f32 %v6814_v5, %v4665_v47 }
0x1108   : > { %4669 = vst.msk [vmem:[%s404_s2] sm:$0xff] %vm421_vm0, %v4666_v6 }
0x1109   : > { %6886 = shalt.err (!%p6883_p3)
}
0x110a   : > { %6764 = dma.vmem_to_hbm [thread:$0]  (%p7035_p5), %s4684_s0, 128, %s4686_s26, %s4671_s25  }
0x110d   : > { %v4667_v8 = vpop.f32.mrf.mxu1 }
0x110e PF: > { %p6770_p4 = scmp.ge.s32.totalorder %s6921_s24, 2  ;;  %s4697_s28 = sand.u32 1, %s6909_s21  }
0x110f   : > { %s4698_s18 = scalar_lea.sflag [#allocation3], %s4697_s28 }
0x1110   : > { %p6767_p7 = pnand %p6770_p4, %p7039_p6 }
0x1112   : > { %p6768_p8 = pneg %p6767_p7 }
0x1114   : > { %6904 = dma.done.wait (%p6768_p8), %s4698_s18, 128  }
0x1115   : > { %6906 = vsyncadd (%p6768_p8), %s4698_s18, 4294967168  ;;  %p22_p9 = scmp.ge.s32.totalorder %s7022_s27, 4   ;;  %s8617_s21 = smov %s6913_s22 }
0x1116   : > { %s8618_s22 = smov %s6917_s23  ;;  %s8619_s23 = smov %s7033_s30 }
0x1117   : > { %s8620_s24 = smov %s7022_s27  ;;  %24 = sbr.rel (!%p22_p9) target bundleno = 8 (0x8), region = 110 }
0x111c   :  { %4704 = vsyncpa [#allocation3], 1 }
0x111d   :  { %4706 = vsyncpa [#allocation3 + $0x1], 1 }

</bundles_post_ra>
